<compile_context>
chip_gen: v6e
topology: v6e:2x2x1
jax: 0.10.0
libtpu: 0.0.40
codegen_flags: <defaults>
</compile_context>

<pallas_src>
import jax
import jax.numpy as jnp
from jax import lax
from jax.experimental import pallas as pl
from jax.experimental.pallas import tpu as pltpu

N, C_IN, H, W = 1, 256, 14, 14
C_MID, C_OUT = 256, 1024
KH, KW = 3, 3
NTAP = KH * KW                 # 9
HW = H * W                     # 196
KTOT = NTAP * C_IN             # 2304
NKCHUNK = 3                    # 3 pipelined K-chunks
KCHUNK = KTOT // NKCHUNK       # 768
EPS = 1e-5
INV_HW = 1.0 / HW


def fused_kernel(x_ref, w1_ref, gamma_ref, beta_ref, w2_ref, o_ref, acc_ref):
    # x_ref:     (HW, KCHUNK)    bf16 im2col slab (taps folded into K)
    # w1_ref:    (KCHUNK, C_MID) bf16 3x3-conv weight slab
    # gamma_ref: (1, C_MID)      f32
    # beta_ref:  (1, C_MID)      f32
    # w2_ref:    (C_MID, C_OUT)  bf16 1x1-conv weight
    # o_ref:     (HW, C_OUT)     f32 output
    # acc_ref:   (HW, C_MID)     f32 accumulator (VMEM scratch)
    k = pl.program_id(0)

    partial = jnp.dot(x_ref[...], w1_ref[...],
                      preferred_element_type=jnp.float32)

    @pl.when(k == 0)
    def _():
        acc_ref[...] = partial            # init from first chunk (no zero-fill)

    @pl.when(k != 0)
    def _():
        acc_ref[...] = acc_ref[...] + partial

    @pl.when(k == pl.num_programs(0) - 1)
    def _():
        acc = acc_ref[...]                                   # (HW, C_MID) f32
        # BatchNorm2d (training mode): per-channel batch stats over N*H*W,
        # biased variance, one-pass formulation (f32 throughout).
        s = jnp.sum(acc, axis=0, keepdims=True)              # (1, C_MID)
        ss = jnp.sum(acc * acc, axis=0, keepdims=True)       # (1, C_MID)
        mean = s * INV_HW
        var = ss * INV_HW - mean * mean
        inv_std = lax.rsqrt(var + EPS)                       # EUP
        scale = gamma_ref[...] * inv_std
        shift = beta_ref[...] - mean * scale
        # BN affine + ReLU as a single broadcasted FMA + max.
        y = jnp.maximum(acc * scale + shift, 0.0)
        # 1x1 conv == channel matmul on the MXU (bf16 operands, f32 accum).
        out = jnp.dot(y.astype(jnp.bfloat16), w2_ref[...],
                      preferred_element_type=jnp.float32)
        o_ref[...] = out.astype(o_ref.dtype)


def conv_bn_relu_conv(x_nchw, w1_oihw, gamma, beta, w2_oihw):
    # Layout / im2col glue in plain JAX (wrapper-side, XLA).
    x = jnp.transpose(x_nchw, (0, 2, 3, 1))[0]               # (H, W, C_IN)
    x_pad = jnp.pad(x, ((1, 1), (1, 1), (0, 0)))             # (H+2, W+2, C_IN)
    # Tap-folded im2col: column index = (kh*KW + kw)*C_IN + c.
    taps = jnp.concatenate(
        [x_pad[kh:kh + H, kw:kw + W, :].reshape(HW, C_IN)
         for kh in range(KH) for kw in range(KW)],
        axis=1).astype(jnp.bfloat16)                          # (HW, KTOT)

    # (C_MID, C_IN, 3, 3) -> (3, 3, C_IN, C_MID) -> (KTOT, C_MID): row index
    # matches the im2col column ordering (tap-major, channel-minor).
    w1 = jnp.transpose(w1_oihw, (2, 3, 1, 0)).reshape(KTOT, C_MID)
    w1 = w1.astype(jnp.bfloat16)
    # (C_OUT, C_MID, 1, 1) -> (C_MID, C_OUT)
    w2 = jnp.transpose(w2_oihw[:, :, 0, 0], (1, 0)).astype(jnp.bfloat16)
    g = gamma.reshape(1, C_MID).astype(jnp.float32)
    b = beta.reshape(1, C_MID).astype(jnp.float32)

    out_flat = pl.pallas_call(
        fused_kernel,
        out_shape=jax.ShapeDtypeStruct((HW, C_OUT), jnp.float32),
        grid_spec=pltpu.PrefetchScalarGridSpec(
            num_scalar_prefetch=0,
            grid=(NKCHUNK,),
            in_specs=[
                pl.BlockSpec((HW, KCHUNK), lambda k: (0, k)),       # im2col
                pl.BlockSpec((KCHUNK, C_MID), lambda k: (k, 0)),    # w1
                pl.BlockSpec((1, C_MID), lambda k: (0, 0)),         # gamma
                pl.BlockSpec((1, C_MID), lambda k: (0, 0)),         # beta
                pl.BlockSpec((C_MID, C_OUT), lambda k: (0, 0)),     # w2
            ],
            out_specs=pl.BlockSpec((HW, C_OUT), lambda k: (0, 0)),
            scratch_shapes=[pltpu.VMEM((HW, C_MID), jnp.float32)],
        ),
        compiler_params=pltpu.CompilerParams(
            dimension_semantics=("arbitrary",),   # reduction axis; must stay
            vmem_limit_bytes=32 << 20,            # portable to v7x's 64 MiB
        ),
    )(taps, w1, g, b, w2)

    out = out_flat.reshape(1, H, W, C_OUT)
    return jnp.transpose(out, (0, 3, 1, 2))                  # NHWC -> NCHW


def reference(x, w1, gamma, beta, w2):
    # Pure-JAX f32 reference of the PyTorch module's forward.
    y = lax.conv_general_dilated(
        x, w1, window_strides=(1, 1), padding=((1, 1), (1, 1)),
        dimension_numbers=("NCHW", "OIHW", "NCHW"))
    mean = jnp.mean(y, axis=(0, 2, 3), keepdims=True)
    var = jnp.mean((y - mean) ** 2, axis=(0, 2, 3), keepdims=True)
    y = (y - mean) * lax.rsqrt(var + EPS)
    y = y * gamma.reshape(1, -1, 1, 1) + beta.reshape(1, -1, 1, 1)
    y = jnp.maximum(y, 0.0)
    return lax.conv_general_dilated(
        y, w2, window_strides=(1, 1), padding="VALID",
        dimension_numbers=("NCHW", "OIHW", "NCHW"))


if __name__ == "__main__":
    key = jax.random.PRNGKey(0)
    k_x, k_w1, k_w2 = jax.random.split(key, 3)

    x = jax.random.normal(k_x, (N, C_IN, H, W), jnp.float32)
    w1 = jax.random.normal(k_w1, (C_MID, C_IN, KH, KW), jnp.float32) * 0.02
    w2 = jax.random.normal(k_w2, (C_OUT, C_MID, 1, 1), jnp.float32) * 0.02
    gamma = jnp.ones((C_MID,), jnp.float32)   # BatchNorm2d default affine init
    beta = jnp.zeros((C_MID,), jnp.float32)

    out = conv_bn_relu_conv(x, w1, gamma, beta, w2)
    jax.block_until_ready(out)
    assert out.shape == (N, C_OUT, H, W)

    ref = reference(x, w1, gamma, beta, w2)
    # bf16 matmul operands with f32 accumulation -> mixed-precision tolerance.
    assert jnp.allclose(out, ref, atol=2e-2, rtol=2e-2)
    # TODO(synk): BatchNorm2d running_mean/running_var state update is not
    # produced (forward activation only).
    print("KERNEL_OK")
</pallas_src>

<mosaic_0001>
module attributes {stable_mosaic.version = 11 : i64} {
  func.func @fused_kernel(%arg0: i32, %arg1: memref<196x768xbf16, #tpu.memory_space<vmem>>, %arg2: memref<768x256xbf16, #tpu.memory_space<vmem>>, %arg3: memref<1x256xf32, #tpu.memory_space<vmem>>, %arg4: memref<1x256xf32, #tpu.memory_space<vmem>>, %arg5: memref<256x1024xbf16, #tpu.memory_space<vmem>>, %arg6: memref<196x1024xf32, #tpu.memory_space<vmem>>, %arg7: memref<196x256xf32, #tpu.memory_space<vmem>>) attributes {dimension_semantics = [#tpu.dimension_semantics<arbitrary>], iteration_bounds = array<i64: 3>, scalar_prefetch = 0 : i64, scratch_operands = 1 : i64, tpu.core_type = #tpu.core_type<tc>, window_params = [{transform_indices = @transform_0, window_bounds = array<i64: 196, 768>}, {transform_indices = @transform_1, window_bounds = array<i64: 768, 256>}, {pipeline_mode = #tpu.pipeline_mode<synchronous>, transform_indices = @transform_2, window_bounds = array<i64: 1, 256>}, {pipeline_mode = #tpu.pipeline_mode<synchronous>, transform_indices = @transform_3, window_bounds = array<i64: 1, 256>}, {pipeline_mode = #tpu.pipeline_mode<synchronous>, transform_indices = @transform_4, window_bounds = array<i64: 256, 1024>}, {pipeline_mode = #tpu.pipeline_mode<synchronous>, transform_indices = @transform_5, window_bounds = array<i64: 196, 1024>}]} {
    %c0 = arith.constant 0 : index
    %c0_0 = arith.constant 0 : index
    %0 = vector.load %arg1[%c0, %c0_0] : memref<196x768xbf16, #tpu.memory_space<vmem>>, vector<196x768xbf16>
    %c0_1 = arith.constant 0 : index
    %c0_2 = arith.constant 0 : index
    %1 = vector.load %arg2[%c0_1, %c0_2] : memref<768x256xbf16, #tpu.memory_space<vmem>>, vector<768x256xbf16>
    %cst = arith.constant dense<0.000000e+00> : vector<196x256xf32>
    %2 = tpu.matmul %0, %1, %cst {dimension_numbers = #tpu.dot_dimension_numbers<[1], [0], [0], [1], [0, 0, 1, 1], [], []>} : vector<196x768xbf16>, vector<768x256xbf16>, vector<196x256xf32> -> vector<196x256xf32>
    %c0_i32 = arith.constant 0 : i32
    %3 = arith.cmpi eq, %arg0, %c0_i32 : i32
    %4 = arith.extui %3 : i1 to i32
    %c0_i32_3 = arith.constant 0 : i32
    %5 = arith.cmpi ne, %4, %c0_i32_3 : i32
    scf.if %5 {
      %c0_7 = arith.constant 0 : index
      %c0_8 = arith.constant 0 : index
      %12 = vector.load %arg7[%c0_7, %c0_8] : memref<196x256xf32, #tpu.memory_space<vmem>>, vector<196x256xf32>
      tpu.vector_store %arg7[%c0_7, %c0_8], %2 {strides = array<i32>} : memref<196x256xf32, #tpu.memory_space<vmem>>, vector<196x256xf32>,
    } else {
    }
    %c0_i32_4 = arith.constant 0 : i32
    %6 = arith.cmpi ne, %arg0, %c0_i32_4 : i32
    %7 = arith.extui %6 : i1 to i32
    %c0_i32_5 = arith.constant 0 : i32
    %8 = arith.cmpi ne, %7, %c0_i32_5 : i32
    scf.if %8 {
      %c0_7 = arith.constant 0 : index
      %c0_8 = arith.constant 0 : index
      %12 = vector.load %arg7[%c0_7, %c0_8] : memref<196x256xf32, #tpu.memory_space<vmem>>, vector<196x256xf32>
      %13 = arith.addf %12, %2 : vector<196x256xf32>
      %c0_9 = arith.constant 0 : index
      %c0_10 = arith.constant 0 : index
      %14 = vector.load %arg7[%c0_9, %c0_10] : memref<196x256xf32, #tpu.memory_space<vmem>>, vector<196x256xf32>
      tpu.vector_store %arg7[%c0_9, %c0_10], %13 {strides = array<i32>} : memref<196x256xf32, #tpu.memory_space<vmem>>, vector<196x256xf32>,
    } else {
    }
    %c2_i32 = arith.constant 2 : i32
    %9 = arith.cmpi eq, %arg0, %c2_i32 : i32
    %10 = arith.extui %9 : i1 to i32
    %c0_i32_6 = arith.constant 0 : i32
    %11 = arith.cmpi ne, %10, %c0_i32_6 : i32
    scf.if %11 {
      %c0_7 = arith.constant 0 : index
      %c0_8 = arith.constant 0 : index
      %12 = vector.load %arg7[%c0_7, %c0_8] : memref<196x256xf32, #tpu.memory_space<vmem>>, vector<196x256xf32>
      %cst_9 = arith.constant dense<0.000000e+00> : vector<256xf32>
      %13 = vector.multi_reduction <add>, %12, %cst_9 [0] : vector<196x256xf32> to vector<256xf32>
      %14 = vector.shape_cast %13 : vector<256xf32> to vector<1x256xf32>
      %15 = arith.mulf %12, %12 : vector<196x256xf32>
      %cst_10 = arith.constant dense<0.000000e+00> : vector<256xf32>
      %16 = vector.multi_reduction <add>, %15, %cst_10 [0] : vector<196x256xf32> to vector<256xf32>
      %17 = vector.shape_cast %16 : vector<256xf32> to vector<1x256xf32>
      %cst_11 = arith.constant 0.00510204071 : f32
      %18 = vector.broadcast %cst_11 : f32 to vector<1x256xf32>
      %19 = arith.mulf %14, %18 : vector<1x256xf32>
      %cst_12 = arith.constant 0.00510204071 : f32
      %20 = vector.broadcast %cst_12 : f32 to vector<1x256xf32>
      %21 = arith.mulf %17, %20 : vector<1x256xf32>
      %22 = arith.mulf %19, %19 : vector<1x256xf32>
      %23 = arith.subf %21, %22 : vector<1x256xf32>
      %cst_13 = arith.constant 9.99999974E-6 : f32
      %24 = vector.broadcast %cst_13 : f32 to vector<1x256xf32>
      %25 = arith.addf %23, %24 : vector<1x256xf32>
      %26 = math.rsqrt %25 : vector<1x256xf32>
      %c0_14 = arith.constant 0 : index
      %c0_15 = arith.constant 0 : index
      %27 = vector.load %arg3[%c0_14, %c0_15] : memref<1x256xf32, #tpu.memory_space<vmem>>, vector<1x256xf32>
      %28 = arith.mulf %27, %26 : vector<1x256xf32>
      %c0_16 = arith.constant 0 : index
      %c0_17 = arith.constant 0 : index
      %29 = vector.load %arg4[%c0_16, %c0_17] : memref<1x256xf32, #tpu.memory_space<vmem>>, vector<1x256xf32>
      %30 = arith.mulf %19, %28 : vector<1x256xf32>
      %31 = arith.subf %29, %30 : vector<1x256xf32>
      %32 = vector.broadcast %28 : vector<1x256xf32> to vector<196x256xf32>
      %33 = arith.mulf %12, %32 : vector<196x256xf32>
      %34 = vector.broadcast %31 : vector<1x256xf32> to vector<196x256xf32>
      %35 = arith.addf %33, %34 : vector<196x256xf32>
      %cst_18 = arith.constant 0.000000e+00 : f32
      %36 = vector.broadcast %cst_18 : f32 to vector<196x256xf32>
      %37 = arith.maximumf %35, %36 : vector<196x256xf32>
      %38 = arith.truncf %37 : vector<196x256xf32> to vector<196x256xbf16>
      %c0_19 = arith.constant 0 : index
      %c0_20 = arith.constant 0 : index
      %39 = vector.load %arg5[%c0_19, %c0_20] : memref<256x1024xbf16, #tpu.memory_space<vmem>>, vector<256x1024xbf16>
      %cst_21 = arith.constant dense<0.000000e+00> : vector<196x1024xf32>
      %40 = tpu.matmul %38, %39, %cst_21 {dimension_numbers = #tpu.dot_dimension_numbers<[1], [0], [0], [1], [0, 0, 1, 1], [], []>} : vector<196x256xbf16>, vector<256x1024xbf16>, vector<196x1024xf32> -> vector<196x1024xf32>
      %c0_22 = arith.constant 0 : index
      %c0_23 = arith.constant 0 : index
      %41 = vector.load %arg6[%c0_22, %c0_23] : memref<196x1024xf32, #tpu.memory_space<vmem>>, vector<196x1024xf32>
      tpu.vector_store %arg6[%c0_22, %c0_23], %40 {strides = array<i32>} : memref<196x1024xf32, #tpu.memory_space<vmem>>, vector<196x1024xf32>,
    } else {
    }
    return
  }
  func.func @transform_0(%arg0: i32) -> (i32, i32) {
    %c0_i32 = arith.constant 0 : i32
    %c0_i32_0 = arith.constant 0 : i32
    return %c0_i32, %arg0 : i32, i32
  }
  func.func @transform_1(%arg0: i32) -> (i32, i32) {
    %c0_i32 = arith.constant 0 : i32
    %c0_i32_0 = arith.constant 0 : i32
    return %arg0, %c0_i32 : i32, i32
  }
  func.func @transform_2(%arg0: i32) -> (i32, i32) {
    %c0_i32 = arith.constant 0 : i32
    %c0_i32_0 = arith.constant 0 : i32
    %c0_i32_1 = arith.constant 0 : i32
    return %c0_i32, %c0_i32_0 : i32, i32
  }
  func.func @transform_3(%arg0: i32) -> (i32, i32) {
    %c0_i32 = arith.constant 0 : i32
    %c0_i32_0 = arith.constant 0 : i32
    %c0_i32_1 = arith.constant 0 : i32
    return %c0_i32, %c0_i32_0 : i32, i32
  }
  func.func @transform_4(%arg0: i32) -> (i32, i32) {
    %c0_i32 = arith.constant 0 : i32
    %c0_i32_0 = arith.constant 0 : i32
    %c0_i32_1 = arith.constant 0 : i32
    return %c0_i32, %c0_i32_0 : i32, i32
  }
  func.func @transform_5(%arg0: i32) -> (i32, i32) {
    %c0_i32 = arith.constant 0 : i32
    %c0_i32_0 = arith.constant 0 : i32
    %c0_i32_1 = arith.constant 0 : i32
    return %c0_i32, %c0_i32_0 : i32, i32
  }
}

</mosaic_0001>

<bundles_post_ra>
// kernel: tpu_custom_call.1
= control target key start
LH: loop header
LB: loop body
LE: loop exit
PB: predicated region body
PF: predicated region fallthrough
CT: control target
= control target key end

     0   :  { %s6939_s0 = inlined_call_operand.hbm [shape: bf16[196,2304], index: 0, kind: input, shape index: {}]   ;;  %s6940_s1 = inlined_call_operand.hbm [shape: bf16[2304,256], index: 1, kind: input, shape index: {}]   ;;  %s6941_s2 = inlined_call_operand.hbm [shape: f32[1,256], index: 2, kind: input, shape index: {}]   ;;  %s6942_s3 = inlined_call_operand.hbm [shape: f32[1,256], index: 3, kind: input, shape index: {}]   ;;  %s6943_s4 = inlined_call_operand.hbm [shape: bf16[256,1024], index: 4, kind: input, shape index: {}]   ;;  %s6944_s5 = inlined_call_operand.hbm [shape: f32[196,1024], index: 5, kind: output, shape index: {}]  }
   0x1   :  { %6990 = sst [smem:[#allocation51_spill]] %s6939_s0 }
   0x2   :  { %10 = vsyncpa [#allocation4], 0 }
   0x3   :  { %12 = vsyncpa [#allocation4 + $0x1], 0 }
   0x4   :  { %13 = vsyncpa [#allocation7], 0 }
   0x5   :  { %15 = vsyncpa [#allocation7 + $0x1], 0 }
   0x6   :  { %16 = vsyncpa [#allocation10], 0 }
   0x7   :  { %17 = vsyncpa [#allocation5], 0  ;;  %s5216_s18 = smov 0   ;;  %s5218_s19 = smov 0  }
   0x8   :  { %s5220_s20 = smov 0   ;;  %s5222_s21 = smov 0  }
   0x9 LB: > { %s5235_s22 = sadd.s32 4294967295, %s5168_s21   ;;  %s5238_s23 = sadd.s32 1, %s5168_s21   ;;  %s5168_s21 = sphi %s5222_s21, %s7112_s21   ;;  %s5164_s20 = sphi %s5220_s20, %s7111_s20   ;;  %s5160_s19 = sphi %s5218_s19, %s7110_s19   ;;  %s5156_s18 = sphi %s5216_s18, %s7109_s18  }
   0xa   : > { %s27_s24 = ssub.s32 %s5168_s21, %s5238_s23  ;;  %s30_s25 = sadd.s32 1, %s5164_s20 }
   0xb   : > { %p28_p0 = scmp.eq.s32.totalorder %s27_s24, 0  ;;  %p37_p1 = scmp.ne.s32.totalorder %s5164_s20, %s5160_s19 }
   0xc   : > { %p38_p2 = scmp.eq.s32.totalorder %s5168_s21, 0  ;;  %p43_p3 = scmp.ne.s32.totalorder %s5160_s19, %s5156_s18 }
   0xd   : > { %s5248_s26 = scalar_select %p28_p0, %s5164_s20, %s30_s25  }
   0xe   : > { %p5250_p4 = por %p38_p2, %p37_p1  ;;  %p6945_p5 = scmp.eq.s32.totalorder %s5235_s22, 0 }
   0xf   : > { %p4240_p6 = scmp.ge.s32.totalorder %s5168_s21, 1  ;;  %p164_p7 = scmp.lt.s32.totalorder %s5168_s21, 4 }
  0x10   : > { %p5259_p8 = por %p6945_p5, %p43_p3  ;;  %s5170_s30 = smov [#allocation8]  }
  0x11   : > { %p5264_p10 = pnand %p4240_p6, %p164_p7  ;;  %s177_s6 = sshll.u32 %s5170_s30, 4  ;;  %s178_s6 = int_to_ptr.vmem [resolvable:$true] %s177_s6 }
  0x12   : > { %s6992_s28 = scalar_select %p5259_p8, 1, 0 }
  0x13   : > { %p4621_p11 = pneg %p5264_p10  ;;  %p4641_p12 = scmp.lt.s32.totalorder %s5168_s21, 3 }
  0x14   : > { %s5171_s8 = smov [#allocation9]   ;;  %s4971_s11 = scalar_lea.vmem %s178_s6, 32 }
  0x15   : > { %p5273_p13 = pnand %p4621_p11, %p6945_p5  ;;  %s188_s9 = sshll.u32 %s5171_s8, 4  ;;  %s189_s9 = int_to_ptr.vmem [resolvable:$true] %s188_s9 }
  0x16   : > { %p5279_p0 = pnand %p4641_p12, %p5250_p4  ;;  %p4972_p2 = scmp.ne.s32.totalorder %s178_s6, %s4971_s11 }
  0x17   : > { %p4962_p1 = pneg %p5273_p13  ;;  %p4979_p7 = scmp.lt.s32.totalorder %s178_s6, %s178_s6 }
  0x18   : > { %p4980_p11 = scmp.lt.s32.totalorder %s4971_s11, %s4971_s11 }
  0x19   : > { %p4974_p3 = pnand %p4972_p2, %p4962_p1 }
  0x1a   : > { %p4981_p9 = por %p4980_p11, %p4979_p7 }
  0x1b   : > { %p4975_p6 = pneg %p4974_p3 }
  0x1d   : > { %p4982_p5 = pnand %p4981_p9, %p4975_p6 }
  0x1f   : > { %4985 = shalt.err (!%p4982_p5)
}
  0x20   : > { %4624 = dma.hbm_to_vmem [thread:$0]  (!%p5273_p13), %s6941_s2, 32, %s178_s6, [#allocation7]  }
  0x21   : > { %s5172_s14 = smov [#allocation11]   ;;  %s4997_s16 = scalar_lea.vmem %s189_s9, 32 }
  0x22   : > { %s198_s15 = sshll.u32 %s5172_s14, 4  ;;  %p4998_p4 = scmp.ne.s32.totalorder %s189_s9, %s4997_s16  ;;  %s199_s15 = int_to_ptr.vmem [resolvable:$true] %s198_s15 }
  0x23   : > { %p5005_p3 = scmp.lt.s32.totalorder %s189_s9, %s189_s9  ;;  %p5006_p8 = scmp.lt.s32.totalorder %s4997_s16, %s4997_s16 }
  0x24   : > { %p5000_p12 = pnand %p4998_p4, %p4962_p1 }
  0x25   : > { %p5007_p7 = por %p5006_p8, %p5005_p3 }
  0x26   : > { %p5001_p2 = pneg %p5000_p12 }
  0x28   : > { %p5008_p9 = pnand %p5007_p7, %p5001_p2 }
  0x2a   : > { %5011 = shalt.err (!%p5008_p9)
}
  0x2b   : > { %4627 = dma.hbm_to_vmem [thread:$0]  (!%p5273_p13), %s6942_s3, 32, %s189_s9, [#allocation10]  }
  0x2c   : > { %s5302_s24 = sand.u32 1, %s5164_s20   ;;  %s5023_s25 = scalar_lea.vmem %s199_s15, 16384 }
  0x2d   : > { %p5024_p5 = scmp.ne.s32.totalorder %s199_s15, %s5023_s25  ;;  %p5031_p8 = scmp.lt.s32.totalorder %s199_s15, %s199_s15 }
  0x2e   : > { %p5032_p4 = scmp.lt.s32.totalorder %s5023_s25, %s5023_s25 }
  0x2f   : > { %p5026_p6 = pnand %p5024_p5, %p4962_p1 }
  0x30   : > { %p5033_p12 = por %p5032_p4, %p5031_p8 }
  0x31   : > { %p5027_p11 = pneg %p5026_p6 }
  0x33   : > { %p5034_p2 = pnand %p5033_p12, %p5027_p11 }
  0x35   : > { %5037 = shalt.err (!%p5034_p2)
}
  0x36   : > { %s5173_s27 = smov 512   ;;  %s5174_s30 = smov 32  }
  0x37   : > { %4630 = dma.hbm_to_vmem [thread:$0]  (!%p5273_p13), %s6943_s4, 16384, %s199_s15, [#allocation10], %s5173_s27, %s5173_s27, %s5174_s30  }
  0x38   : > { %s4597_s9 = smul.u32 600, %s5302_s24  ;;  %s6996_s0 = sld [smem:[#allocation51_spill]] }
  0x39   : > { %s4561_s11 = smul.u32 384, %s5168_s21  ;;  %s213_s18 = scalar_lea.sflag [#allocation4], %s5302_s24 }
  0x3a   : > { %s216_s16 = scalar_lea.vmem [#allocation3], %s4597_s9  ;;  %p5040_p3 = pneg %p5279_p0 }
  0x3b   : > { %s223_s17 = sshll.u32 %s216_s16, 4  ;;  %s5319_s17 = int_to_ptr.vmem [resolvable:$true] %s223_s17 }
  0x3e   : > { %s5317_s14 = scalar_lea.hbm %s6996_s0, %s4561_s11  ;;  %s5043_s27 = scalar_lea.hbm %s6996_s0, 28800 }
  0x3f   : > { %s5038_s7 = scalar_lea.hbm %s5317_s14, 9600  ;;  %p5044_p9 = scmp.lt.s32.totalorder %s5317_s14, %s6996_s0 }
  0x40   : > { %p5039_p1 = scmp.ne.s32.totalorder %s5317_s14, %s5038_s7  ;;  %p5045_p5 = scmp.lt.s32.totalorder %s5043_s27, %s5038_s7 }
  0x42   : > { %p5041_p13 = pnand %p5040_p3, %p5039_p1  ;;  %p5046_p6 = por %p5045_p5, %p5044_p9 }
  0x44   : > { %p5042_p7 = pneg %p5041_p13 }
  0x46   : > { %p5047_p11 = pnand %p5046_p6, %p5042_p7 }
  0x48   : > { %5050 = shalt.err (!%p5047_p11)
}
  0x49   : > { %s5051_s8 = scalar_lea.vmem %s5319_s17, 9600  ;;  %s5175_s9 = smov [#allocation3]  }
  0x4a   : > { %p5052_p8 = scmp.ne.s32.totalorder %s5319_s17, %s5051_s8  ;;  %s5056_s11 = sshll.u32 %s5175_s9, 4  ;;  %s5057_s11 = int_to_ptr.vmem [resolvable:$false] %s5056_s11 }
  0x4b   : > { %s5058_s12 = scalar_lea.vmem %s5057_s11, 19200  ;;  %p5059_p2 = scmp.lt.s32.totalorder %s5319_s17, %s5057_s11 }
  0x4c   : > { %p5054_p4 = pnand %p5052_p8, %p5040_p3  ;;  %p5060_p1 = scmp.lt.s32.totalorder %s5058_s12, %s5051_s8 }
  0x4e   : > { %p5055_p12 = pneg %p5054_p4  ;;  %p5061_p13 = por %p5060_p1, %p5059_p2 }
  0x50   : > { %p5062_p9 = pnand %p5061_p13, %p5055_p12 }
  0x52   : > { %5065 = shalt.err (!%p5062_p9)
}
  0x53   : > { %s5176_s13 = smov 1152   ;;  %s5177_s16 = smov 384  }
  0x54   : > { %s5178_s7 = smov 24   ;;  %s233_s15 = sand.u32 1, %s5168_s21  }
  0x55   : > { %4634 = dma.hbm_to_vmem [thread:$0]  (!%p5279_p0), %s5317_s14, 9600, %s5319_s17, %s213_s18, %s5176_s13, %s5177_s16, %s5178_s7  }
  0x56   : > { %s4598_s25 = smul.u32 768, %s5302_s24  ;;  %s5358_s12 = scalar_lea.sflag [#allocation7], %s233_s15 }
  0x57   : > { %s4564_s27 = smul.u32 12288, %s5168_s21  ;;  %s5071_s14 = scalar_lea.hbm %s6940_s1, 36864 }
  0x58   : > { %s237_s9 = scalar_lea.vmem [#allocation6], %s4598_s25 }
  0x59   : > { %s5354_s8 = scalar_lea.hbm %s6940_s1, %s4564_s27  ;;  %s245_s11 = sshll.u32 %s237_s9, 4  ;;  %s5356_s11 = int_to_ptr.vmem [resolvable:$true] %s245_s11 }
  0x5a   : > { %s5066_s0 = scalar_lea.hbm %s5354_s8, 12288  ;;  %p5072_p11 = scmp.lt.s32.totalorder %s5354_s8, %s6940_s1 }
  0x5b   : > { %p5067_p7 = scmp.ne.s32.totalorder %s5354_s8, %s5066_s0  ;;  %p5073_p8 = scmp.lt.s32.totalorder %s5071_s14, %s5066_s0 }
  0x5d   : > { %p5069_p5 = pnand %p5067_p7, %p5040_p3  ;;  %p5074_p4 = por %p5073_p8, %p5072_p11 }
  0x5f   : > { %p5070_p6 = pneg %p5069_p5 }
  0x61   : > { %p5075_p12 = pnand %p5074_p4, %p5070_p6 }
  0x63   : > { %5078 = shalt.err (!%p5075_p12)
}
  0x64   : > { %s5079_s13 = scalar_lea.vmem %s5356_s11, 12288  ;;  %s5179_s16 = smov [#allocation6]  }
  0x65   : > { %p5080_p2 = scmp.ne.s32.totalorder %s5356_s11, %s5079_s13  ;;  %s5084_s7 = sshll.u32 %s5179_s16, 4  ;;  %s5085_s7 = int_to_ptr.vmem [resolvable:$false] %s5084_s7 }
  0x66   : > { %s5086_s15 = scalar_lea.vmem %s5085_s7, 24576  ;;  %p5087_p9 = scmp.lt.s32.totalorder %s5356_s11, %s5085_s7 }
  0x67   : > { %p5082_p1 = pnand %p5080_p2, %p5040_p3  ;;  %p5088_p7 = scmp.lt.s32.totalorder %s5086_s15, %s5079_s13 }
  0x69   : > { %p5083_p13 = pneg %p5082_p1  ;;  %p5089_p5 = por %p5088_p7, %p5087_p9 }
  0x6b   : > { %p5090_p11 = pnand %p5089_p5, %p5083_p13 }
  0x6d   : > { %5093 = shalt.err (!%p5090_p11)
}
  0x6e   : > { %s5180_s0 = smov 128   ;;  %s5181_s25 = smov 8  }
  0x6f   : > { %4637 = dma.hbm_to_vmem [thread:$0]  (!%p5279_p0), %s5354_s8, 12288, %s5356_s11, %s5358_s12, %s5180_s0, %s5180_s0, %s5181_s25  }
  0x70   : > { %257 = sbr.rel (%p5264_p10) target bundleno = 1192 (0x4a8), region = 40 }
  0x75   : > { %s259_s27 = sand.u32 1, %s5160_s19   ;;  %p6997_p3 = scmp.ne.s32.totalorder %s6992_s28, 0 }
  0x76   : > { %s4599_s30 = smul.u32 600, %s259_s27  ;;  %s260_s6 = scalar_lea.sflag [#allocation4], %s259_s27 }
  0x78   : > { %s5386_s9 = scalar_lea.vmem [#allocation3], %s4599_s30 }
  0x79   : > { %5135 = dma.done.wait (%p6997_p3), %s260_s6, 9600  }
  0x7a   : > { %5137 = vsyncadd (%p6997_p3), %s260_s6, 4294957696  ;;  %s268_s21 = sand.u32 1, %s5235_s22   ;;  %s4600_s10 = smul.u32 768, %s259_s27 }
  0x7b   : > { %s269_s8 = scalar_lea.sflag [#allocation7], %s268_s21 }
  0x7c   : > { %s5393_s11 = scalar_lea.vmem [#allocation6], %s4600_s10 }
  0x7d   : > { %5139 = dma.done.wait (%p6997_p3), %s269_s8, 12288  }
  0x7e   : > { %5141 = vsyncadd (%p6997_p3), %s269_s8, 4294955008  ;;  %p6998_p10 = scmp.eq.s32.totalorder %s5235_s22, 0 }
  0x80   : > { %5143 = dma.done.wait (%p6998_p10), [#allocation7], 32   ;;  %p6999_p0 = pmov %p6998_p10 }
  0x82   : > { %5145 = vsyncadd (%p6999_p0), [#allocation7], 4294967264  ;;  %p7000_p6 = pmov %p6999_p0 }
  0x83   : > { %p7001_p8 = pmov %p6999_p0 }
  0x84   : > { %5147 = dma.done.wait (%p7000_p6), [#allocation10], 16416  }
  0x85   : > { %5149 = vsyncadd (%p7001_p8), [#allocation10], 4294950880  ;;  %v4693_v0 = vld [vmem:[%s5393_s11 + $0x74] ss:$8 sps:$4 sm:$0xff]   ;;  %v4697_v2 = vld [vmem:[%s5393_s11 + $0x70] ss:$8 sps:$4 sm:$0xff]  }
  0x86   : > { %v4695_v1 = vld [vmem:[%s5393_s11 + $0x174] ss:$8 sps:$4 sm:$0xff]   ;;  %1345 = vmatprep.subr.bf16.mxu0 %v4693_v0  ;;  %v4698_v3 = vld [vmem:[%s5393_s11 + $0x170] ss:$8 sps:$4 sm:$0xff]   ;;  %v4699_v4 = vld [vmem:[%s5393_s11 + $0x64] ss:$8 sps:$4 sm:$0xff]  }
  0x87   : > { %1506 = vmatprep.subr.bf16.mxu1 %v4695_v1  ;;  %1346 = vmatpush1.bf16.msra.mxu0 %v4697_v2  ;;  %v4701_v5 = vld [vmem:[%s5393_s11 + $0x164] ss:$8 sps:$4 sm:$0xff]   ;;  %v4703_v6 = vld [vmem:[%s5393_s11 + $0x60] ss:$8 sps:$4 sm:$0xff]   ;;  %v4705_v8 = vld [vmem:[%s5393_s11 + $0x54] ss:$8 sps:$4 sm:$0xff]  }
  0x88   : > { %1507 = vmatpush1.bf16.msra.mxu1 %v4698_v3  ;;  %1347 = vmatprep.subr.bf16.mxu0 %v4699_v4  ;;  %v4704_v7 = vld [vmem:[%s5393_s11 + $0x160] ss:$8 sps:$4 sm:$0xff]   ;;  %v4707_v9 = vld [vmem:[%s5393_s11 + $0x154] ss:$8 sps:$4 sm:$0xff]   ;;  %v4709_v10 = vld [vmem:[%s5393_s11 + $0x50] ss:$8 sps:$4 sm:$0xff]  }
  0x89   : > { %1508 = vmatprep.subr.bf16.mxu1 %v4701_v5  ;;  %v4710_v11 = vld [vmem:[%s5393_s11 + $0x150] ss:$8 sps:$4 sm:$0xff]   ;;  %v4711_v12 = vld [vmem:[%s5393_s11 + $0x44] ss:$8 sps:$4 sm:$0xff]   ;;  %v4715_v14 = vld [vmem:[%s5393_s11 + $0x40] ss:$8 sps:$4 sm:$0xff]  }
  0x8a   : > { %v4713_v13 = vld [vmem:[%s5393_s11 + $0x144] ss:$8 sps:$4 sm:$0xff]   ;;  %v4716_v15 = vld [vmem:[%s5393_s11 + $0x140] ss:$8 sps:$4 sm:$0xff]   ;;  %v4717_v16 = vld [vmem:[%s5393_s11 + $0x34] ss:$8 sps:$4 sm:$0xff]  }
  0x8b   : > { %1348 = vmatpush1.bf16.msra.mxu0 %v4703_v6  ;;  %v4719_v17 = vld [vmem:[%s5393_s11 + $0x134] ss:$8 sps:$4 sm:$0xff]   ;;  %v4721_v18 = vld [vmem:[%s5393_s11 + $0x30] ss:$8 sps:$4 sm:$0xff]   ;;  %v4723_v20 = vld [vmem:[%s5393_s11 + $0x24] ss:$8 sps:$4 sm:$0xff]  }
  0x8c   : > { %1509 = vmatpush1.bf16.msra.mxu1 %v4704_v7  ;;  %1349 = vmatprep.subr.bf16.mxu0 %v4705_v8  ;;  %v4722_v19 = vld [vmem:[%s5393_s11 + $0x130] ss:$8 sps:$4 sm:$0xff]   ;;  %v4725_v21 = vld [vmem:[%s5393_s11 + $0x124] ss:$8 sps:$4 sm:$0xff]   ;;  %v4727_v22 = vld [vmem:[%s5393_s11 + $0x20] ss:$8 sps:$4 sm:$0xff]  }
  0x8d   : > { %1510 = vmatprep.subr.bf16.mxu1 %v4707_v9  ;;  %v4728_v23 = vld [vmem:[%s5393_s11 + $0x120] ss:$8 sps:$4 sm:$0xff]   ;;  %v4729_v24 = vld [vmem:[%s5393_s11 + $0x14] ss:$8 sps:$4 sm:$0xff]   ;;  %v4733_v26 = vld [vmem:[%s5393_s11 + $0x10] ss:$8 sps:$4 sm:$0xff]  }
  0x8e   : > { %v4731_v25 = vld [vmem:[%s5393_s11 + $0x114] ss:$8 sps:$4 sm:$0xff]   ;;  %v4734_v27 = vld [vmem:[%s5393_s11 + $0x110] ss:$8 sps:$4 sm:$0xff]   ;;  %v4735_v28 = vld [vmem:[%s5393_s11 + $0x4] ss:$8 sps:$4 sm:$0xff]  }
  0x8f   : > { %1350 = vmatpush1.bf16.msra.mxu0 %v4709_v10  ;;  %v4737_v29 = vld [vmem:[%s5393_s11 + $0x104] ss:$8 sps:$4 sm:$0xff]   ;;  %v4739_v30 = vld [vmem:[%s5393_s11] ss:$8 sps:$4 sm:$0xff]   ;;  %v4741_v32 = vld [vmem:[%s5393_s11 + $0xf4] ss:$8 sps:$4 sm:$0xff]  }
  0x90   : > { %1511 = vmatpush1.bf16.msra.mxu1 %v4710_v11  ;;  %1351 = vmatprep.subr.bf16.mxu0 %v4711_v12  ;;  %v4740_v31 = vld [vmem:[%s5393_s11 + $0x100] ss:$8 sps:$4 sm:$0xff]   ;;  %v4743_v33 = vld [vmem:[%s5393_s11 + $0x1f4] ss:$8 sps:$4 sm:$0xff]   ;;  %v4745_v34 = vld [vmem:[%s5393_s11 + $0xf0] ss:$8 sps:$4 sm:$0xff]  }
  0x91   : > { %1512 = vmatprep.subr.bf16.mxu1 %v4713_v13  ;;  %v4746_v35 = vld [vmem:[%s5393_s11 + $0x1f0] ss:$8 sps:$4 sm:$0xff]   ;;  %v4747_v36 = vld [vmem:[%s5393_s11 + $0xe4] ss:$8 sps:$4 sm:$0xff]   ;;  %v4751_v38 = vld [vmem:[%s5393_s11 + $0xe0] ss:$8 sps:$4 sm:$0xff]  }
  0x92   : > { %v4749_v37 = vld [vmem:[%s5393_s11 + $0x1e4] ss:$8 sps:$4 sm:$0xff]   ;;  %v4752_v39 = vld [vmem:[%s5393_s11 + $0x1e0] ss:$8 sps:$4 sm:$0xff]   ;;  %v4753_v40 = vld [vmem:[%s5393_s11 + $0xd4] ss:$8 sps:$4 sm:$0xff]  }
  0x93   : > { %1352 = vmatpush1.bf16.msra.mxu0 %v4715_v14  ;;  %v4755_v41 = vld [vmem:[%s5393_s11 + $0x1d4] ss:$8 sps:$4 sm:$0xff]   ;;  %v4757_v42 = vld [vmem:[%s5393_s11 + $0xd0] ss:$8 sps:$4 sm:$0xff]   ;;  %v4759_v44 = vld [vmem:[%s5393_s11 + $0xc4] ss:$8 sps:$4 sm:$0xff]  }
  0x94   : > { %1513 = vmatpush1.bf16.msra.mxu1 %v4716_v15  ;;  %1353 = vmatprep.subr.bf16.mxu0 %v4717_v16  ;;  %v4758_v43 = vld [vmem:[%s5393_s11 + $0x1d0] ss:$8 sps:$4 sm:$0xff]   ;;  %v4761_v45 = vld [vmem:[%s5393_s11 + $0x1c4] ss:$8 sps:$4 sm:$0xff]   ;;  %v4763_v46 = vld [vmem:[%s5393_s11 + $0xc0] ss:$8 sps:$4 sm:$0xff]  }
  0x95   : > { %1514 = vmatprep.subr.bf16.mxu1 %v4719_v17  ;;  %v4764_v47 = vld [vmem:[%s5393_s11 + $0x1c0] ss:$8 sps:$4 sm:$0xff]   ;;  %v4765_v48 = vld [vmem:[%s5393_s11 + $0xb4] ss:$8 sps:$4 sm:$0xff]   ;;  %v4769_v52 = vld [vmem:[%s5393_s11 + $0xb0] ss:$8 sps:$4 sm:$0xff]  }
  0x96   : > { %v4791_v49 = vld [vmem:[%s5386_s9 + $0x4] ss:$24 sps:$4 sm:$0xff]   ;;  %v4770_v53 = vld [vmem:[%s5393_s11 + $0x1b0] ss:$8 sps:$4 sm:$0xff]   ;;  %v4775_v56 = vld [vmem:[%s5393_s11 + $0xa0] ss:$8 sps:$4 sm:$0xff]  }
  0x97   : > { %1354 = vmatpush1.bf16.msra.mxu0 %v4721_v18  ;;  %v4767_v50 = vld [vmem:[%s5393_s11 + $0x1b4] ss:$8 sps:$4 sm:$0xff]   ;;  %1377 = vmatprep.mubr.bf16.mxu0 %v4791_v49  ;;  %v4771_v54 = vld [vmem:[%s5393_s11 + $0xa4] ss:$8 sps:$4 sm:$0xff]   ;;  %v4776_v57 = vld [vmem:[%s5393_s11 + $0x1a0] ss:$8 sps:$4 sm:$0xff]  }
  0x98   : > { %1515 = vmatpush1.bf16.msra.mxu1 %v4722_v19  ;;  %1355 = vmatprep.subr.bf16.mxu0 %v4723_v20  ;;  %v4794_v51 = vld [vmem:[%s5386_s9 + $0xc] ss:$24 sps:$4 sm:$0xff]   ;;  %v4781_v60 = vld [vmem:[%s5393_s11 + $0x90] ss:$8 sps:$4 sm:$0xff]   ;;  %v4787_v0 = vld [vmem:[%s5393_s11 + $0x80] ss:$8 sps:$4 sm:$0xff]  }
  0x99   : > { %1516 = vmatprep.subr.bf16.mxu1 %v4725_v21  ;;  %1538 = vmatprep.mubr.bf16.mxu1 %v4794_v51  ;;  %v4773_v55 = vld [vmem:[%s5393_s11 + $0x1a4] ss:$8 sps:$4 sm:$0xff]   ;;  %v4777_v58 = vld [vmem:[%s5393_s11 + $0x94] ss:$8 sps:$4 sm:$0xff]   ;;  %v4782_v61 = vld [vmem:[%s5393_s11 + $0x190] ss:$8 sps:$4 sm:$0xff]  }
  0x9a   : > { %v4779_v59 = vld [vmem:[%s5393_s11 + $0x194] ss:$8 sps:$4 sm:$0xff]   ;;  %v4783_v62 = vld [vmem:[%s5393_s11 + $0x84] ss:$8 sps:$4 sm:$0xff]   ;;  %v4788_v1 = vld [vmem:[%s5393_s11 + $0x180] ss:$8 sps:$4 sm:$0xff]  }
  0x9b   : > { %1356 = vmatpush1.bf16.msra.mxu0 %v4727_v22  ;;  %v4785_v63 = vld [vmem:[%s5393_s11 + $0x184] ss:$8 sps:$4 sm:$0xff]   ;;  %v4797_v2 = vld [vmem:[%s5393_s11 + $0x274] ss:$8 sps:$4 sm:$0xff]   ;;  %v4789_v3 = vld [vmem:[%s5386_s9] ss:$24 sps:$4 sm:$0xff]  }
  0x9c   : > { %1517 = vmatpush1.bf16.msra.mxu1 %v4728_v23  ;;  %1357 = vmatprep.subr.bf16.mxu0 %v4729_v24  ;;  %v4792_v4 = vld [vmem:[%s5386_s9 + $0x8] ss:$24 sps:$4 sm:$0xff]   ;;  %v4798_v6 = vld [vmem:[%s5386_s9 + $0x34] ss:$24 sps:$4 sm:$0xff]   ;;  %v4806_v12 = vld [vmem:[%s5386_s9 + $0x38] ss:$24 sps:$4 sm:$0xff]  }
  0x9d   : > { %1518 = vmatprep.subr.bf16.mxu1 %v4731_v25  ;;  %v4795_v5 = vld [vmem:[%s5393_s11 + $0x270] ss:$8 sps:$4 sm:$0xff]   ;;  %v4800_v7 = vld [vmem:[%s5386_s9 + $0x3c] ss:$24 sps:$4 sm:$0xff]   ;;  %v4802_v9 = vld [vmem:[%s5393_s11 + $0x260] ss:$8 sps:$4 sm:$0xff]  }
  0x9e   : > { %v4804_v8 = vld [vmem:[%s5393_s11 + $0x264] ss:$8 sps:$4 sm:$0xff]   ;;  %v4809_v10 = vld [vmem:[%s5393_s11 + $0x254] ss:$8 sps:$4 sm:$0xff]   ;;  %v4805_v11 = vld [vmem:[%s5386_s9 + $0x30] ss:$24 sps:$4 sm:$0xff]  }
  0x9f   : > { %1358 = vmatpush1.bf16.msra.mxu0 %v4733_v26  ;;  %v4807_v13 = vld [vmem:[%s5393_s11 + $0x250] ss:$8 sps:$4 sm:$0xff]   ;;  %v4810_v14 = vld [vmem:[%s5386_s9 + $0x64] ss:$24 sps:$4 sm:$0xff]   ;;  %v4816_v17 = vld [vmem:[%s5393_s11 + $0x240] ss:$8 sps:$4 sm:$0xff]  }
  0xa0   : > { %1519 = vmatpush1.bf16.msra.mxu1 %v4734_v27  ;;  %1359 = vmatprep.subr.bf16.mxu0 %v4735_v28  ;;  %v4812_v15 = vld [vmem:[%s5386_s9 + $0x6c] ss:$24 sps:$4 sm:$0xff]   ;;  %v4814_v19 = vld [vmem:[%s5386_s9 + $0x60] ss:$24 sps:$4 sm:$0xff]   ;;  %v4821_v22 = vld [vmem:[%s5386_s9 + $0x9c] ss:$24 sps:$4 sm:$0xff]  }
  0xa1   : > { %1520 = vmatprep.subr.bf16.mxu1 %v4737_v29  ;;  %v4818_v16 = vld [vmem:[%s5393_s11 + $0x244] ss:$8 sps:$4 sm:$0xff]   ;;  %v4827_v18 = vld [vmem:[%s5393_s11 + $0x234] ss:$8 sps:$4 sm:$0xff]   ;;  %v4815_v20 = vld [vmem:[%s5386_s9 + $0x68] ss:$24 sps:$4 sm:$0xff]  }
  0xa2   : > { %v4819_v21 = vld [vmem:[%s5386_s9 + $0x94] ss:$24 sps:$4 sm:$0xff]   ;;  %v4825_v23 = vld [vmem:[%s5393_s11 + $0x230] ss:$8 sps:$4 sm:$0xff]   ;;  %v4834_v25 = vld [vmem:[%s5393_s11 + $0x220] ss:$8 sps:$4 sm:$0xff]  }
  0xa3   : > { %1360 = vmatpush1.bf16.msra.mxu0 %v4739_v30  ;;  %v4836_v24 = vld [vmem:[%s5393_s11 + $0x224] ss:$8 sps:$4 sm:$0xff]   ;;  %v4823_v26 = vld [vmem:[%s5386_s9 + $0x90] ss:$24 sps:$4 sm:$0xff]   ;;  %v4843_v27 = vld [vmem:[%s5393_s11 + $0x214] ss:$8 sps:$4 sm:$0xff]  }
  0xa4   : > { %1521 = vmatpush1.bf16.msra.mxu1 %v4740_v31  ;;  %1361 = vmatprep.subr.bf16.mxu0 %v4741_v32  ;;  %v4824_v28 = vld [vmem:[%s5386_s9 + $0x98] ss:$24 sps:$4 sm:$0xff]   ;;  %v4828_v29 = vld [vmem:[%s5386_s9 + $0xc4] ss:$24 sps:$4 sm:$0xff]   ;;  %p7005_p4 = scmp.ne.s32.totalorder %s5235_s22, 0 }
  0xa5   : > { %1522 = vmatprep.subr.bf16.mxu1 %v4743_v33  ;;  %v4830_v30 = vld [vmem:[%s5386_s9 + $0xcc] ss:$24 sps:$4 sm:$0xff]   ;;  %v4841_v31 = vld [vmem:[%s5393_s11 + $0x210] ss:$8 sps:$4 sm:$0xff]   ;;  %v4846_v33 = vld [vmem:[%s5393_s11 + $0x200] ss:$8 sps:$4 sm:$0xff]  }
  0xa6   : > { %v4848_v32 = vld [vmem:[%s5393_s11 + $0x204] ss:$8 sps:$4 sm:$0xff]   ;;  %v4882_v49 = vld [vmem:[%s5393_s11 + $0x2c0] ss:$8 sps:$4 sm:$0xff]  }
  0xa7   : > { %1362 = vmatpush2.bf16.msra.mxu0 %v4745_v34  ;;  %v4832_v34 = vld [vmem:[%s5386_s9 + $0xc0] ss:$24 sps:$4 sm:$0xff]  }
  0xa8   : > { %1523 = vmatpush2.bf16.msra.mxu1 %v4746_v35  ;;  %1363 = vmatprep.subr.bf16.mxu0 %v4747_v36  ;;  %v4857_v35 = vld [vmem:[%s5393_s11 + $0x2f4] ss:$8 sps:$4 sm:$0xff]   ;;  %v4833_v36 = vld [vmem:[%s5386_s9 + $0xc8] ss:$24 sps:$4 sm:$0xff]  }
  0xa9   : > { %1524 = vmatprep.subr.bf16.mxu1 %v4749_v37  ;;  %v4837_v37 = vld [vmem:[%s5386_s9 + $0xf4] ss:$24 sps:$4 sm:$0xff]   ;;  %v4853_v51 = vld [vmem:[%s5386_s9 + $0x120] ss:$24 sps:$4 sm:$0xff]  }
  0xab   : > { %1364 = vmatpush2.bf16.msra.mxu0 %v4751_v38  ;;  %v4839_v38 = vld [vmem:[%s5386_s9 + $0xfc] ss:$24 sps:$4 sm:$0xff]  }
  0xac   : > { %1525 = vmatpush2.bf16.msra.mxu1 %v4752_v39  ;;  %1365 = vmatprep.subr.bf16.mxu0 %v4753_v40  ;;  %v4855_v39 = vld [vmem:[%s5393_s11 + $0x2f0] ss:$8 sps:$4 sm:$0xff]   ;;  %v4866_v40 = vld [vmem:[%s5393_s11 + $0x2e4] ss:$8 sps:$4 sm:$0xff]  }
  0xad   : > { %1526 = vmatprep.subr.bf16.mxu1 %v4755_v41  ;;  %v4844_v41 = vld [vmem:[%s5386_s9 + $0xf0] ss:$24 sps:$4 sm:$0xff]  }
  0xaf   : > { %1366 = vmatpush2.bf16.msra.mxu0 %v4757_v42  ;;  %v4864_v42 = vld [vmem:[%s5393_s11 + $0x2e0] ss:$8 sps:$4 sm:$0xff]  }
  0xb0   : > { %1527 = vmatpush2.bf16.msra.mxu1 %v4758_v43  ;;  %1367 = vmatprep.subr.bf16.mxu0 %v4759_v44  ;;  %v4875_v43 = vld [vmem:[%s5393_s11 + $0x2d4] ss:$8 sps:$4 sm:$0xff]   ;;  %v4845_v44 = vld [vmem:[%s5386_s9 + $0xf8] ss:$24 sps:$4 sm:$0xff]  }
  0xb1   : > { %1528 = vmatprep.subr.bf16.mxu1 %v4761_v45  ;;  %v4849_v45 = vld [vmem:[%s5386_s9 + $0x124] ss:$24 sps:$4 sm:$0xff]  }
  0xb3   : > { %1368 = vmatpush2.bf16.msra.mxu0 %v4763_v46  ;;  %v4851_v46 = vld [vmem:[%s5386_s9 + $0x12c] ss:$24 sps:$4 sm:$0xff]  }
  0xb4   : > { %1529 = vmatpush2.bf16.msra.mxu1 %v4764_v47  ;;  %1369 = vmatprep.subr.bf16.mxu0 %v4765_v48  ;;  %v4873_v47 = vld [vmem:[%s5393_s11 + $0x2d0] ss:$8 sps:$4 sm:$0xff]   ;;  %v4884_v48 = vld [vmem:[%s5393_s11 + $0x2c4] ss:$8 sps:$4 sm:$0xff]  }
  0xb5   : > { %1530 = vmatprep.subr.bf16.mxu1 %v4767_v50  ;;  %v4887_v50 = vld [vmem:[%s5393_s11 + $0x2b4] ss:$8 sps:$4 sm:$0xff]  }
  0xb7   : > { %1370 = vmatpush2.bf16.msra.mxu0 %v4769_v52  ;;  %v4854_v52 = vld [vmem:[%s5386_s9 + $0x128] ss:$24 sps:$4 sm:$0xff]  }
  0xb8   : > { %1531 = vmatpush2.bf16.msra.mxu1 %v4770_v53  ;;  %1371 = vmatprep.subr.bf16.mxu0 %v4771_v54  ;;  %v4858_v53 = vld [vmem:[%s5386_s9 + $0x154] ss:$24 sps:$4 sm:$0xff]  }
  0xb9   : > { %1532 = vmatprep.subr.bf16.mxu1 %v4773_v55  ;;  %v4860_v54 = vld [vmem:[%s5386_s9 + $0x15c] ss:$24 sps:$4 sm:$0xff]   ;;  %v4885_v55 = vld [vmem:[%s5393_s11 + $0x2b0] ss:$8 sps:$4 sm:$0xff]  }
  0xbb   : > { %1372 = vmatpush2.bf16.msra.mxu0 %v4775_v56  ;;  %v4896_v56 = vld [vmem:[%s5393_s11 + $0x2a4] ss:$8 sps:$4 sm:$0xff]  }
  0xbc   : > { %1533 = vmatpush2.bf16.msra.mxu1 %v4776_v57  ;;  %1373 = vmatprep.subr.bf16.mxu0 %v4777_v58  ;;  %v4894_v57 = vld [vmem:[%s5393_s11 + $0x2a0] ss:$8 sps:$4 sm:$0xff]   ;;  %v4905_v58 = vld [vmem:[%s5393_s11 + $0x294] ss:$8 sps:$4 sm:$0xff]  }
  0xbd   : > { %1534 = vmatprep.subr.bf16.mxu1 %v4779_v59  ;;  %v4862_v59 = vld [vmem:[%s5386_s9 + $0x150] ss:$24 sps:$4 sm:$0xff]  }
  0xbf   : > { %1374 = vmatpush2.bf16.msra.mxu0 %v4781_v60  ;;  %v4863_v60 = vld [vmem:[%s5386_s9 + $0x158] ss:$24 sps:$4 sm:$0xff]  }
  0xc0   : > { %1535 = vmatpush2.bf16.msra.mxu1 %v4782_v61  ;;  %1375 = vmatprep.subr.bf16.mxu0 %v4783_v62  ;;  %v4867_v61 = vld [vmem:[%s5386_s9 + $0x184] ss:$24 sps:$4 sm:$0xff]  }
  0xc1   : > { %1536 = vmatprep.subr.bf16.mxu1 %v4785_v63  ;;  %v4869_v62 = vld [vmem:[%s5386_s9 + $0x18c] ss:$24 sps:$4 sm:$0xff]   ;;  %v4903_v63 = vld [vmem:[%s5393_s11 + $0x290] ss:$8 sps:$4 sm:$0xff]  }
  0xc3   : > { %1376 = vmatpush2.bf16.msra.mxu0 %v4787_v0  ;;  %v4912_v0 = vld [vmem:[%s5393_s11 + $0x284] ss:$8 sps:$4 sm:$0xff]  }
  0xc4   : > { %1537 = vmatpush2.bf16.msra.mxu1 %v4788_v1  ;;  %1667 = vmatprep.subr.bf16.mxu0 %v4797_v2  ;;  %v4910_v1 = vld [vmem:[%s5393_s11 + $0x280] ss:$8 sps:$4 sm:$0xff]  }
  0xc5   : > { %4565 = vmatprep.subr.bf16.mxu1 %v4797_v2  ;;  %v4871_v2 = vld [vmem:[%s5386_s9 + $0x180] ss:$24 sps:$4 sm:$0xff]  }
  0xc6   : > { %1378 = vmatmul.mubr.bf16.vlgmr.msra.gmra.mxu0 %v4789_v3  ;;  %v4872_v3 = vld [vmem:[%s5386_s9 + $0x188] ss:$24 sps:$4 sm:$0xff]  }
  0xc7   : > { %1539 = vmatmul.mubr.bf16.vlgmr.msra.gmra.mxu1 %v4792_v4  ;;  %1668 = vmatpush1.bf16.msra.mxu0 %v4795_v5  ;;  %v4876_v4 = vld [vmem:[%s5386_s9 + $0x1b4] ss:$24 sps:$4 sm:$0xff]  }
  0xc8   : > { %1387 = vmatprep.mubr.bf16.mxu0 %v4798_v6  ;;  %1548 = vmatprep.mubr.bf16.mxu1 %v4800_v7  ;;  %v4880_v6 = vld [vmem:[%s5386_s9 + $0x1b0] ss:$24 sps:$4 sm:$0xff]  }
  0xc9   : > { %1669 = vmatprep.subr.bf16.mxu0 %v4804_v8  ;;  %4581 = vmatpush1.bf16.msra.mxu1 %v4795_v5  ;;  %v4878_v5 = vld [vmem:[%s5386_s9 + $0x1bc] ss:$24 sps:$4 sm:$0xff]   ;;  %v4881_v7 = vld [vmem:[%s5386_s9 + $0x1b8] ss:$24 sps:$4 sm:$0xff]  }
  0xca   : > { %4566 = vmatprep.subr.bf16.mxu1 %v4804_v8  ;;  %v4888_v8 = vld [vmem:[%s5386_s9 + $0x1e4] ss:$24 sps:$4 sm:$0xff]  }
  0xcb   : > { %1670 = vmatpush1.bf16.msra.mxu0 %v4802_v9 }
  0xcc   : > { %1671 = vmatprep.subr.bf16.mxu0 %v4809_v10 }
  0xcd   : > { %4582 = vmatpush1.bf16.msra.mxu1 %v4802_v9  ;;  %v4890_v9 = vld [vmem:[%s5386_s9 + $0x1ec] ss:$24 sps:$4 sm:$0xff]  }
  0xce   : > { %1388 = vmatmul.mubr.bf16.gmra.mxu0 %v4805_v11  ;;  %4567 = vmatprep.subr.bf16.mxu1 %v4809_v10  ;;  %v4892_v10 = vld [vmem:[%s5386_s9 + $0x1e0] ss:$24 sps:$4 sm:$0xff]  }
  0xcf   : > { %1549 = vmatmul.mubr.bf16.gmra.mxu1 %v4806_v12  ;;  %1672 = vmatpush1.bf16.msra.mxu0 %v4807_v13  ;;  %v4893_v11 = vld [vmem:[%s5386_s9 + $0x1e8] ss:$24 sps:$4 sm:$0xff]   ;;  %v4897_v12 = vld [vmem:[%s5386_s9 + $0x214] ss:$24 sps:$4 sm:$0xff]  }
  0xd0   : > { %1397 = vmatprep.mubr.bf16.mxu0 %v4810_v14  ;;  %1558 = vmatprep.mubr.bf16.mxu1 %v4812_v15  ;;  %v385_v14 = vld [vmem:[%s5386_s9 + $0x240] sm:$0x33]  ;;  %v386_v15 = vld [vmem:[%s5386_s9 + $0x248] sm:$0x33] }
  0xd1   : > { %1673 = vmatprep.subr.bf16.mxu0 %v4818_v16  ;;  %4583 = vmatpush1.bf16.msra.mxu1 %v4807_v13  ;;  %v4899_v13 = vld [vmem:[%s5386_s9 + $0x21c] ss:$24 sps:$4 sm:$0xff]  }
  0xd2   : > { %4568 = vmatprep.subr.bf16.mxu1 %v4818_v16  ;;  %v4901_v16 = vld [vmem:[%s5386_s9 + $0x210] ss:$24 sps:$4 sm:$0xff]  }
  0xd3   : > { %1674 = vmatpush1.bf16.msra.mxu0 %v4816_v17 }
  0xd4   : > { %1675 = vmatprep.subr.bf16.mxu0 %v4827_v18 }
  0xd5   : > { %4584 = vmatpush1.bf16.msra.mxu1 %v4816_v17  ;;  %v4902_v17 = vld [vmem:[%s5386_s9 + $0x218] ss:$24 sps:$4 sm:$0xff]  }
  0xd6   : > { %1398 = vmatmul.mubr.bf16.gmra.mxu0 %v4814_v19  ;;  %4569 = vmatprep.subr.bf16.mxu1 %v4827_v18  ;;  %v4325_v18 = vcombine.high %v385_v14, %v385_v14  ;;  %v4327_v19 = vcombine.high %v386_v15, %v386_v15 }
  0xd7   : > { %1559 = vmatmul.mubr.bf16.gmra.mxu1 %v4815_v20  ;;  %1407 = vmatprep.mubr.bf16.mxu0 %v4819_v21  ;;  %v4324_v20 = vcombine.low %v385_v14, %v385_v14  ;;  %v4326_v21 = vcombine.low %v386_v15, %v386_v15 }
  0xd8   : > { %1568 = vmatprep.mubr.bf16.mxu1 %v4821_v22  ;;  %1676 = vmatpush1.bf16.msra.mxu0 %v4825_v23  ;;  %v4915_v22 = vld [vmem:[%s5386_s9 + $0x14] ss:$24 sps:$4 sm:$0xff]  }
  0xd9   : > { %1677 = vmatprep.subr.bf16.mxu0 %v4836_v24  ;;  %4585 = vmatpush1.bf16.msra.mxu1 %v4825_v23  ;;  %v4918_v23 = vld [vmem:[%s5386_s9 + $0x164] ss:$24 sps:$4 sm:$0xff]  }
  0xda   : > { %4570 = vmatprep.subr.bf16.mxu1 %v4836_v24  ;;  %v4913_v24 = vld [vmem:[%s5386_s9 + $0x10] ss:$24 sps:$4 sm:$0xff]  }
  0xdc   : > { %1678 = vmatpush1.bf16.msra.mxu0 %v4834_v25 }
  0xdd   : > { %1679 = vmatprep.subr.bf16.mxu0 %v4843_v27  ;;  %4586 = vmatpush1.bf16.msra.mxu1 %v4834_v25  ;;  %v4916_v25 = vld [vmem:[%s5386_s9 + $0x160] ss:$24 sps:$4 sm:$0xff]  }
  0xde   : > { %1408 = vmatmul.mubr.bf16.gmra.mxu0 %v4823_v26  ;;  %4571 = vmatprep.subr.bf16.mxu1 %v4843_v27  ;;  %v4919_v26 = vld [vmem:[%s5386_s9 + $0x44] ss:$24 sps:$4 sm:$0xff]   ;;  %v4921_v27 = vld [vmem:[%s5386_s9 + $0x194] ss:$24 sps:$4 sm:$0xff]  }
  0xdf   : > { %1569 = vmatmul.mubr.bf16.gmra.mxu1 %v4824_v28  ;;  %1417 = vmatprep.mubr.bf16.mxu0 %v4828_v29  ;;  %v4923_v28 = vld [vmem:[%s5386_s9 + $0x40] ss:$24 sps:$4 sm:$0xff]   ;;  %v4924_v29 = vld [vmem:[%s5386_s9 + $0x190] ss:$24 sps:$4 sm:$0xff]  }
  0xe0   : > { %1578 = vmatprep.mubr.bf16.mxu1 %v4830_v30  ;;  %1680 = vmatpush1.bf16.msra.mxu0 %v4841_v31  ;;  %v4925_v30 = vld [vmem:[%s5386_s9 + $0x74] ss:$24 sps:$4 sm:$0xff]  }
  0xe1   : > { %1681 = vmatprep.subr.bf16.mxu0 %v4848_v32  ;;  %4587 = vmatpush1.bf16.msra.mxu1 %v4841_v31  ;;  %v4927_v31 = vld [vmem:[%s5386_s9 + $0x1c4] ss:$24 sps:$4 sm:$0xff]  }
  0xe2   : > { %4572 = vmatprep.subr.bf16.mxu1 %v4848_v32  ;;  %v4929_v32 = vld [vmem:[%s5386_s9 + $0x70] ss:$24 sps:$4 sm:$0xff]  }
  0xe4   : > { %1682 = vmatpush1.bf16.msra.mxu0 %v4846_v33 }
  0xe5   : > { %1683 = vmatprep.subr.bf16.mxu0 %v4857_v35  ;;  %4588 = vmatpush1.bf16.msra.mxu1 %v4846_v33  ;;  %v4930_v33 = vld [vmem:[%s5386_s9 + $0x1c0] ss:$24 sps:$4 sm:$0xff]  }
  0xe6   : > { %1418 = vmatmul.mubr.bf16.gmra.mxu0 %v4832_v34  ;;  %4573 = vmatprep.subr.bf16.mxu1 %v4857_v35  ;;  %v4931_v34 = vld [vmem:[%s5386_s9 + $0xa4] ss:$24 sps:$4 sm:$0xff]   ;;  %v4933_v35 = vld [vmem:[%s5386_s9 + $0x1f4] ss:$24 sps:$4 sm:$0xff]  }
  0xe7   : > { %1579 = vmatmul.mubr.bf16.gmra.mxu1 %v4833_v36  ;;  %1427 = vmatprep.mubr.bf16.mxu0 %v4837_v37  ;;  %v4935_v36 = vld [vmem:[%s5386_s9 + $0xa0] ss:$24 sps:$4 sm:$0xff]   ;;  %v4936_v37 = vld [vmem:[%s5386_s9 + $0x1f0] ss:$24 sps:$4 sm:$0xff]  }
  0xe8   : > { %1588 = vmatprep.mubr.bf16.mxu1 %v4839_v38  ;;  %1684 = vmatpush2.bf16.msra.mxu0 %v4855_v39  ;;  %v4937_v38 = vld [vmem:[%s5386_s9 + $0xd4] ss:$24 sps:$4 sm:$0xff]  }
  0xe9   : > { %1685 = vmatprep.subr.bf16.mxu0 %v4866_v40  ;;  %4589 = vmatpush2.bf16.msra.mxu1 %v4855_v39  ;;  %v4939_v39 = vld [vmem:[%s5386_s9 + $0x224] ss:$24 sps:$4 sm:$0xff]  }
  0xea   : > { %4574 = vmatprep.subr.bf16.mxu1 %v4866_v40  ;;  %v387_v40 = vld [vmem:[%s5386_s9 + $0x250] sm:$0x33] }
  0xec   : > { %1686 = vmatpush2.bf16.msra.mxu0 %v4864_v42 }
  0xed   : > { %1687 = vmatprep.subr.bf16.mxu0 %v4875_v43  ;;  %4590 = vmatpush2.bf16.msra.mxu1 %v4864_v42  ;;  %v4942_v42 = vld [vmem:[%s5386_s9 + $0x220] ss:$24 sps:$4 sm:$0xff]  }
  0xee   : > { %1428 = vmatmul.mubr.bf16.gmra.mxu0 %v4844_v41  ;;  %4575 = vmatprep.subr.bf16.mxu1 %v4875_v43  ;;  %v4941_v41 = vld [vmem:[%s5386_s9 + $0xd0] ss:$24 sps:$4 sm:$0xff]   ;;  %v4943_v43 = vld [vmem:[%s5386_s9 + $0x104] ss:$24 sps:$4 sm:$0xff]  }
  0xef   : > { %1589 = vmatmul.mubr.bf16.gmra.mxu1 %v4845_v44  ;;  %1437 = vmatprep.mubr.bf16.mxu0 %v4849_v45  ;;  %v4329_v44 = vcombine.high %v387_v40, %v387_v40  ;;  %v4946_v45 = vld [vmem:[%s5386_s9 + $0x100] ss:$24 sps:$4 sm:$0xff]  }
  0xf0   : > { %1598 = vmatprep.mubr.bf16.mxu1 %v4851_v46  ;;  %1688 = vmatpush2.bf16.msra.mxu0 %v4873_v47  ;;  %v4328_v46 = vcombine.low %v387_v40, %v387_v40 }
  0xf1   : > { %1689 = vmatprep.subr.bf16.mxu0 %v4884_v48  ;;  %4591 = vmatpush2.bf16.msra.mxu1 %v4873_v47  ;;  %v4948_v47 = vld [vmem:[%s5386_s9 + $0x134] ss:$24 sps:$4 sm:$0xff]  }
  0xf2   : > { %4576 = vmatprep.subr.bf16.mxu1 %v4884_v48  ;;  %v4950_v48 = vld [vmem:[%s5386_s9 + $0x130] ss:$24 sps:$4 sm:$0xff]  }
  0xf4   : > { %1690 = vmatpush2.bf16.msra.mxu0 %v4882_v49 }
  0xf5   : > { %1691 = vmatprep.subr.bf16.mxu0 %v4887_v50  ;;  %4592 = vmatpush2.bf16.msra.mxu1 %v4882_v49 }
  0xf6   : > { %1438 = vmatmul.mubr.bf16.gmra.mxu0 %v4853_v51  ;;  %4577 = vmatprep.subr.bf16.mxu1 %v4887_v50 }
  0xf7   : > { %1599 = vmatmul.mubr.bf16.gmra.mxu1 %v4854_v52  ;;  %1447 = vmatprep.mubr.bf16.mxu0 %v4858_v53 }
  0xf8   : > { %1608 = vmatprep.mubr.bf16.mxu1 %v4860_v54  ;;  %1692 = vmatpush2.bf16.msra.mxu0 %v4885_v55 }
  0xf9   : > { %1693 = vmatprep.subr.bf16.mxu0 %v4896_v56  ;;  %4593 = vmatpush2.bf16.msra.mxu1 %v4885_v55 }
  0xfa   : > { %4578 = vmatprep.subr.bf16.mxu1 %v4896_v56 }
  0xfc   : > { %1694 = vmatpush2.bf16.msra.mxu0 %v4894_v57 }
  0xfd   : > { %1695 = vmatprep.subr.bf16.mxu0 %v4905_v58  ;;  %4594 = vmatpush2.bf16.msra.mxu1 %v4894_v57 }
  0xfe   : > { %1448 = vmatmul.mubr.bf16.gmra.mxu0 %v4862_v59  ;;  %4579 = vmatprep.subr.bf16.mxu1 %v4905_v58 }
  0xff   : > { %1609 = vmatmul.mubr.bf16.gmra.mxu1 %v4863_v60  ;;  %1457 = vmatprep.mubr.bf16.mxu0 %v4867_v61 }
 0x100   : > { %1618 = vmatprep.mubr.bf16.mxu1 %v4869_v62  ;;  %1696 = vmatpush2.bf16.msra.mxu0 %v4903_v63 }
 0x101   : > { %1697 = vmatprep.subr.bf16.mxu0 %v4912_v0  ;;  %4595 = vmatpush2.bf16.msra.mxu1 %v4903_v63 }
 0x102   : > { %4580 = vmatprep.subr.bf16.mxu1 %v4912_v0 }
 0x104   : > { %1698 = vmatpush2.bf16.msra.mxu0 %v4910_v1 }
 0x105   : > { %4596 = vmatpush2.bf16.msra.mxu1 %v4910_v1 }
 0x106   : > { %1458 = vmatmul.mubr.bf16.gmra.mxu0 %v4871_v2 }
 0x107   : > { %1619 = vmatmul.mubr.bf16.gmra.mxu1 %v4872_v3  ;;  %1467 = vmatprep.mubr.bf16.mxu0 %v4876_v4 }
 0x108   : > { %1628 = vmatprep.mubr.bf16.mxu1 %v4878_v5 }
 0x10e   : > { %1468 = vmatmul.mubr.bf16.gmra.mxu0 %v4880_v6 }
 0x10f   : > { %1629 = vmatmul.mubr.bf16.gmra.mxu1 %v4881_v7  ;;  %1477 = vmatprep.mubr.bf16.mxu0 %v4888_v8 }
 0x110   : > { %1638 = vmatprep.mubr.bf16.mxu1 %v4890_v9 }
 0x116   : > { %1478 = vmatmul.mubr.bf16.gmra.mxu0 %v4892_v10 }
 0x117   : > { %1639 = vmatmul.mubr.bf16.gmra.mxu1 %v4893_v11  ;;  %1487 = vmatprep.mubr.bf16.mxu0 %v4897_v12 }
 0x118   : > { %1648 = vmatprep.mubr.bf16.mxu1 %v4899_v13 }
 0x11e   : > { %1488 = vmatmul.mubr.bf16.gmra.mxu0 %v4901_v16 }
 0x11f   : > { %1649 = vmatmul.mubr.bf16.gmra.mxu1 %v4902_v17  ;;  %1497 = vmatprep.mubr.bf16.mxu0 %v4325_v18 }
 0x120   : > { %1658 = vmatprep.mubr.bf16.mxu1 %v4327_v19 }
 0x126   : > { %1498 = vmatmul.mubr.bf16.gmra.mxu0 %v4324_v20 }
 0x127   : > { %1659 = vmatmul.mubr.bf16.gmra.mxu1 %v4326_v21  ;;  %1699 = vmatprep.mubr.bf16.mxu0 %v4915_v22 }
 0x128   : > { %1769 = vmatprep.mubr.bf16.mxu1 %v4918_v23 }
 0x12e   : > { %1700 = vmatmul.mubr.bf16.vlgmr.msra.gmra.mxu0 %v4913_v24 }
 0x12f   : > { %1770 = vmatmul.mubr.bf16.vlgmr.msra.gmra.mxu1 %v4916_v25  ;;  %1709 = vmatprep.mubr.bf16.mxu0 %v4919_v26 }
 0x130   : > { %1779 = vmatprep.mubr.bf16.mxu1 %v4921_v27 }
 0x136   : > { %1710 = vmatmul.mubr.bf16.gmra.mxu0 %v4923_v28 }
 0x137   : > { %1780 = vmatmul.mubr.bf16.gmra.mxu1 %v4924_v29  ;;  %1719 = vmatprep.mubr.bf16.mxu0 %v4925_v30 }
 0x138   : > { %1789 = vmatprep.mubr.bf16.mxu1 %v4927_v31 }
 0x13e   : > { %1720 = vmatmul.mubr.bf16.gmra.mxu0 %v4929_v32 }
 0x13f   : > { %1790 = vmatmul.mubr.bf16.gmra.mxu1 %v4930_v33  ;;  %1729 = vmatprep.mubr.bf16.mxu0 %v4931_v34 }
 0x140   : > { %1799 = vmatprep.mubr.bf16.mxu1 %v4933_v35 }
 0x146   : > { %1730 = vmatmul.mubr.bf16.gmra.mxu0 %v4935_v36 }
 0x147   : > { %1800 = vmatmul.mubr.bf16.gmra.mxu1 %v4936_v37  ;;  %1739 = vmatprep.mubr.bf16.mxu0 %v4937_v38 }
 0x148   : > { %1809 = vmatprep.mubr.bf16.mxu1 %v4939_v39 }
 0x14e   : > { %1740 = vmatmul.mubr.bf16.gmra.mxu0 %v4941_v41 }
 0x14f   : > { %1810 = vmatmul.mubr.bf16.gmra.mxu1 %v4942_v42  ;;  %1749 = vmatprep.mubr.bf16.mxu0 %v4943_v43 }
 0x150   : > { %1819 = vmatprep.mubr.bf16.mxu1 %v4329_v44 }
 0x156   : > { %1750 = vmatmul.mubr.bf16.gmra.mxu0 %v4946_v45 }
 0x157   : > { %1820 = vmatmul.mubr.bf16.gmra.mxu1 %v4328_v46  ;;  %1759 = vmatprep.mubr.bf16.mxu0 %v4948_v47 }
 0x15e   : > { %1760 = vmatmul.mubr.bf16.gmra.mxu0 %v4950_v48 }
 0x186   : > { %v1379_v49 = vpop.f32.mrf.mxu0 }
 0x187   : > { %v1540_v50 = vpop.f32.mrf.mxu1 }
 0x188   : > { %v5578_v51 = vadd.f32 %v1540_v50, %v1379_v49  ;;  %v1381_v52 = vpop.f32.mrf.mxu0 }
 0x189   : > { %v1542_v53 = vpop.f32.mrf.mxu1 }
 0x18a   : > { %v5580_v54 = vadd.f32 %v1542_v53, %v1381_v52  ;;  %v1383_v55 = vpop.f32.mrf.mxu0 }
 0x18b   : > { %v1544_v56 = vpop.f32.mrf.mxu1 }
 0x18c   : > { %v5582_v57 = vadd.f32 %v1544_v56, %v1383_v55  ;;  %v1385_v58 = vpop.f32.mrf.mxu0 }
 0x18d   : > { %v1546_v59 = vpop.f32.mrf.mxu1 }
 0x18e   : > { %v5584_v60 = vadd.f32 %v1546_v59, %v1385_v58  ;;  %v1389_v61 = vpop.f32.mrf.mxu0 }
 0x18f   : > { %v1550_v62 = vpop.f32.mrf.mxu1 }
 0x190   : > { %v5586_v63 = vadd.f32 %v1550_v62, %v1389_v61  ;;  %v1391_v0 = vpop.f32.mrf.mxu0 }
 0x191   : > { %v1552_v1 = vpop.f32.mrf.mxu1 }
 0x192   : > { %v5588_v2 = vadd.f32 %v1552_v1, %v1391_v0  ;;  %v1393_v3 = vpop.f32.mrf.mxu0 }
 0x193   : > { %v1554_v4 = vpop.f32.mrf.mxu1 }
 0x194   : > { %v5590_v5 = vadd.f32 %v1554_v4, %v1393_v3  ;;  %v1395_v6 = vpop.f32.mrf.mxu0 }
 0x195   : > { %v1556_v7 = vpop.f32.mrf.mxu1 }
 0x196   : > { %v5592_v8 = vadd.f32 %v1556_v7, %v1395_v6  ;;  %v1399_v9 = vpop.f32.mrf.mxu0 }
 0x197   : > { %v1560_v10 = vpop.f32.mrf.mxu1 }
 0x198   : > { %v5594_v11 = vadd.f32 %v1560_v10, %v1399_v9  ;;  %v1401_v12 = vpop.f32.mrf.mxu0 }
 0x199   : > { %v1562_v13 = vpop.f32.mrf.mxu1 }
 0x19a   : > { %v5596_v14 = vadd.f32 %v1562_v13, %v1401_v12  ;;  %v1403_v15 = vpop.f32.mrf.mxu0 }
 0x19b   : > { %v1564_v16 = vpop.f32.mrf.mxu1 }
 0x19c   : > { %v5598_v17 = vadd.f32 %v1564_v16, %v1403_v15  ;;  %v1405_v18 = vpop.f32.mrf.mxu0 }
 0x19d   : > { %v1566_v19 = vpop.f32.mrf.mxu1 }
 0x19e   : > { %v5600_v20 = vadd.f32 %v1566_v19, %v1405_v18  ;;  %v1409_v21 = vpop.f32.mrf.mxu0 }
 0x19f   : > { %v1570_v22 = vpop.f32.mrf.mxu1 }
 0x1a0   : > { %v5602_v23 = vadd.f32 %v1570_v22, %v1409_v21  ;;  %v1411_v24 = vpop.f32.mrf.mxu0 }
 0x1a1   : > { %v1572_v25 = vpop.f32.mrf.mxu1 }
 0x1a2   : > { %v5604_v26 = vadd.f32 %v1572_v25, %v1411_v24  ;;  %v1413_v27 = vpop.f32.mrf.mxu0 }
 0x1a3   : > { %v1574_v28 = vpop.f32.mrf.mxu1 }
 0x1a4   : > { %v5606_v29 = vadd.f32 %v1574_v28, %v1413_v27  ;;  %v1415_v30 = vpop.f32.mrf.mxu0 }
 0x1a5   : > { %v1576_v31 = vpop.f32.mrf.mxu1 }
 0x1a6   : > { %v5608_v32 = vadd.f32 %v1576_v31, %v1415_v30  ;;  %v1419_v33 = vpop.f32.mrf.mxu0 }
 0x1a7   : > { %v1580_v34 = vpop.f32.mrf.mxu1 }
 0x1a8   : > { %v5610_v35 = vadd.f32 %v1580_v34, %v1419_v33  ;;  %v1421_v36 = vpop.f32.mrf.mxu0 }
 0x1a9   : > { %v1582_v37 = vpop.f32.mrf.mxu1 }
 0x1aa   : > { %v5612_v38 = vadd.f32 %v1582_v37, %v1421_v36  ;;  %v1423_v39 = vpop.f32.mrf.mxu0 }
 0x1ab   : > { %v1584_v40 = vpop.f32.mrf.mxu1 }
 0x1ac   : > { %v5614_v41 = vadd.f32 %v1584_v40, %v1423_v39  ;;  %v1425_v42 = vpop.f32.mrf.mxu0 }
 0x1ad   : > { %v1586_v43 = vpop.f32.mrf.mxu1 }
 0x1ae   : > { %v5616_v44 = vadd.f32 %v1586_v43, %v1425_v42  ;;  %v1429_v45 = vpop.f32.mrf.mxu0 }
 0x1af   : > { %v1590_v46 = vpop.f32.mrf.mxu1 }
 0x1b0   : > { %v5618_v47 = vadd.f32 %v1590_v46, %v1429_v45  ;;  %v1431_v48 = vpop.f32.mrf.mxu0 }
 0x1b1   : > { %v1592_v49 = vpop.f32.mrf.mxu1 }
 0x1b2   : > { %v5620_v50 = vadd.f32 %v1592_v49, %v1431_v48  ;;  %v1433_v52 = vpop.f32.mrf.mxu0 }
 0x1b3   : > { %v1594_v53 = vpop.f32.mrf.mxu1 }
 0x1b4   : > { %v5622_v55 = vadd.f32 %v1594_v53, %v1433_v52  ;;  %v1435_v56 = vpop.f32.mrf.mxu0 }
 0x1b5   : > { %v1596_v58 = vpop.f32.mrf.mxu1 }
 0x1b6   : > { %v5624_v59 = vadd.f32 %v1596_v58, %v1435_v56  ;;  %v1439_v61 = vpop.f32.mrf.mxu0 }
 0x1b7   : > { %v1600_v62 = vpop.f32.mrf.mxu1 }
 0x1b8   : > { %v5626_v0 = vadd.f32 %v1600_v62, %v1439_v61  ;;  %v1441_v1 = vpop.f32.mrf.mxu0 }
 0x1b9   : > { %v1602_v3 = vpop.f32.mrf.mxu1 }
 0x1ba   : > { %v5628_v4 = vadd.f32 %v1602_v3, %v1441_v1  ;;  %v1443_v6 = vpop.f32.mrf.mxu0 }
 0x1bb   : > { %v1604_v7 = vpop.f32.mrf.mxu1 }
 0x1bc   : > { %v5630_v9 = vadd.f32 %v1604_v7, %v1443_v6  ;;  %v1445_v10 = vpop.f32.mrf.mxu0 }
 0x1bd   : > { %v1606_v12 = vpop.f32.mrf.mxu1 }
 0x1be   : > { %v5632_v13 = vadd.f32 %v1606_v12, %v1445_v10  ;;  %v1449_v15 = vpop.f32.mrf.mxu0 }
 0x1bf   : > { %v1610_v16 = vpop.f32.mrf.mxu1 }
 0x1c0   : > { %7002 = vst [vmem:[#allocation18_spill] sm:$0xff] %v5632_v13  ;;  %v5634_v18 = vadd.f32 %v1610_v16, %v1449_v15  ;;  %v1451_v19 = vpop.f32.mrf.mxu0 }
 0x1c1   : > { %v1612_v21 = vpop.f32.mrf.mxu1 }
 0x1c2   : > { %v5636_v22 = vadd.f32 %v1612_v21, %v1451_v19  ;;  %v1453_v24 = vpop.f32.mrf.mxu0 }
 0x1c3   : > { %v1614_v25 = vpop.f32.mrf.mxu1 }
 0x1c4   : > { %v5638_v27 = vadd.f32 %v1614_v25, %v1453_v24  ;;  %v1455_v28 = vpop.f32.mrf.mxu0 }
 0x1c5   : > { %v1616_v30 = vpop.f32.mrf.mxu1 }
 0x1c6   : > { %v5640_v31 = vadd.f32 %v1616_v30, %v1455_v28  ;;  %v1459_v33 = vpop.f32.mrf.mxu0 }
 0x1c7   : > { %v1620_v34 = vpop.f32.mrf.mxu1 }
 0x1c8   : > { %v5642_v36 = vadd.f32 %v1620_v34, %v1459_v33  ;;  %v1461_v37 = vpop.f32.mrf.mxu0 }
 0x1c9   : > { %v1622_v39 = vpop.f32.mrf.mxu1 }
 0x1ca   : > { %v5644_v40 = vadd.f32 %v1622_v39, %v1461_v37  ;;  %v1463_v42 = vpop.f32.mrf.mxu0 }
 0x1cb   : > { %v1624_v43 = vpop.f32.mrf.mxu1 }
 0x1cc   : > { %v5646_v45 = vadd.f32 %v1624_v43, %v1463_v42  ;;  %v1465_v46 = vpop.f32.mrf.mxu0 }
 0x1cd   : > { %v1626_v48 = vpop.f32.mrf.mxu1 }
 0x1ce   : > { %v5648_v49 = vadd.f32 %v1626_v48, %v1465_v46  ;;  %v1469_v52 = vpop.f32.mrf.mxu0 }
 0x1cf   : > { %v1630_v53 = vpop.f32.mrf.mxu1 }
 0x1d0   : > { %v5650_v56 = vadd.f32 %v1630_v53, %v1469_v52  ;;  %v1471_v58 = vpop.f32.mrf.mxu0 }
 0x1d1   : > { %v1632_v61 = vpop.f32.mrf.mxu1 }
 0x1d2   : > { %v5652_v62 = vadd.f32 %v1632_v61, %v1471_v58  ;;  %v1473_v1 = vpop.f32.mrf.mxu0 }
 0x1d3   : > { %v1634_v3 = vpop.f32.mrf.mxu1 }
 0x1d4   : > { %v5654_v6 = vadd.f32 %v1634_v3, %v1473_v1  ;;  %v1475_v7 = vpop.f32.mrf.mxu0 }
 0x1d5   : > { %v1636_v10 = vpop.f32.mrf.mxu1 }
 0x1d6   : > { %v5656_v12 = vadd.f32 %v1636_v10, %v1475_v7  ;;  %v1479_v15 = vpop.f32.mrf.mxu0 }
 0x1d7   : > { %v1640_v16 = vpop.f32.mrf.mxu1 }
 0x1d8   : > { %v5658_v19 = vadd.f32 %v1640_v16, %v1479_v15  ;;  %v1481_v21 = vpop.f32.mrf.mxu0 }
 0x1d9   : > { %v1642_v24 = vpop.f32.mrf.mxu1 }
 0x1da   : > { %v5660_v25 = vadd.f32 %v1642_v24, %v1481_v21  ;;  %v1483_v28 = vpop.f32.mrf.mxu0 }
 0x1db   : > { %v1644_v30 = vpop.f32.mrf.mxu1 }
 0x1dc   : > { %v5662_v33 = vadd.f32 %v1644_v30, %v1483_v28  ;;  %v1485_v34 = vpop.f32.mrf.mxu0 }
 0x1dd   : > { %v1646_v37 = vpop.f32.mrf.mxu1 }
 0x1de   : > { %v5664_v39 = vadd.f32 %v1646_v37, %v1485_v34  ;;  %v1489_v42 = vpop.f32.mrf.mxu0 }
 0x1df   : > { %v1650_v43 = vpop.f32.mrf.mxu1 }
 0x1e0   : > { %v5666_v46 = vadd.f32 %v1650_v43, %v1489_v42  ;;  %v1491_v48 = vpop.f32.mrf.mxu0 }
 0x1e1   : > { %v1652_v52 = vpop.f32.mrf.mxu1 }
 0x1e2   : > { %v5668_v53 = vadd.f32 %v1652_v52, %v1491_v48  ;;  %v1493_v58 = vpop.f32.mrf.mxu0 }
 0x1e3   : > { %v1654_v61 = vpop.f32.mrf.mxu1 }
 0x1e4   : > { %v5670_v1 = vadd.f32 %v1654_v61, %v1493_v58  ;;  %v5672_v3 = vpop.f32.mrf.mxu0 }
 0x1e5   : > { %v5674_v7 = vpop.f32.mrf.mxu1 }
 0x1e6   : > { %v5676_v10 = vpop.f32.mrf.mxu0 }
 0x1e7   : > { %v5678_v15 = vpop.f32.mrf.mxu1 }
 0x1e8   : > { %v5680_v16 = vpop.f32.mrf.mxu0 }
 0x1e9   : > { %v5682_v21 = vpop.f32.mrf.mxu1 }
 0x1ea   : > { %v1503_v24 = vpop.f32.mrf.mxu0 }
 0x1eb   : > { %v1664_v28 = vpop.f32.mrf.mxu1 }
 0x1ec   : > { %v1504_v30 = vpop.f32.mrf.mxu0 }
 0x1ed   : > { %v1665_v34 = vpop.f32.mrf.mxu1 }
 0x1ee   : > { %v1701_v37 = vpop.f32.mrf.mxu0 }
 0x1ef   : > { %v1771_v42 = vpop.f32.mrf.mxu1  ;;  %v5685_v43 = vadd.f32 %v1701_v37, %v5578_v51 }
 0x1f0   : > { %v5688_v48 = vadd.f32 %v1771_v42, %v5634_v18  ;;  %v1703_v52 = vpop.f32.mrf.mxu0 }
 0x1f1   : > { %v1773_v58 = vpop.f32.mrf.mxu1  ;;  %v5691_v61 = vadd.f32 %v1703_v52, %v5580_v54 }
 0x1f2   : > { %v5694_v13 = vadd.f32 %v1773_v58, %v5636_v22  ;;  %v1705_v24 = vpop.f32.mrf.mxu0 }
 0x1f3   : > { %v1775_v28 = vpop.f32.mrf.mxu1  ;;  %v5697_v30 = vadd.f32 %v1705_v24, %v5582_v57 }
 0x1f4   : > { %v5700_v34 = vadd.f32 %v1775_v28, %v5638_v27  ;;  %v1707_v51 = vpop.f32.mrf.mxu0 }
 0x1f5   : > { %v1777_v37 = vpop.f32.mrf.mxu1  ;;  %v5703_v18 = vadd.f32 %v1707_v51, %v5584_v60 }
 0x1f6   : > { %v5706_v42 = vadd.f32 %v1777_v37, %v5640_v31  ;;  %v1711_v54 = vpop.f32.mrf.mxu0 }
 0x1f7   : > { %v1781_v52 = vpop.f32.mrf.mxu1  ;;  %v5709_v22 = vadd.f32 %v1711_v54, %v5586_v63 }
 0x1f8   : > { %v5712_v58 = vadd.f32 %v1781_v52, %v5642_v36  ;;  %v1713_v57 = vpop.f32.mrf.mxu0 }
 0x1f9   : > { %v1783_v24 = vpop.f32.mrf.mxu1  ;;  %v5715_v27 = vadd.f32 %v1713_v57, %v5588_v2 }
 0x1fa   : > { %v5718_v28 = vadd.f32 %v1783_v24, %v5644_v40  ;;  %v1715_v60 = vpop.f32.mrf.mxu0 }
 0x1fb   : > { %v1785_v51 = vpop.f32.mrf.mxu1  ;;  %v5721_v31 = vadd.f32 %v1715_v60, %v5590_v5 }
 0x1fc   : > { %v5724_v37 = vadd.f32 %v1785_v51, %v5646_v45  ;;  %v1717_v63 = vpop.f32.mrf.mxu0 }
 0x1fd   : > { %v1787_v54 = vpop.f32.mrf.mxu1  ;;  %v5727_v36 = vadd.f32 %v1717_v63, %v5592_v8 }
 0x1fe   : > { %v5730_v52 = vadd.f32 %v1787_v54, %v5648_v49  ;;  %v1721_v2 = vpop.f32.mrf.mxu0 }
 0x1ff   : > { %v1791_v57 = vpop.f32.mrf.mxu1  ;;  %v5733_v40 = vadd.f32 %v1721_v2, %v5594_v11 }
 0x200   : > { %v5736_v24 = vadd.f32 %v1791_v57, %v5650_v56  ;;  %v1723_v5 = vpop.f32.mrf.mxu0 }
 0x201   : > { %v1793_v60 = vpop.f32.mrf.mxu1  ;;  %v5739_v45 = vadd.f32 %v1723_v5, %v5596_v14 }
 0x202   : > { %v5742_v51 = vadd.f32 %v1793_v60, %v5652_v62  ;;  %v1725_v8 = vpop.f32.mrf.mxu0 }
 0x203   : > { %v1795_v63 = vpop.f32.mrf.mxu1  ;;  %v5745_v49 = vadd.f32 %v1725_v8, %v5598_v17 }
 0x204   : > { %v5748_v54 = vadd.f32 %v1795_v63, %v5654_v6  ;;  %v1727_v11 = vpop.f32.mrf.mxu0 }
 0x205   : > { %v1797_v2 = vpop.f32.mrf.mxu1  ;;  %v5751_v56 = vadd.f32 %v1727_v11, %v5600_v20 }
 0x206   : > { %v5754_v57 = vadd.f32 %v1797_v2, %v5656_v12  ;;  %v1731_v14 = vpop.f32.mrf.mxu0 }
 0x207   : > { %v1801_v5 = vpop.f32.mrf.mxu1  ;;  %v5757_v62 = vadd.f32 %v1731_v14, %v5602_v23 }
 0x208   : > { %v5760_v60 = vadd.f32 %v1801_v5, %v5658_v19  ;;  %v1733_v17 = vpop.f32.mrf.mxu0 }
 0x209   : > { %v1803_v8 = vpop.f32.mrf.mxu1  ;;  %v5763_v6 = vadd.f32 %v1733_v17, %v5604_v26 }
 0x20a   : > { %v5766_v63 = vadd.f32 %v1803_v8, %v5660_v25  ;;  %v1735_v20 = vpop.f32.mrf.mxu0 }
 0x20b   : > { %v1805_v11 = vpop.f32.mrf.mxu1  ;;  %v5769_v12 = vadd.f32 %v1735_v20, %v5606_v29 }
 0x20c   : > { %v5772_v2 = vadd.f32 %v1805_v11, %v5662_v33  ;;  %v1737_v23 = vpop.f32.mrf.mxu0 }
 0x20d   : > { %v1807_v14 = vpop.f32.mrf.mxu1  ;;  %v5775_v19 = vadd.f32 %v1737_v23, %v5608_v32 }
 0x20e   : > { %v5778_v5 = vadd.f32 %v1807_v14, %v5664_v39  ;;  %v1741_v26 = vpop.f32.mrf.mxu0  ;;  %v1657_v39 = vadd.f32 %v5674_v7, %v5672_v3  ;;  %v1663_v3 = vadd.f32 %v5682_v21, %v5680_v16 }
 0x20f   : > { %v1811_v17 = vpop.f32.mrf.mxu1  ;;  %v5781_v25 = vadd.f32 %v1741_v26, %v5610_v35 }
 0x210   : > { %v5784_v8 = vadd.f32 %v1811_v17, %v5666_v46  ;;  %v1743_v29 = vpop.f32.mrf.mxu0 }
 0x211   : > { %v1813_v20 = vpop.f32.mrf.mxu1  ;;  %v5787_v33 = vadd.f32 %v1743_v29, %v5612_v38  ;;  %v1661_v38 = vadd.f32 %v5678_v15, %v5676_v10 }
 0x212   : > { %v5790_v11 = vadd.f32 %v1813_v20, %v5668_v53  ;;  %v1745_v32 = vpop.f32.mrf.mxu0 }
 0x213   : > { %v1815_v23 = vpop.f32.mrf.mxu1  ;;  %v5795_v14 = vadd.f32 %v1745_v32, %v5614_v41 }
 0x214   : > { %v5798_v35 = vadd.f32 %v1815_v23, %v5670_v1  ;;  %v1747_v46 = vpop.f32.mrf.mxu0 }
 0x215   : > { %v1817_v26 = vpop.f32.mrf.mxu1  ;;  %v5803_v17 = vadd.f32 %v1747_v46, %v5616_v44 }
 0x216   : > { %v5805_v53 = vadd.f32 %v1817_v26, %v1657_v39  ;;  %v1751_v29 = vpop.f32.mrf.mxu0 }
 0x217   : > { %v1821_v20 = vpop.f32.mrf.mxu1  ;;  %v5810_v41 = vadd.f32 %v1751_v29, %v5618_v47 }
 0x218   : > { %v5812_v1 = vadd.f32 %v1821_v20, %v1661_v38  ;;  %v1753_v7 = vpop.f32.mrf.mxu0 }
 0x219   : > { %v1823_v32 = vpop.f32.mrf.mxu1  ;;  %v5815_v23 = vadd.f32 %v1753_v7, %v5620_v50 }
 0x21a   : > { %v5817_v10 = vadd.f32 %v1823_v32, %v1663_v3  ;;  %v1755_v44 = vpop.f32.mrf.mxu0 }
 0x21b   : > { %v1825_v15 = vpop.f32.mrf.mxu1  ;;  %v5820_v39 = vadd.f32 %v1755_v44, %v5622_v55  ;;  %v7004_v55 = vld [vmem:[#allocation18_spill] sm:$0xff] }
 0x21c   : > { %7003 = vst [vmem:[#allocation19_spill] sm:$0xff] %v5817_v10  ;;  %v1757_v46 = vpop.f32.mrf.mxu0 }
 0x21d   : > { %v1826_v26 = vpop.f32.mrf.mxu1  ;;  %v5823_v16 = vadd.f32 %v1757_v46, %v5624_v59 }
 0x21e   : > { %v1761_v47 = vpop.f32.mrf.mxu0 }
 0x21f   : > { %v5826_v21 = vadd.f32 %v1761_v47, %v5626_v0 }
 0x220   : > { %v1763_v38 = vpop.f32.mrf.mxu0 }
 0x221   : > { %v5829_v50 = vadd.f32 %v1763_v38, %v5628_v4  ;;  %1831 = sbr.rel (%p7005_p4) target bundleno = 575 (0x23f), region = 64 }
 0x222   : > { %v1765_v29 = vpop.f32.mrf.mxu0 }
 0x223   : > { %v5832_v20 = vadd.f32 %v1765_v29, %v5630_v9 }
 0x224   : > { %v1767_v3 = vpop.f32.mrf.mxu0 }
 0x225   : > { %v5835_v7 = vadd.f32 %v1767_v3, %v7004_v55 }
 0x226   : > { %1832 = vst [vmem:[#allocation2 + $0xb0] sm:$0xff] %v5685_v43  ;;  %1833 = vst [vmem:[#allocation2 + $0xd0] sm:$0xff] %v5691_v61 }
 0x227   : > { %1834 = vst [vmem:[#allocation2 + $0x10] sm:$0xff] %v5697_v30  ;;  %1835 = vst [vmem:[#allocation2 + $0x48] sm:$0xff] %v5703_v18 }
 0x228   : > { %1836 = vst [vmem:[#allocation2 + $0x160] sm:$0xff] %v5709_v22  ;;  %1837 = vst [vmem:[#allocation2 + $0x128] sm:$0xff] %v5715_v27 }
 0x229   : > { %1838 = vst [vmem:[#allocation2 + $0x40] sm:$0xff] %v5721_v31  ;;  %1839 = vst [vmem:[#allocation2 + $0x178] sm:$0xff] %v5727_v36 }
 0x22a   : > { %1840 = vst [vmem:[#allocation2 + $0x108] sm:$0xff] %v5733_v40  ;;  %1841 = vst [vmem:[#allocation2 + $0x110] sm:$0xff] %v5739_v45 }
 0x22b   : > { %1842 = vst [vmem:[#allocation2 + $0x90] sm:$0xff] %v5745_v49  ;;  %1843 = vst [vmem:[#allocation2 + $0x118] sm:$0xff] %v5751_v56 }
 0x22c   : > { %1844 = vst [vmem:[#allocation2 + $0x148] sm:$0xff] %v5757_v62  ;;  %1845 = vst [vmem:[#allocation2 + $0x100] sm:$0xff] %v5763_v6 }
 0x22d   : > { %1846 = vst [vmem:[#allocation2 + $0x58] sm:$0xff] %v5769_v12  ;;  %1847 = vst [vmem:[#allocation2 + $0xd8] sm:$0xff] %v5775_v19 }
 0x22e   : > { %1848 = vst [vmem:[#allocation2 + $0x180] sm:$0xff] %v5781_v25  ;;  %1849 = vst [vmem:[#allocation2 + $0x130] sm:$0xff] %v5787_v33 }
 0x22f   : > { %1850 = vst [vmem:[#allocation2 + $0x138] sm:$0xff] %v5795_v14  ;;  %1851 = vst [vmem:[#allocation2 + $0x120] sm:$0xff] %v5803_v17 }
 0x230   : > { %1852 = vst [vmem:[#allocation2 + $0xe0] sm:$0xff] %v5810_v41  ;;  %1853 = vst [vmem:[#allocation2 + $0xa8] sm:$0xff] %v5815_v23 }
 0x231   : > { %1854 = vst [vmem:[#allocation2 + $0xb8] sm:$0xff] %v5820_v39  ;;  %1855 = vst [vmem:[#allocation2 + $0x168] sm:$0xff] %v5823_v16 }
 0x232   : > { %1856 = vst [vmem:[#allocation2 + $0xe8] sm:$0xff] %v5826_v21  ;;  %1857 = vst [vmem:[#allocation2 + $0xf8] sm:$0xff] %v5829_v50 }
 0x233   : > { %1858 = vst [vmem:[#allocation2 + $0x20] sm:$0xff] %v5832_v20  ;;  %1859 = vst [vmem:[#allocation2 + $0x88] sm:$0xff] %v5835_v7 }
 0x234   : > { %1860 = vst [vmem:[#allocation2 + $0xa0] sm:$0xff] %v5688_v48  ;;  %1861 = vst [vmem:[#allocation2 + $0x170] sm:$0xff] %v5694_v13 }
 0x235   : > { %1862 = vst [vmem:[#allocation2 + $0xf0] sm:$0xff] %v5700_v34  ;;  %1863 = vst [vmem:[#allocation2 + $0x140] sm:$0xff] %v5706_v42 }
 0x236   : > { %1864 = vst [vmem:[#allocation2 + $0x50] sm:$0xff] %v5712_v58  ;;  %1865 = vst [vmem:[#allocation2] sm:$0xff] %v5718_v28 }
 0x237   : > { %1866 = vst [vmem:[#allocation2 + $0x8] sm:$0xff] %v5724_v37  ;;  %1867 = vst [vmem:[#allocation2 + $0xc0] sm:$0xff] %v5730_v52 }
 0x238   : > { %1868 = vst [vmem:[#allocation2 + $0x98] sm:$0xff] %v5736_v24  ;;  %1869 = vst [vmem:[#allocation2 + $0x30] sm:$0xff] %v5742_v51 }
 0x239   : > { %1870 = vst [vmem:[#allocation2 + $0x188] sm:$0xff] %v5748_v54  ;;  %1871 = vst [vmem:[#allocation2 + $0x18] sm:$0xff] %v5754_v57 }
 0x23a   : > { %1872 = vst [vmem:[#allocation2 + $0x28] sm:$0xff] %v5760_v60  ;;  %1873 = vst [vmem:[#allocation2 + $0x158] sm:$0xff] %v5766_v63 }
 0x23b   : > { %1874 = vst [vmem:[#allocation2 + $0x38] sm:$0xff] %v5772_v2  ;;  %1875 = vst [vmem:[#allocation2 + $0x70] sm:$0xff] %v5778_v5 }
 0x23c   : > { %1876 = vst [vmem:[#allocation2 + $0x68] sm:$0xff] %v5784_v8  ;;  %1877 = vst [vmem:[#allocation2 + $0x80] sm:$0xff] %v5790_v11 }
 0x23d   : > { %1878 = vst [vmem:[#allocation2 + $0xc8] sm:$0xff] %v5798_v35  ;;  %1879 = vst [vmem:[#allocation2 + $0x60] sm:$0xff] %v5805_v53 }
 0x23e   : > { %1880 = vst [vmem:[#allocation2 + $0x78] sm:$0xf] %v5812_v1  ;;  %1881 = vst [vmem:[#allocation2 + $0x150] sm:$0xf] %v5817_v10 }
 0x23f PF: > { %p7006_p12 = scmp.eq.s32.totalorder %s5235_s22, 0 }
 0x241   : > { %1885 = sbr.rel (%p7006_p12) target bundleno = 610 (0x262), region = 68 }
 0x246   : > { %v1886_v59 = vld [vmem:[#allocation2 + $0xb0] sm:$0xff]  ;;  %v1889_v15 = vld [vmem:[#allocation2 + $0x48] sm:$0xff]  ;;  %v1890_v46 = vld [vmem:[#allocation2 + $0x160] sm:$0xff] }
 0x247   : > { %v1887_v0 = vld [vmem:[#allocation2 + $0xd0] sm:$0xff]  ;;  %v1936_v9 = vadd.f32 %v1886_v59, %v5685_v43  ;;  %v1891_v26 = vld [vmem:[#allocation2 + $0x128] sm:$0xff]  ;;  %v1939_v47 = vadd.f32 %v1889_v15, %v5703_v18  ;;  %v1940_v38 = vadd.f32 %v1890_v46, %v5709_v22  ;;  %v1892_v3 = vld [vmem:[#allocation2 + $0x40] sm:$0xff] }
 0x248   : > { %v1888_v4 = vld [vmem:[#allocation2 + $0x10] sm:$0xff]  ;;  %v1937_v32 = vadd.f32 %v1887_v0, %v5691_v61  ;;  %v1941_v29 = vadd.f32 %v1891_v26, %v5715_v27  ;;  %v1893_v55 = vld [vmem:[#allocation2 + $0x178] sm:$0xff]  ;;  %v1894_v10 = vld [vmem:[#allocation2 + $0x108] sm:$0xff]  ;;  %v1942_v43 = vadd.f32 %v1892_v3, %v5721_v31 }
 0x249   : > { %v1938_v44 = vadd.f32 %v1888_v4, %v5697_v30  ;;  %1986 = vst [vmem:[#allocation2 + $0xb0] sm:$0xff] %v1936_v9  ;;  %v1943_v61 = vadd.f32 %v1893_v55, %v5727_v36  ;;  %v1944_v30 = vadd.f32 %v1894_v10, %v5733_v40  ;;  %v1895_v59 = vld [vmem:[#allocation2 + $0x110] sm:$0xff]  ;;  %v1897_v4 = vld [vmem:[#allocation2 + $0x118] sm:$0xff]  ;;  %1989 = vst [vmem:[#allocation2 + $0x48] sm:$0xff] %v1939_v47 }
 0x24a   : > { %1987 = vst [vmem:[#allocation2 + $0xd0] sm:$0xff] %v1937_v32  ;;  %v1896_v0 = vld [vmem:[#allocation2 + $0x90] sm:$0xff]  ;;  %1990 = vst [vmem:[#allocation2 + $0x160] sm:$0xff] %v1940_v38  ;;  %v1945_v18 = vadd.f32 %v1895_v59, %v5739_v45  ;;  %v1947_v27 = vadd.f32 %v1897_v4, %v5751_v56  ;;  %v1898_v9 = vld [vmem:[#allocation2 + $0x148] sm:$0xff] }
 0x24b   : > { %1988 = vst [vmem:[#allocation2 + $0x10] sm:$0xff] %v1938_v44  ;;  %1991 = vst [vmem:[#allocation2 + $0x128] sm:$0xff] %v1941_v29  ;;  %v1946_v22 = vadd.f32 %v1896_v0, %v5745_v49  ;;  %v1899_v32 = vld [vmem:[#allocation2 + $0x100] sm:$0xff]  ;;  %v1900_v44 = vld [vmem:[#allocation2 + $0x58] sm:$0xff]  ;;  %v1948_v31 = vadd.f32 %v1898_v9, %v5757_v62 }
 0x24c   : > { %1992 = vst [vmem:[#allocation2 + $0x40] sm:$0xff] %v1942_v43  ;;  %1993 = vst [vmem:[#allocation2 + $0x178] sm:$0xff] %v1943_v61  ;;  %v1949_v36 = vadd.f32 %v1899_v32, %v5763_v6  ;;  %v1950_v40 = vadd.f32 %v1900_v44, %v5769_v12  ;;  %v1901_v10 = vld [vmem:[#allocation2 + $0xd8] sm:$0xff]  ;;  %v1902_v15 = vld [vmem:[#allocation2 + $0x180] sm:$0xff] }
 0x24d   : > { %1994 = vst [vmem:[#allocation2 + $0x108] sm:$0xff] %v1944_v30  ;;  %v1903_v46 = vld [vmem:[#allocation2 + $0x130] sm:$0xff]  ;;  %1995 = vst [vmem:[#allocation2 + $0x110] sm:$0xff] %v1945_v18  ;;  %v1951_v45 = vadd.f32 %v1901_v10, %v5775_v19  ;;  %v1952_v49 = vadd.f32 %v1902_v15, %v5781_v25  ;;  %v1904_v26 = vld [vmem:[#allocation2 + $0x138] sm:$0xff] }
 0x24e   : > { %1996 = vst [vmem:[#allocation2 + $0x90] sm:$0xff] %v1946_v22  ;;  %1997 = vst [vmem:[#allocation2 + $0x118] sm:$0xff] %v1947_v27  ;;  %v1953_v56 = vadd.f32 %v1903_v46, %v5787_v33  ;;  %v1905_v47 = vld [vmem:[#allocation2 + $0x120] sm:$0xff]  ;;  %v1954_v62 = vadd.f32 %v1904_v26, %v5795_v14  ;;  %v1907_v29 = vld [vmem:[#allocation2 + $0xa8] sm:$0xff] }
 0x24f   : > { %v1906_v38 = vld [vmem:[#allocation2 + $0xe0] sm:$0xff]  ;;  %1998 = vst [vmem:[#allocation2 + $0x148] sm:$0xff] %v1948_v31  ;;  %1999 = vst [vmem:[#allocation2 + $0x100] sm:$0xff] %v1949_v36  ;;  %v1955_v6 = vadd.f32 %v1905_v47, %v5803_v17  ;;  %v1908_v3 = vld [vmem:[#allocation2 + $0xb8] sm:$0xff]  ;;  %v1957_v19 = vadd.f32 %v1907_v29, %v5815_v23 }
 0x250   : > { %2000 = vst [vmem:[#allocation2 + $0x58] sm:$0xff] %v1950_v40  ;;  %v1956_v12 = vadd.f32 %v1906_v38, %v5810_v41  ;;  %v1909_v55 = vld [vmem:[#allocation2 + $0x168] sm:$0xff]  ;;  %2001 = vst [vmem:[#allocation2 + $0xd8] sm:$0xff] %v1951_v45  ;;  %v1958_v25 = vadd.f32 %v1908_v3, %v5820_v39  ;;  %v1911_v61 = vld [vmem:[#allocation2 + $0xf8] sm:$0xff] }
 0x251   : > { %2002 = vst [vmem:[#allocation2 + $0x180] sm:$0xff] %v1952_v49  ;;  %2003 = vst [vmem:[#allocation2 + $0x130] sm:$0xff] %v1953_v56  ;;  %v1959_v33 = vadd.f32 %v1909_v55, %v5823_v16  ;;  %v1910_v43 = vld [vmem:[#allocation2 + $0xe8] sm:$0xff]  ;;  %v1912_v30 = vld [vmem:[#allocation2 + $0x20] sm:$0xff]  ;;  %v1961_v17 = vadd.f32 %v1911_v61, %v5829_v50 }
 0x252   : > { %2004 = vst [vmem:[#allocation2 + $0x138] sm:$0xff] %v1954_v62  ;;  %2005 = vst [vmem:[#allocation2 + $0x120] sm:$0xff] %v1955_v6  ;;  %v1960_v14 = vadd.f32 %v1910_v43, %v5826_v21  ;;  %v1962_v41 = vadd.f32 %v1912_v30, %v5832_v20  ;;  %v1913_v59 = vld [vmem:[#allocation2 + $0x88] sm:$0xff]  ;;  %v1914_v0 = vld [vmem:[#allocation2 + $0xa0] sm:$0xff] }
 0x253   : > { %2006 = vst [vmem:[#allocation2 + $0xe0] sm:$0xff] %v1956_v12  ;;  %v1915_v4 = vld [vmem:[#allocation2 + $0x170] sm:$0xff]  ;;  %2007 = vst [vmem:[#allocation2 + $0xa8] sm:$0xff] %v1957_v19  ;;  %v1963_v23 = vadd.f32 %v1913_v59, %v5835_v7  ;;  %v1964_v39 = vadd.f32 %v1914_v0, %v5688_v48  ;;  %v1917_v22 = vld [vmem:[#allocation2 + $0x140] sm:$0xff] }
 0x254   : > { %2008 = vst [vmem:[#allocation2 + $0xb8] sm:$0xff] %v1958_v25  ;;  %2009 = vst [vmem:[#allocation2 + $0x168] sm:$0xff] %v1959_v33  ;;  %v1965_v16 = vadd.f32 %v1915_v4, %v5694_v13  ;;  %v1916_v18 = vld [vmem:[#allocation2 + $0xf0] sm:$0xff]  ;;  %v1967_v50 = vadd.f32 %v1917_v22, %v5706_v42  ;;  %v1919_v9 = vld [vmem:[#allocation2] sm:$0xff] }
 0x255   : > { %v1918_v27 = vld [vmem:[#allocation2 + $0x50] sm:$0xff]  ;;  %2010 = vst [vmem:[#allocation2 + $0xe8] sm:$0xff] %v1960_v14  ;;  %2011 = vst [vmem:[#allocation2 + $0xf8] sm:$0xff] %v1961_v17  ;;  %v1966_v21 = vadd.f32 %v1916_v18, %v5700_v34  ;;  %v1920_v32 = vld [vmem:[#allocation2 + $0x8] sm:$0xff]  ;;  %v1969_v13 = vadd.f32 %v1919_v9, %v5718_v28 }
 0x256   : > { %2012 = vst [vmem:[#allocation2 + $0x20] sm:$0xff] %v1962_v41  ;;  %v1968_v20 = vadd.f32 %v1918_v27, %v5712_v58  ;;  %v1921_v44 = vld [vmem:[#allocation2 + $0xc0] sm:$0xff]  ;;  %2013 = vst [vmem:[#allocation2 + $0x88] sm:$0xff] %v1963_v23  ;;  %v1970_v48 = vadd.f32 %v1920_v32, %v5724_v37  ;;  %v1922_v31 = vld [vmem:[#allocation2 + $0x98] sm:$0xff] }
 0x257   : > { %2014 = vst [vmem:[#allocation2 + $0xa0] sm:$0xff] %v1964_v39  ;;  %2015 = vst [vmem:[#allocation2 + $0x170] sm:$0xff] %v1965_v16  ;;  %v1971_v7 = vadd.f32 %v1921_v44, %v5730_v52  ;;  %v1923_v36 = vld [vmem:[#allocation2 + $0x30] sm:$0xff]  ;;  %v1924_v40 = vld [vmem:[#allocation2 + $0x188] sm:$0xff]  ;;  %v1972_v34 = vadd.f32 %v1922_v31, %v5736_v24 }
 0x258   : > { %2016 = vst [vmem:[#allocation2 + $0xf0] sm:$0xff] %v1966_v21  ;;  %2017 = vst [vmem:[#allocation2 + $0x140] sm:$0xff] %v1967_v50  ;;  %v1973_v42 = vadd.f32 %v1923_v36, %v5742_v51  ;;  %v1974_v58 = vadd.f32 %v1924_v40, %v5748_v54  ;;  %v1925_v10 = vld [vmem:[#allocation2 + $0x18] sm:$0xff]  ;;  %v1926_v15 = vld [vmem:[#allocation2 + $0x28] sm:$0xff] }
 0x259   : > { %2018 = vst [vmem:[#allocation2 + $0x50] sm:$0xff] %v1968_v20  ;;  %v1927_v46 = vld [vmem:[#allocation2 + $0x158] sm:$0xff]  ;;  %2019 = vst [vmem:[#allocation2] sm:$0xff] %v1969_v13  ;;  %v1975_v28 = vadd.f32 %v1925_v10, %v5754_v57  ;;  %v1976_v37 = vadd.f32 %v1926_v15, %v5760_v60  ;;  %v1929_v49 = vld [vmem:[#allocation2 + $0x70] sm:$0xff] }
 0x25a   : > { %2020 = vst [vmem:[#allocation2 + $0x8] sm:$0xff] %v1970_v48  ;;  %2021 = vst [vmem:[#allocation2 + $0xc0] sm:$0xff] %v1971_v7  ;;  %v1977_v52 = vadd.f32 %v1927_v46, %v5766_v63  ;;  %v1928_v45 = vld [vmem:[#allocation2 + $0x38] sm:$0xff]  ;;  %v1930_v56 = vld [vmem:[#allocation2 + $0x68] sm:$0xff]  ;;  %v1979_v51 = vadd.f32 %v1929_v49, %v5778_v5 }
 0x25b   : > { %2022 = vst [vmem:[#allocation2 + $0x98] sm:$0xff] %v1972_v34  ;;  %2023 = vst [vmem:[#allocation2 + $0x30] sm:$0xff] %v1973_v42  ;;  %v1978_v24 = vadd.f32 %v1928_v45, %v5772_v2  ;;  %v1980_v54 = vadd.f32 %v1930_v56, %v5784_v8  ;;  %v1931_v26 = vld [vmem:[#allocation2 + $0x80] sm:$0xff]  ;;  %v1932_v47 = vld [vmem:[#allocation2 + $0xc8] sm:$0xff] }
 0x25c   : > { %2024 = vst [vmem:[#allocation2 + $0x188] sm:$0xff] %v1974_v58  ;;  %v1933_v38 = vld [vmem:[#allocation2 + $0x60] sm:$0xff]  ;;  %2025 = vst [vmem:[#allocation2 + $0x18] sm:$0xff] %v1975_v28  ;;  %v1981_v57 = vadd.f32 %v1931_v26, %v5790_v11  ;;  %v1982_v60 = vadd.f32 %v1932_v47, %v5798_v35  ;;  %v1934_v62 = vld [vmem:[#allocation2 + $0x78] sm:$0xf] }
 0x25d   : > { %2026 = vst [vmem:[#allocation2 + $0x28] sm:$0xff] %v1976_v37  ;;  %2027 = vst [vmem:[#allocation2 + $0x158] sm:$0xff] %v1977_v52  ;;  %v1983_v63 = vadd.f32 %v1933_v38, %v5805_v53  ;;  %v1935_v6 = vld [vmem:[#allocation2 + $0x150] sm:$0xf]  ;;  %v1984_v2 = vadd.f32 %v1934_v62, %v5812_v1 }
 0x25e   : > { %2028 = vst [vmem:[#allocation2 + $0x38] sm:$0xff] %v1978_v24  ;;  %2029 = vst [vmem:[#allocation2 + $0x70] sm:$0xff] %v1979_v51  ;;  %v7007_v5 = vld [vmem:[#allocation19_spill] sm:$0xff] }
 0x25f   : > { %2030 = vst [vmem:[#allocation2 + $0x68] sm:$0xff] %v1980_v54  ;;  %v1985_v8 = vadd.f32 %v1935_v6, %v7007_v5  ;;  %2031 = vst [vmem:[#allocation2 + $0x80] sm:$0xff] %v1981_v57 }
 0x260   : > { %2032 = vst [vmem:[#allocation2 + $0xc8] sm:$0xff] %v1982_v60  ;;  %2033 = vst [vmem:[#allocation2 + $0x60] sm:$0xff] %v1983_v63 }
 0x261   : > { %2034 = vst [vmem:[#allocation2 + $0x78] sm:$0xf] %v1984_v2  ;;  %2035 = vst [vmem:[#allocation2 + $0x150] sm:$0xf] %v1985_v8 }
 0x262 PF: > { %p4428_p2 = scmp.ne.s32.totalorder %s5235_s22, 2 }
 0x264   : > { %2039 = sbr.rel (%p4428_p2) target bundleno = 1176 (0x498), region = 72 }
 0x269   : > { %v2573_v11 = vld [vmem:[#allocation11 + $0x1c0] sm:$0xff]  ;;  %v2574_v53 = vld [vmem:[#allocation11 + $0x1c8] sm:$0xff]  ;;  %vm2113_vm0 = vcmask 1043456  }
 0x26a   : > { %v2577_v35 = vld [vmem:[#allocation11 + $0x1e0] sm:$0xff]  ;;  %v2578_v29 = vld [vmem:[#allocation11 + $0x1e8] sm:$0xff] }
 0x26b   : > { %v4486_v12 = vcombine.high %v2573_v11, %v2577_v35  ;;  %v4485_v3 = vcombine.low %v2573_v11, %v2577_v35  ;;  %v2565_v55 = vld [vmem:[#allocation11 + $0x180] sm:$0xff]  ;;  %v4488_v1 = vcombine.high %v2574_v53, %v2578_v29  ;;  %v4487_v25 = vcombine.low %v2574_v53, %v2578_v29  ;;  %v2566_v43 = vld [vmem:[#allocation11 + $0x188] sm:$0xff] }
 0x26c   : > { %v2569_v19 = vld [vmem:[#allocation11 + $0x1a0] sm:$0xff]  ;;  %v2570_v61 = vld [vmem:[#allocation11 + $0x1a8] sm:$0xff] }
 0x26d   : > { %v4478_v33 = vcombine.high %v2565_v55, %v2569_v19  ;;  %v2557_v30 = vld [vmem:[#allocation11 + $0x140] sm:$0xff]  ;;  %3285 = vmatprep.subr.bf16.mxu0 %v4486_v12  ;;  %v4480_v14 = vcombine.high %v2566_v43, %v2570_v61  ;;  %v2558_v41 = vld [vmem:[#allocation11 + $0x148] sm:$0xff]  ;;  %3446 = vmatprep.subr.bf16.mxu1 %v4488_v1  ;;  %v4477_v0 = vcombine.low %v2565_v55, %v2569_v19 }
 0x26e   : > { %v2561_v17 = vld [vmem:[#allocation11 + $0x160] sm:$0xff]  ;;  %v2562_v59 = vld [vmem:[#allocation11 + $0x168] sm:$0xff]  ;;  %3286 = vmatpush1.bf16.msra.mxu0 %v4485_v3  ;;  %3447 = vmatpush1.bf16.msra.mxu1 %v4487_v25  ;;  %v4479_v4 = vcombine.low %v2566_v43, %v2570_v61  ;;  %v5960_v3 = vld [vmem:[#allocation2 + $0x178] sm:$0xff] }
 0x26f   : > { %3287 = vmatprep.subr.bf16.mxu0 %v4478_v33  ;;  %v4470_v23 = vcombine.high %v2557_v30, %v2561_v17  ;;  %3448 = vmatprep.subr.bf16.mxu1 %v4480_v14  ;;  %v4472_v39 = vcombine.high %v2558_v41, %v2562_v59  ;;  %v2549_v16 = vld [vmem:[#allocation11 + $0x100] sm:$0xff]  ;;  %v2550_v22 = vld [vmem:[#allocation11 + $0x108] sm:$0xff]  ;;  %v4469_v21 = vcombine.low %v2557_v30, %v2561_v17 }
 0x270   : > { %v2553_v18 = vld [vmem:[#allocation11 + $0x120] sm:$0xff]  ;;  %v2554_v27 = vld [vmem:[#allocation11 + $0x128] sm:$0xff]  ;;  %v4471_v50 = vcombine.low %v2558_v41, %v2562_v59 }
 0x271   : > { %v4462_v20 = vcombine.high %v2549_v16, %v2553_v18  ;;  %v4464_v9 = vcombine.high %v2550_v22, %v2554_v27  ;;  %v2541_v32 = vld [vmem:[#allocation11 + $0xc0] sm:$0xff]  ;;  %v2542_v13 = vld [vmem:[#allocation11 + $0xc8] sm:$0xff]  ;;  %v4461_v7 = vcombine.low %v2549_v16, %v2553_v18  ;;  %v4463_v31 = vcombine.low %v2550_v22, %v2554_v27  ;;  %v5978_v16 = vld [vmem:[#allocation2 + $0x118] sm:$0xff] }
 0x272   : > { %3288 = vmatpush1.bf16.msra.mxu0 %v4477_v0  ;;  %3449 = vmatpush1.bf16.msra.mxu1 %v4479_v4  ;;  %v2545_v44 = vld [vmem:[#allocation11 + $0xe0] sm:$0xff]  ;;  %v2546_v48 = vld [vmem:[#allocation11 + $0xe8] sm:$0xff]  ;;  %7011 = vst [vmem:[#allocation23_spill] sm:$0xff] %v5978_v16 }
 0x273   : > { %3289 = vmatprep.subr.bf16.mxu0 %v4470_v23  ;;  %3450 = vmatprep.subr.bf16.mxu1 %v4472_v39  ;;  %v4454_v36 = vcombine.high %v2541_v32, %v2545_v44  ;;  %v4456_v40 = vcombine.high %v2542_v13, %v2546_v48  ;;  %v2533_v34 = vld [vmem:[#allocation11 + $0x80] sm:$0xff]  ;;  %v2534_v58 = vld [vmem:[#allocation11 + $0x88] sm:$0xff]  ;;  %v4453_v15 = vcombine.low %v2541_v32, %v2545_v44 }
 0x274   : > { %v2537_v42 = vld [vmem:[#allocation11 + $0xa0] sm:$0xff]  ;;  %v2538_v10 = vld [vmem:[#allocation11 + $0xa8] sm:$0xff]  ;;  %v4455_v46 = vcombine.low %v2542_v13, %v2546_v48 }
 0x275   : > { %v4446_v28 = vcombine.high %v2533_v34, %v2537_v42  ;;  %v4448_v37 = vcombine.high %v2534_v58, %v2538_v10  ;;  %v2525_v52 = vld [vmem:[#allocation11 + $0x40] sm:$0xff]  ;;  %v2526_v49 = vld [vmem:[#allocation11 + $0x48] sm:$0xff]  ;;  %v4445_v24 = vcombine.low %v2533_v34, %v2537_v42  ;;  %v4447_v54 = vcombine.low %v2534_v58, %v2538_v10 }
 0x276   : > { %3290 = vmatpush1.bf16.msra.mxu0 %v4469_v21  ;;  %3451 = vmatpush1.bf16.msra.mxu1 %v4471_v50  ;;  %v2529_v45 = vld [vmem:[#allocation11 + $0x60] sm:$0xff]  ;;  %v2530_v56 = vld [vmem:[#allocation11 + $0x68] sm:$0xff] }
 0x277   : > { %3291 = vmatprep.subr.bf16.mxu0 %v4462_v20  ;;  %3452 = vmatprep.subr.bf16.mxu1 %v4464_v9  ;;  %v2517_v51 = vld [vmem:[#allocation11] sm:$0xff]  ;;  %v4438_v26 = vcombine.high %v2525_v52, %v2529_v45  ;;  %v5942_v38 = vld [vmem:[#allocation2 + $0xb0] sm:$0xff]  ;;  %v4440_v60 = vcombine.high %v2526_v49, %v2530_v56  ;;  %v4437_v53 = vcombine.low %v2525_v52, %v2529_v45 }
 0x278   : > { %v2521_v47 = vld [vmem:[#allocation11 + $0x20] sm:$0xff]  ;;  %v5944_v57 = vld [vmem:[#allocation2 + $0xd0] sm:$0xff]  ;;  %v4439_v12 = vcombine.low %v2526_v49, %v2530_v56 }
 0x279   : > { %v5946_v63 = vld [vmem:[#allocation2 + $0x10] sm:$0xff]  ;;  %v5948_v62 = vld [vmem:[#allocation2 + $0x48] sm:$0xff]  ;;  %v5950_v6 = vld [vmem:[#allocation2 + $0x160] sm:$0xff]  ;;  %v4430_v55 = vcombine.high %v2517_v51, %v2521_v47  ;;  %v4429_v0 = vcombine.low %v2517_v51, %v2521_v47 }
 0x27a   : > { %3292 = vmatpush1.bf16.msra.mxu0 %v4461_v7  ;;  %3453 = vmatpush1.bf16.msra.mxu1 %v4463_v31  ;;  %v2518_v2 = vld [vmem:[#allocation11 + $0x8] sm:$0xff]  ;;  %v2090_v11 = vadd.f32 %v5946_v63, %v5942_v38  ;;  %v2122_v35 = vadd.f32 %v5948_v62, %v5944_v57  ;;  %v5958_v29 = vld [vmem:[#allocation2 + $0x40] sm:$0xff] }
 0x27b   : > { %3293 = vmatprep.subr.bf16.mxu0 %v4454_v36  ;;  %3454 = vmatprep.subr.bf16.mxu1 %v4456_v40  ;;  %v2522_v5 = vld [vmem:[#allocation11 + $0x28] sm:$0xff]  ;;  %v5962_v19 = vld [vmem:[#allocation11 + $0x3c0] sm:$0xff] }
 0x27c   : > { %v5952_v8 = vld [vmem:[#allocation2 + $0x128] sm:$0xff]  ;;  %v2091_v1 = vadd.f32 %v2090_v11, %v5950_v6  ;;  %v4432_v33 = vcombine.high %v2518_v2, %v2522_v5  ;;  %v5968_v30 = vld [vmem:[#allocation2 + $0x110] sm:$0xff]  ;;  %v4431_v4 = vcombine.low %v2518_v2, %v2522_v5  ;;  %v5994_v13 = vld [vmem:[#allocation2 + $0x100] sm:$0xff] }
 0x27d   : > { %v2123_v25 = vadd.f32 %v2122_v35, %v5952_v8  ;;  %v2641_v43 = vld [vmem:[#allocation11 + $0x3e0] sm:$0xff]  ;;  %7009 = vst [vmem:[#allocation21_spill] sm:$0xff] %v5968_v30  ;;  %v5970_v14 = vld [vmem:[#allocation11 + $0x3c8] sm:$0xff] }
 0x27e   : > { %3294 = vmatpush1.bf16.msra.mxu0 %v4453_v15  ;;  %3455 = vmatpush1.bf16.msra.mxu1 %v4455_v46  ;;  %v5966_v61 = vld [vmem:[#allocation2 + $0x108] sm:$0xff]  ;;  %v2092_v41 = vadd.f32 %v2091_v1, %v5958_v29  ;;  %v5976_v39 = vld [vmem:[#allocation2 + $0x90] sm:$0xff]  ;;  %v4550_v18 = vcombine.high %v5962_v19, %v2641_v43  ;;  %v4549_v34 = vcombine.low %v5962_v19, %v2641_v43  ;;  %v6010_v15 = vld [vmem:[#allocation2 + $0x58] sm:$0xff] }
 0x27f   : > { %3295 = vmatprep.subr.bf16.mxu0 %v4446_v28  ;;  %3456 = vmatprep.subr.bf16.mxu1 %v4448_v37  ;;  %7008 = vst [vmem:[#allocation20_spill] sm:$0xff] %v5966_v61  ;;  %v2642_v17 = vld [vmem:[#allocation11 + $0x3e8] sm:$0xff]  ;;  %v2124_v59 = vadd.f32 %v2123_v25, %v5960_v3  ;;  %v5974_v23 = vld [vmem:[#allocation11 + $0x380] sm:$0xff]  ;;  %7010 = vst [vmem:[#allocation22_spill] sm:$0xff] %v5976_v39  ;;  %v2153_v43 = vmul.f32 %v5942_v38, %v5942_v38 }
 0x280   : > { %v5981_v22 = vld [vmem:[#allocation11 + $0x3a0] sm:$0xff]  ;;  %v5983_v27 = vld [vmem:[#allocation11 + $0x388] sm:$0xff]  ;;  %v2093_v50 = vadd.f32 %v2092_v41, %v5966_v61  ;;  %v4552_v9 = vcombine.high %v5970_v14, %v2642_v17  ;;  %v4551_v42 = vcombine.low %v5970_v14, %v2642_v17  ;;  %7013 = vst [vmem:[#allocation25_spill] sm:$0xff] %v6010_v15  ;;  %v6012_v46 = vld [vmem:[#allocation2 + $0xd8] sm:$0xff] }
 0x281   : > { %v5985_v21 = vld [vmem:[#allocation11 + $0x3a8] sm:$0xff]  ;;  %v2125_v20 = vadd.f32 %v2124_v59, %v5968_v30  ;;  %v5990_v32 = vld [vmem:[#allocation11 + $0x340] sm:$0xff]  ;;  %v4542_v58 = vcombine.high %v5974_v23, %v5981_v22  ;;  %7014 = vst [vmem:[#allocation26_spill] sm:$0xff] %v6012_v46  ;;  %v4541_v28 = vcombine.low %v5974_v23, %v5981_v22  ;;  %v6052_v25 = vld [vmem:[#allocation2 + $0x138] sm:$0xff]  ;;  %v2161_v23 = vmul.f32 %v5966_v61, %v5966_v61 }
 0x282   : > { %3296 = vmatpush1.bf16.msra.mxu0 %v4445_v24  ;;  %3457 = vmatpush1.bf16.msra.mxu1 %v4447_v54  ;;  %v5992_v44 = vld [vmem:[#allocation2 + $0x148] sm:$0xff]  ;;  %v2094_v36 = vadd.f32 %v2093_v50, %v5976_v39  ;;  %v4544_v24 = vcombine.high %v5983_v27, %v5985_v21  ;;  %v4543_v51 = vcombine.low %v5983_v27, %v5985_v21  ;;  %v6032_v47 = vld [vmem:[#allocation2 + $0x180] sm:$0xff]  ;;  %v6114_v1 = vld [vmem:[#allocation2 + $0xf8] sm:$0xff] }
 0x283   : > { %3297 = vmatprep.subr.bf16.mxu0 %v4438_v26  ;;  %3458 = vmatprep.subr.bf16.mxu1 %v4440_v60  ;;  %7012 = vst [vmem:[#allocation24_spill] sm:$0xff] %v5992_v44  ;;  %v5996_v48 = vld [vmem:[#allocation11 + $0x360] sm:$0xff]  ;;  %v5998_v7 = vld [vmem:[#allocation11 + $0x348] sm:$0xff]  ;;  %v2126_v40 = vadd.f32 %v2125_v20, %v5978_v16  ;;  %v2154_v21 = vmul.f32 %v5944_v57, %v5944_v57 }
 0x284   : > { %v6000_v31 = vld [vmem:[#allocation11 + $0x368] sm:$0xff]  ;;  %v6008_v10 = vld [vmem:[#allocation11 + $0x300] sm:$0xff]  ;;  %v2095_v49 = vadd.f32 %v2094_v36, %v5992_v44  ;;  %v4534_v54 = vcombine.high %v5990_v32, %v5996_v48  ;;  %v4533_v26 = vcombine.low %v5990_v32, %v5996_v48  ;;  %v2156_v50 = vmul.f32 %v5948_v62, %v5948_v62 }
 0x285   : > { %v6016_v37 = vld [vmem:[#allocation11 + $0x320] sm:$0xff]  ;;  %v6018_v52 = vld [vmem:[#allocation11 + $0x308] sm:$0xff]  ;;  %v2127_v56 = vadd.f32 %v2126_v40, %v5994_v13  ;;  %v4536_v2 = vcombine.high %v5998_v7, %v6000_v31 }
 0x286   : > { %3298 = vmatpush1.bf16.msra.mxu0 %v4437_v53  ;;  %3459 = vmatpush1.bf16.msra.mxu1 %v4439_v12  ;;  %v6020_v45 = vld [vmem:[#allocation11 + $0x328] sm:$0xff]  ;;  %v6040_v11 = vld [vmem:[#allocation11 + $0x2c0] sm:$0xff]  ;;  %v2096_v53 = vadd.f32 %v2095_v49, %v6010_v15  ;;  %v6106_v49 = vld [vmem:[#allocation11 + $0x1d8] sm:$0xff]  ;;  %v7020_v61 = vcombine.low %v6008_v10, %v6016_v37 }
 0x287   : > { %3299 = vmatprep.subr.bf16.mxu0 %v4430_v55  ;;  %3460 = vmatprep.subr.bf16.mxu1 %v4432_v33  ;;  %v6034_v60 = vld [vmem:[#allocation2 + $0x130] sm:$0xff]  ;;  %v6042_v35 = vld [vmem:[#allocation11 + $0x2e0] sm:$0xff]  ;;  %v2128_v12 = vadd.f32 %v2127_v56, %v6012_v46  ;;  %v4526_v55 = vcombine.high %v6008_v10, %v6016_v37  ;;  %v6108_v56 = vld [vmem:[#allocation11 + $0x1f8] sm:$0xff] }
 0x288   : > { %v6054_v33 = vld [vmem:[#allocation2 + $0x120] sm:$0xff]  ;;  %v6058_v14 = vld [vmem:[#allocation11 + $0x2c8] sm:$0xff]  ;;  %v2097_v41 = vadd.f32 %v2096_v53, %v6032_v47 }
 0x289   : > { %v6060_v17 = vld [vmem:[#allocation11 + $0x2e8] sm:$0xff]  ;;  %v2129_v59 = vadd.f32 %v2128_v12, %v6034_v60  ;;  %v6072_v22 = vld [vmem:[#allocation2 + $0xe0] sm:$0xff]  ;;  %v2158_v12 = vmul.f32 %v5952_v8, %v5952_v8 }
 0x28a   : > { %3300 = vmatpush1.bf16.msra.mxu0 %v4429_v0  ;;  %3461 = vmatpush1.bf16.msra.mxu1 %v4431_v4  ;;  %v2155_v0 = vmul.f32 %v5946_v63, %v5946_v63  ;;  %7015 = vst [vmem:[#allocation27_spill] sm:$0xff] %v6072_v22  ;;  %v6074_v27 = vld [vmem:[#allocation2 + $0xa8] sm:$0xff]  ;;  %v2098_v36 = vadd.f32 %v2097_v41, %v6052_v25 }
 0x28b   : > { %3301 = vmatprep.subr.bf16.mxu0 %v4550_v18  ;;  %3462 = vmatprep.subr.bf16.mxu1 %v4552_v9  ;;  %v6070_v18 = vld [vmem:[#allocation11 + $0x280] sm:$0xff]  ;;  %7016 = vst [vmem:[#allocation28_spill] sm:$0xff] %v6074_v27  ;;  %v2130_v40 = vadd.f32 %v2129_v59, %v6054_v33  ;;  %v2159_v41 = vmul.f32 %v5958_v29, %v5958_v29 }
 0x28c   : > { %v6082_v9 = vld [vmem:[#allocation11 + $0x2a0] sm:$0xff]  ;;  %v2203_v20 = vadd.f32 %v2155_v0, %v2153_v43  ;;  %v6120_v43 = vld [vmem:[#allocation11 + $0x288] sm:$0xff] }
 0x28d   : > { %v6098_v53 = vld [vmem:[#allocation2 + $0x168] sm:$0xff]  ;;  %v2131_v59 = vadd.f32 %v2130_v40, %v6074_v27 }
 0x28e   : > { %3302 = vmatpush2.bf16.msra.mxu0 %v4549_v34  ;;  %3463 = vmatpush2.bf16.msra.mxu1 %v4551_v42  ;;  %v2157_v34 = vmul.f32 %v5950_v6, %v5950_v6  ;;  %v6088_v42 = vld [vmem:[#allocation11 + $0x1d0] sm:$0xff]  ;;  %v6112_v4 = vld [vmem:[#allocation2 + $0xe8] sm:$0xff] }
 0x28f   : > { %3303 = vmatprep.subr.bf16.mxu0 %v4542_v58  ;;  %3464 = vmatprep.subr.bf16.mxu1 %v4544_v24  ;;  %v6090_v58 = vld [vmem:[#allocation11 + $0x1f0] sm:$0xff]  ;;  %v6122_v0 = vld [vmem:[#allocation11 + $0x2a8] sm:$0xff]  ;;  %v2132_v40 = vadd.f32 %v2131_v59, %v6098_v53  ;;  %v6153_v59 = vld [vmem:[#allocation11 + $0x240] sm:$0xff] }
 0x290   : > { %v6096_v24 = vld [vmem:[#allocation2 + $0xb8] sm:$0xff]  ;;  %v2204_v19 = vadd.f32 %v2203_v20, %v2157_v34  ;;  %v7017_v20 = vcombine.low %v5998_v7, %v6000_v31  ;;  %v7018_v34 = vcombine.high %v6018_v52, %v6020_v45  ;;  %v6155_v7 = vld [vmem:[#allocation2 + $0xa0] sm:$0xff]  ;;  %v6157_v31 = vld [vmem:[#allocation2 + $0x170] sm:$0xff] }
 0x291   : > { %v2133_v48 = vadd.f32 %v2132_v40, %v6114_v1  ;;  %7019 = vst [vmem:[#allocation29_spill] sm:$0xff] %v6157_v31  ;;  %v6165_v40 = vld [vmem:[#allocation11 + $0x268] sm:$0xff] }
 0x292   : > { %3304 = vmatpush2.bf16.msra.mxu0 %v4541_v28  ;;  %3465 = vmatpush2.bf16.msra.mxu1 %v4543_v51  ;;  %v2099_v28 = vadd.f32 %v2098_v36, %v6072_v22  ;;  %v2160_v51 = vmul.f32 %v5960_v3, %v5960_v3  ;;  %v2162_v36 = vmul.f32 %v5968_v30, %v5968_v30 }
 0x293   : > { %3305 = vmatprep.subr.bf16.mxu0 %v4534_v54  ;;  %3466 = vmatprep.subr.bf16.mxu1 %v4536_v2  ;;  %v2234_v54 = vadd.f32 %v2156_v50, %v2154_v21  ;;  %v6131_v21 = vld [vmem:[#allocation2 + $0x20] sm:$0xff]  ;;  %v6133_v50 = vld [vmem:[#allocation2 + $0x88] sm:$0xff] }
 0x294   : > { %v2100_v2 = vadd.f32 %v2099_v28, %v6096_v24  ;;  %v2163_v28 = vmul.f32 %v5976_v39, %v5976_v39 }
 0x295   : > { %v2235_v5 = vadd.f32 %v2234_v54, %v2158_v12  ;;  %v4512_v12 = vcombine.high %v6120_v43, %v6122_v0  ;;  %v2165_v54 = vmul.f32 %v5992_v44, %v5992_v44 }
 0x296   : > { %3306 = vmatpush2.bf16.msra.mxu0 %v4533_v26  ;;  %3467 = vmatpush2.bf16.msra.mxu1 %v7017_v20  ;;  %v2101_v32 = vadd.f32 %v2100_v2, %v6112_v4  ;;  %v2205_v26 = vadd.f32 %v2204_v19, %v2159_v41  ;;  %v6161_v41 = vld [vmem:[#allocation11 + $0x260] sm:$0xff]  ;;  %v6163_v2 = vld [vmem:[#allocation11 + $0x248] sm:$0xff] }
 0x297   : > { %3307 = vmatprep.subr.bf16.mxu0 %v4526_v55  ;;  %3468 = vmatprep.subr.bf16.mxu1 %v7018_v34  ;;  %v2164_v55 = vmul.f32 %v5978_v16, %v5978_v16  ;;  %v2236_v19 = vadd.f32 %v2235_v5, %v2160_v51  ;;  %v2134_v34 = vadd.f32 %v2133_v48, %v6133_v50  ;;  %v6176_v51 = vld [vmem:[#allocation2 + $0xf0] sm:$0xff]  ;;  %v6178_v16 = vld [vmem:[#allocation2 + $0x140] sm:$0xff] }
 0x298   : > { %v2102_v20 = vadd.f32 %v2101_v32, %v6131_v21  ;;  %v2206_v39 = vadd.f32 %v2205_v26, %v2161_v23  ;;  %v4511_v5 = vcombine.low %v6120_v43, %v6122_v0  ;;  %7021 = vst [vmem:[#allocation30_spill] sm:$0xff] %v6178_v16  ;;  %v2166_v32 = vmul.f32 %v5994_v13, %v5994_v13  ;;  %v6201_v26 = vld [vmem:[#allocation2] sm:$0xff] }
 0x299   : > { %v2167_v48 = vmul.f32 %v6010_v15, %v6010_v15  ;;  %v2237_v30 = vadd.f32 %v2236_v19, %v2162_v36  ;;  %v7022_v23 = vcombine.low %v6018_v52, %v6020_v45  ;;  %v2135_v37 = vadd.f32 %v2134_v34, %v6157_v31  ;;  %v6199_v45 = vld [vmem:[#allocation2 + $0x50] sm:$0xff]  ;;  %v6205_v34 = vld [vmem:[#allocation11 + $0x200] sm:$0xff] }
 0x29a   : > { %3308 = vmatpush2.bf16.msra.mxu0 %v7020_v61  ;;  %v7023_v61 = vcombine.high %v6040_v11, %v6042_v35  ;;  %v2103_v10 = vadd.f32 %v2102_v20, %v6155_v7  ;;  %v2207_v43 = vadd.f32 %v2206_v39, %v2163_v28  ;;  %v7024_v0 = vcombine.high %v6058_v14, %v6060_v17  ;;  %v6207_v39 = vld [vmem:[#allocation11 + $0x220] sm:$0xff] }
 0x29b   : > { %3469 = vmatpush2.bf16.msra.mxu1 %v7022_v23  ;;  %v4502_v36 = vcombine.high %v6153_v59, %v6161_v41  ;;  %v4504_v52 = vcombine.high %v6163_v2, %v6165_v40  ;;  %v2168_v19 = vmul.f32 %v6012_v46, %v6012_v46  ;;  %v2238_v20 = vadd.f32 %v2237_v30, %v2164_v55  ;;  %v6218_v30 = vld [vmem:[#allocation2 + $0x8] sm:$0xff]  ;;  %v6220_v55 = vld [vmem:[#allocation2 + $0xc0] sm:$0xff] }
 0x29c   : > { %3309 = vmatprep.subr.bf16.mxu0 %v7023_v61  ;;  %3470 = vmatprep.subr.bf16.mxu1 %v7024_v0  ;;  %v2104_v28 = vadd.f32 %v2103_v10, %v6176_v51  ;;  %v2136_v23 = vadd.f32 %v2135_v37, %v6178_v16  ;;  %v2169_v61 = vmul.f32 %v6032_v47, %v6032_v47 }
 0x29d   : > { %v2208_v0 = vadd.f32 %v2207_v43, %v2165_v54  ;;  %v7025_v15 = vcombine.low %v6040_v11, %v6042_v35  ;;  %v4501_v44 = vcombine.low %v6153_v59, %v6161_v41  ;;  %7026 = vst [vmem:[#allocation31_spill] sm:$0xff] %v6220_v55  ;;  %v2170_v10 = vmul.f32 %v6034_v60, %v6034_v60  ;;  %v6238_v43 = vld [vmem:[#allocation2 + $0x98] sm:$0xff] }
 0x29e   : > { %v2171_v37 = vmul.f32 %v6052_v25, %v6052_v25  ;;  %v2239_v46 = vadd.f32 %v2238_v20, %v2166_v32  ;;  %v7027_v54 = vcombine.low %v6058_v14, %v6060_v17  ;;  %v2105_v11 = vadd.f32 %v2104_v28, %v6199_v45  ;;  %v6240_v14 = vld [vmem:[#allocation2 + $0x30] sm:$0xff] }
 0x29f   : > { %3310 = vmatpush2.bf16.msra.mxu0 %v7025_v15  ;;  %v7028_v15 = vcombine.high %v6070_v18, %v6082_v9  ;;  %v2137_v35 = vadd.f32 %v2136_v23, %v6201_v26  ;;  %v2209_v59 = vadd.f32 %v2208_v0, %v2167_v48  ;;  %v4503_v41 = vcombine.low %v6163_v2, %v6165_v40  ;;  %v2586_v28 = vld [vmem:[#allocation11 + $0x228] sm:$0xff] }
 0x2a0   : > { %3471 = vmatpush2.bf16.msra.mxu1 %v7027_v54  ;;  %v4494_v32 = vcombine.high %v6205_v34, %v6207_v39  ;;  %v2172_v17 = vmul.f32 %v6054_v33, %v6054_v33  ;;  %v2240_v20 = vadd.f32 %v2239_v46, %v2168_v19  ;;  %v2582_v54 = vld [vmem:[#allocation11 + $0x208] sm:$0xff]  ;;  %v2106_v23 = vadd.f32 %v2105_v11, %v6218_v30  ;;  %v6255_v46 = vld [vmem:[#allocation2 + $0x18] sm:$0xff] }
 0x2a1   : > { %3311 = vmatprep.subr.bf16.mxu0 %v7028_v15  ;;  %3472 = vmatprep.subr.bf16.mxu1 %v4512_v12  ;;  %v2138_v12 = vadd.f32 %v2137_v35, %v6220_v55  ;;  %v2173_v2 = vmul.f32 %v6072_v22, %v6072_v22  ;;  %v2210_v40 = vadd.f32 %v2209_v59, %v2169_v61  ;;  %v6253_v15 = vld [vmem:[#allocation2 + $0x188] sm:$0xff] }
 0x2a2   : > { %v7029_v48 = vcombine.low %v6070_v18, %v6082_v9  ;;  %v4493_v0 = vcombine.low %v6205_v34, %v6207_v39  ;;  %v2174_v19 = vmul.f32 %v6074_v27, %v6074_v27  ;;  %v2175_v11 = vmul.f32 %v6096_v24, %v6096_v24  ;;  %v6263_v59 = vld [vmem:[#allocation2 + $0x28] sm:$0xff] }
 0x2a3   : > { %v2241_v35 = vadd.f32 %v2240_v20, %v2170_v10  ;;  %v2107_v61 = vadd.f32 %v2106_v23, %v6238_v43  ;;  %v2139_v18 = vadd.f32 %v2138_v12, %v6240_v14  ;;  %v2211_v9 = vadd.f32 %v2210_v40, %v2171_v37  ;;  %7030 = vst [vmem:[#allocation32_spill] sm:$0xff] %v6263_v59  ;;  %v6275_v37 = vld [vmem:[#allocation2 + $0x70] sm:$0xff]  ;;  %v6287_v40 = vld [vmem:[#allocation2 + $0x80] sm:$0xff] }
 0x2a4   : > { %3312 = vmatpush2.bf16.msra.mxu0 %v7029_v48  ;;  %3473 = vmatpush2.bf16.msra.mxu1 %v4511_v5  ;;  %v4496_v34 = vcombine.high %v2582_v54, %v2586_v28  ;;  %v4495_v39 = vcombine.low %v2582_v54, %v2586_v28  ;;  %v6265_v48 = vld [vmem:[#allocation2 + $0x158] sm:$0xff]  ;;  %v2176_v22 = vmul.f32 %v6098_v53, %v6098_v53 }
 0x2a5   : > { %3313 = vmatprep.subr.bf16.mxu0 %v4502_v36  ;;  %3474 = vmatprep.subr.bf16.mxu1 %v4504_v52  ;;  %7031 = vst [vmem:[#allocation33_spill] sm:$0xff] %v6265_v48  ;;  %v2242_v27 = vadd.f32 %v2241_v35, %v2172_v17  ;;  %v2108_v10 = vadd.f32 %v2107_v61, %v6253_v15  ;;  %v6273_v52 = vld [vmem:[#allocation2 + $0x38] sm:$0xff]  ;;  %7033 = vst [vmem:[#allocation35_spill] sm:$0xff] %v6275_v37 }
 0x2a6   : > { %v2140_v5 = vadd.f32 %v2139_v18, %v6255_v46  ;;  %v2177_v36 = vmul.f32 %v6112_v4, %v6112_v4  ;;  %v2212_v20 = vadd.f32 %v2211_v9, %v2173_v2  ;;  %7032 = vst [vmem:[#allocation34_spill] sm:$0xff] %v6273_v52  ;;  %v2178_v54 = vmul.f32 %v6114_v1, %v6114_v1  ;;  %v6285_v2 = vld [vmem:[#allocation2 + $0x68] sm:$0xff] }
 0x2a7   : > { %v2179_v28 = vmul.f32 %v6131_v21, %v6131_v21  ;;  %v2243_v17 = vadd.f32 %v2242_v27, %v2174_v19  ;;  %v4490_v23 = vcombine.high %v6088_v42, %v6090_v58  ;;  %v2109_v4 = vadd.f32 %v2108_v10, %v6263_v59  ;;  %7034 = vst [vmem:[#allocation36_spill] sm:$0xff] %v6285_v2  ;;  %v6301_v9 = vld [vmem:[#allocation2 + $0xc8] sm:$0xff] }
 0x2a8   : > { %3314 = vmatpush2.bf16.msra.mxu0 %v4501_v44  ;;  %3475 = vmatpush2.bf16.msra.mxu1 %v4503_v41  ;;  %v2141_v44 = vadd.f32 %v2140_v5, %v6265_v48  ;;  %v2213_v12 = vadd.f32 %v2212_v20, %v2175_v11  ;;  %7035 = vst [vmem:[#allocation37_spill] sm:$0xff] %v6287_v40  ;;  %v6293_v41 = vld [vmem:[#allocation2 + $0x78] sm:$0xf]  ;;  %7038 = vst [vmem:[#allocation40_spill] sm:$0xff] %v6301_v9 }
 0x2a9   : > { %3315 = vmatprep.subr.bf16.mxu0 %v4494_v32  ;;  %3476 = vmatprep.subr.bf16.mxu1 %v4496_v34  ;;  %v2180_v21 = vmul.f32 %v6133_v50, %v6133_v50  ;;  %v2244_v27 = vadd.f32 %v2243_v17, %v2176_v22  ;;  %v4492_v19 = vcombine.high %v6106_v49, %v6108_v56  ;;  %v6295_v32 = vld [vmem:[#allocation2 + $0x150] sm:$0xf]  ;;  %v6303_v34 = vld [vmem:[#allocation2 + $0x60] sm:$0xff] }
 0x2aa   : > { %7036 = vst [vmem:[#allocation38_spill] sm:$0xff] %v6293_v41  ;;  %7037 = vst [vmem:[#allocation39_spill] sm:$0xff] %v6295_v32  ;;  %v2110_v35 = vadd.f32 %v2109_v4, %v6273_v52  ;;  %v2142_v11 = vadd.f32 %v2141_v44, %v6275_v37  ;;  %v2181_v61 = vmul.f32 %v6155_v7, %v6155_v7  ;;  %v2114_v7 = vsel %vm2113_vm0, %v6293_v41, 0.0 }
 0x2ab   : > { %v2214_v18 = vadd.f32 %v2213_v12, %v2177_v36  ;;  %7039 = vst [vmem:[#allocation41_spill] sm:$0xff] %v6303_v34  ;;  %v2182_v22 = vmul.f32 %v6157_v31, %v6157_v31  ;;  %v2183_v10 = vmul.f32 %v6176_v51, %v6176_v51  ;;  %v2245_v5 = vadd.f32 %v2244_v27, %v2178_v54 }
 0x2ac   : > { %3316 = vmatpush2.bf16.msra.mxu0 %v4493_v0  ;;  %3477 = vmatpush2.bf16.msra.mxu1 %v4495_v39  ;;  %v2111_v20 = vadd.f32 %v2110_v35, %v6285_v2  ;;  %v2143_v17 = vadd.f32 %v2142_v11, %v6287_v40  ;;  %v2145_v0 = vsel %vm2113_vm0, %v6295_v32, 0.0  ;;  %v2184_v36 = vmul.f32 %v6178_v16, %v6178_v16 }
 0x2ad   : > { %v2215_v4 = vadd.f32 %v2214_v18, %v2179_v28  ;;  %3607 = vmatprep.subr.bf16.mxu0 %v4490_v23  ;;  %v2246_v44 = vadd.f32 %v2245_v5, %v2180_v21  ;;  %3768 = vmatprep.subr.bf16.mxu1 %v4492_v19  ;;  %v2185_v54 = vmul.f32 %v6199_v45, %v6199_v45 }
 0x2ae   : > { %v2112_v51 = vadd.f32 %v2111_v20, %v6301_v9  ;;  %v2144_v39 = vadd.f32 %v2143_v17, %v6303_v34  ;;  %v2186_v23 = vmul.f32 %v6201_v26, %v6201_v26  ;;  %v2187_v11 = vmul.f32 %v6218_v30, %v6218_v30 }
 0x2af   : > { %v2216_v28 = vadd.f32 %v2215_v4, %v2181_v61  ;;  %v2247_v12 = vadd.f32 %v2246_v44, %v2182_v22  ;;  %v2188_v21 = vmul.f32 %v6220_v55, %v6220_v55  ;;  %v2189_v20 = vmul.f32 %v6238_v43, %v6238_v43 }
 0x2b0   : > { %v2115_v27 = vadd.f32 %v2114_v7, %v2112_v51  ;;  %v2146_v35 = vadd.f32 %v2145_v0, %v2144_v39  ;;  %v2190_v26 = vmul.f32 %v6240_v14, %v6240_v14  ;;  %v2191_v4 = vmul.f32 %v6253_v15, %v6253_v15 }
 0x2b1   : > { %v2217_v18 = vadd.f32 %v2216_v28, %v2183_v10  ;;  %v2248_v19 = vadd.f32 %v2247_v12, %v2184_v36  ;;  %v2192_v10 = vmul.f32 %v6255_v46, %v6255_v46  ;;  %v2193_v36 = vmul.f32 %v6263_v59, %v6263_v59  ;;  %v6446_v59 = vld [vmem:[#allocation11 + $0x70] sm:$0xff] }
 0x2b2   : > { %v2116_v5 = vrot.slane %v2115_v27, 4  ;;  %v2147_v61 = vrot.slane %v2146_v35, 4  ;;  %7046 = vst [vmem:[#allocation48_spill] sm:$0xff] %v6446_v59 }
 0x2b3   : > { %v2218_v17 = vadd.f32 %v2217_v18, %v2185_v54  ;;  %v2249_v22 = vadd.f32 %v2248_v19, %v2186_v23  ;;  %v2194_v54 = vmul.f32 %v6265_v48, %v6265_v48  ;;  %v2195_v23 = vmul.f32 %v6273_v52, %v6273_v52 }
 0x2b4   : > { %v2117_v44 = vadd.f32 %v2116_v5, %v2115_v27  ;;  %v2148_v39 = vadd.f32 %v2147_v61, %v2146_v35  ;;  %v2197_v27 = vmul.f32 %v6285_v2, %v6285_v2  ;;  %v2198_v35 = vmul.f32 %v6287_v40, %v6287_v40  ;;  %v6456_v40 = vld [vmem:[#allocation11 + $0x58] sm:$0xff] }
 0x2b5   : > { %v2219_v7 = vadd.f32 %v2218_v17, %v2187_v11  ;;  %v2250_v0 = vadd.f32 %v2249_v22, %v2188_v21  ;;  %v2196_v11 = vmul.f32 %v6275_v37, %v6275_v37  ;;  %v2199_v61 = vmul.f32 %v6301_v9, %v6301_v9  ;;  %7047 = vst [vmem:[#allocation49_spill] sm:$0xff] %v6456_v40  ;;  %v6466_v37 = vld [vmem:[#allocation11 + $0x10] sm:$0xff] }
 0x2b6   : > { %v2118_v19 = vrot.slane %v2117_v44, 2  ;;  %v2149_v5 = vrot.slane %v2148_v39, 2 }
 0x2b7   : > { %v2220_v51 = vadd.f32 %v2219_v7, %v2189_v20  ;;  %v2251_v28 = vadd.f32 %v2250_v0, %v2190_v26  ;;  %v2201_v20 = vmul.f32 %v6293_v41, %v6293_v41  ;;  %v2202_v26 = vmul.f32 %v6295_v32, %v6295_v32 }
 0x2b9   : > { %v2221_v12 = vadd.f32 %v2220_v51, %v2191_v4  ;;  %v2252_v18 = vadd.f32 %v2251_v28, %v2192_v10  ;;  %v2200_v4 = vmul.f32 %v6303_v34, %v6303_v34  ;;  %v2119_v10 = vadd.f32 %v2118_v19, %v2117_v44  ;;  %v6458_v34 = vld [vmem:[#allocation11 + $0x78] sm:$0xff] }
 0x2ba   : > { %v2226_v51 = vsel %vm2113_vm0, %v2201_v20, 0.0  ;;  %7048 = vst [vmem:[#allocation50_spill] sm:$0xff] %v6458_v34  ;;  %v6508_v34 = vld [vmem:[#allocation11 + $0x18] sm:$0xff] }
 0x2bb   : > { %v2222_v21 = vadd.f32 %v2221_v12, %v2193_v36  ;;  %v2253_v17 = vadd.f32 %v2252_v18, %v2194_v54  ;;  %v2150_v36 = vadd.f32 %v2149_v5, %v2148_v39  ;;  %v2257_v54 = vsel %vm2113_vm0, %v2202_v26, 0.0 }
 0x2bc   : > { %v2120_v55 = vrot.slane %v2119_v10, 1 }
 0x2bd   : > { %v2223_v22 = vadd.f32 %v2222_v21, %v2195_v23  ;;  %v2254_v7 = vadd.f32 %v2253_v17, %v2196_v11  ;;  %v2151_v31 = vrot.slane %v2150_v36, 1 }
 0x2be   : > { %v2121_v21 = vadd.f32 %v2120_v55, %v2119_v10 }
 0x2bf   : > { %v2224_v0 = vadd.f32 %v2223_v22, %v2197_v27  ;;  %v2255_v28 = vadd.f32 %v2254_v7, %v2198_v35  ;;  %v2152_v2 = vadd.f32 %v2151_v31, %v2150_v36  ;;  %v5182_v31 = vmov 1966171168  }
 0x2c0   : > { %v2265_v27 = vmul.f32 0.0051020407, %v2121_v21 }
 0x2c1   : > { %v2225_v12 = vadd.f32 %v2224_v0, %v2199_v61  ;;  %v2256_v18 = vadd.f32 %v2255_v28, %v2200_v4  ;;  %v2266_v35 = vmul.f32 0.0051020407, %v2152_v2 }
 0x2c2   : > { %v2269_v26 = vmul.f32 %v2265_v27, %v2265_v27 }
 0x2c3   : > { %v2227_v16 = vadd.f32 %v2226_v51, %v2225_v12  ;;  %v2258_v41 = vadd.f32 %v2257_v54, %v2256_v18  ;;  %v2270_v4 = vmul.f32 %v2266_v35, %v2266_v35 }
 0x2c5   : > { %v2228_v32 = vrot.slane %v2227_v16, 4  ;;  %v2259_v23 = vrot.slane %v2258_v41, 4 }
 0x2c7   : > { %v2229_v9 = vadd.f32 %v2228_v32, %v2227_v16  ;;  %v2260_v11 = vadd.f32 %v2259_v23, %v2258_v41  ;;  %v2282_v41 = vunpack.c.l.s4 %v5182_v31  ;;  %v2284_v32 = vlaneseq  ;;  %v2277_v23 = vld [vmem:[#allocation8] sm:$0x3] }
 0x2c8   : > { %v6392_v31 = vld [vmem:[#allocation11 + $0x118] sm:$0xff] }
 0x2c9   : > { %v2230_v44 = vrot.slane %v2229_v9, 2  ;;  %v2261_v19 = vrot.slane %v2260_v11, 2  ;;  %v6357_v10 = vshrl.u32 %v2284_v32, 7 }
 0x2cb   : > { %v2231_v39 = vadd.f32 %v2230_v44, %v2229_v9  ;;  %v2262_v5 = vadd.f32 %v2261_v19, %v2260_v11  ;;  %v2283_v9 = vunpack.c.0.s8 %v2282_v41  ;;  %v6965_v11 = vsub.s32 0, %v6357_v10 }
 0x2cc   : > { %v6964_v44 = vsub.s32 1, %v6357_v10 }
 0x2cd   : > { %v2232_v20 = vrot.slane %v2231_v39, 1  ;;  %v2263_v17 = vrot.slane %v2262_v5, 1  ;;  %v2286_v36 = vsub.s32 %v2283_v9, %v6357_v10  ;;  %v6400_v9 = vld [vmem:[#allocation11 + $0xd0] sm:$0xff] }
 0x2cf   : > { %v2233_v61 = vadd.f32 %v2232_v20, %v2231_v39  ;;  %v2264_v22 = vadd.f32 %v2263_v17, %v2262_v5  ;;  %v6370_v20 = vld [vmem:[#allocation11 + $0x190] sm:$0xff] }
 0x2d0   : > { %v6372_v17 = vld [vmem:[#allocation11 + $0x1b0] sm:$0xff] }
 0x2d1   : > { %v2267_v7 = vmul.f32 0.0051020407, %v2233_v61  ;;  %v2268_v0 = vmul.f32 0.0051020407, %v2264_v22  ;;  %v6374_v61 = vld [vmem:[#allocation11 + $0x198] sm:$0xff]  ;;  %v6378_v22 = vld [vmem:[#allocation11 + $0x150] sm:$0xff] }
 0x2d3   : > { %v2271_v51 = vsub.f32 %v2267_v7, %v2269_v26  ;;  %v2272_v28 = vsub.f32 %v2268_v0, %v2270_v4  ;;  %v6376_v26 = vld [vmem:[#allocation11 + $0x1b8] sm:$0xff]  ;;  %v6382_v0 = vld [vmem:[#allocation11 + $0x170] sm:$0xff] }
 0x2d5   : > { %v2273_v55 = vadd.f32 1e-05, %v2271_v51  ;;  %v2274_v16 = vadd.f32 1e-05, %v2272_v28  ;;  %v6384_v51 = vld [vmem:[#allocation11 + $0x158] sm:$0xff] }
 0x2d6   : > { %v6386_v28 = vld [vmem:[#allocation11 + $0x178] sm:$0xff] }
 0x2d7   : > { %4951 = vrsqrt.f32 %v2273_v55  ;;  %v6388_v55 = vld [vmem:[#allocation11 + $0x110] sm:$0xff] }
 0x2d8   : > { %4953 = vrsqrt.f32 %v2274_v16  ;;  %v6390_v16 = vld [vmem:[#allocation11 + $0x130] sm:$0xff] }
 0x2e4   : > { %v4952_v2 = vpop.eup %4951 }
 0x2e5   : > { %v4954_v12 = vpop.eup %4953 }
 0x2e6   : > { %v2280_v54 = vcombine.low %v4952_v2, %v4954_v12  ;;  %v6402_v2 = vld [vmem:[#allocation11 + $0xf0] sm:$0xff] }
 0x2e8   : > { %v2287_v18 = vrot.slane %v2280_v54, %v2286_v36 }
 0x2ea   : > { %v2294_v21 = vrot.slane %v2287_v18, %v2286_v36  ;;  %v6424_v18 = vld [vmem:[#allocation11 + $0xb0] sm:$0xff] }
 0x2eb   : > { %7042 = vst [vmem:[#allocation44_spill] sm:$0xff] %v6424_v18 }
 0x2ec   : > { %v2296_v19 = vmul.f32 %v2294_v21, %v2277_v23  ;;  %v6412_v21 = vld [vmem:[#allocation11 + $0xd8] sm:$0xff] }
 0x2ed   : > { %v6428_v23 = vld [vmem:[#allocation11 + $0xb8] sm:$0xff] }
 0x2ee   : > { %v6364_v39 = vrot.slane %v2296_v19, %v6965_v11  ;;  %v6368_v5 = vrot.slane %v2296_v19, %v6964_v44  ;;  %v6414_v19 = vld [vmem:[#allocation11 + $0xf8] sm:$0xff]  ;;  %7044 = vst [vmem:[#allocation46_spill] sm:$0xff] %v6428_v23  ;;  %v6444_v11 = vld [vmem:[#allocation11 + $0x50] sm:$0xff]  ;;  %v7052_v23 = vld [vmem:[#allocation23_spill] sm:$0xff] }
 0x2ef   : > { %7040 = vst [vmem:[#allocation42_spill] sm:$0xff] %v6414_v19  ;;  %v2297_v44 = vld [vmem:[#allocation9] sm:$0x3]  ;;  %7045 = vst [vmem:[#allocation47_spill] sm:$0xff] %v6444_v11 }
 0x2f0   : > { %v2309_v4 = vmul.f32 %v6364_v39, %v2265_v27  ;;  %v2310_v7 = vmul.f32 %v6368_v5, %v2266_v35  ;;  %v6398_v35 = vld [vmem:[#allocation11 + $0x138] sm:$0xff]  ;;  %v2333_v32 = vmul.f32 %v6368_v5, %v5948_v62  ;;  %v2332_v12 = vmul.f32 %v6364_v39, %v5946_v63 }
 0x2f1   : > { %v6426_v27 = vld [vmem:[#allocation11 + $0x98] sm:$0xff]  ;;  %v2337_v18 = vmul.f32 %v6368_v5, %v5960_v3  ;;  %v7050_v63 = vsub.s32 1, %v6357_v10  ;;  %v2336_v62 = vmul.f32 %v6364_v39, %v5958_v29 }
 0x2f2   : > { %v2313_v41 = vcombine.low %v2309_v4, %v2310_v7  ;;  %v6416_v4 = vld [vmem:[#allocation11 + $0x90] sm:$0xff]  ;;  %7043 = vst [vmem:[#allocation45_spill] sm:$0xff] %v6426_v27  ;;  %v7051_v11 = vld [vmem:[#allocation21_spill] sm:$0xff] }
 0x2f3   : > { %7041 = vst [vmem:[#allocation43_spill] sm:$0xff] %v6416_v4  ;;  %v2339_v29 = vmul.f32 %v6368_v5, %v7051_v11 }
 0x2f4   : > { %v2320_v7 = vrot.slane %v2313_v41, %v2286_v36  ;;  %v2331_v41 = vmul.f32 %v6368_v5, %v5944_v57  ;;  %v2330_v57 = vmul.f32 %v6364_v39, %v5942_v38  ;;  %v7049_v38 = vsub.s32 0, %v6357_v10  ;;  %v6510_v10 = vld [vmem:[#allocation11 + $0x38] sm:$0xff] }
 0x2f5   : > { %v4436_v19 = vcombine.high %v6508_v34, %v6510_v10 }
 0x2f6   : > { %v2327_v54 = vrot.slane %v2320_v7, %v2286_v36  ;;  %v6468_v36 = vld [vmem:[#allocation11 + $0x30] sm:$0xff]  ;;  %v2335_v7 = vmul.f32 %v6368_v5, %v5952_v8 }
 0x2f8   : > { %v2329_v52 = vsub.f32 %v2297_v44, %v2327_v54  ;;  %v2334_v44 = vmul.f32 %v6364_v39, %v5950_v6 }
 0x2fa   : > { %v6480_v54 = vrot.slane %v2329_v52, %v7049_v38  ;;  %v6484_v4 = vrot.slane %v2329_v52, %v7050_v63  ;;  %v2341_v38 = vmul.f32 %v6368_v5, %v7052_v23  ;;  %v4434_v23 = vcombine.high %v6466_v37, %v6468_v36 }
 0x2fc   : > { %v2392_v52 = vadd.f32 %v6484_v4, %v2331_v41  ;;  %v2394_v63 = vadd.f32 %v6484_v4, %v2333_v32  ;;  %v2391_v8 = vadd.f32 %v6480_v54, %v2330_v57  ;;  %v2393_v3 = vadd.f32 %v6480_v54, %v2332_v12 }
 0x2fd   : > { %v2396_v59 = vadd.f32 %v6484_v4, %v2335_v7  ;;  %v2398_v6 = vadd.f32 %v6484_v4, %v2337_v18  ;;  %v2395_v7 = vadd.f32 %v6480_v54, %v2334_v44  ;;  %v2397_v18 = vadd.f32 %v6480_v54, %v2336_v62  ;;  %v7054_v44 = vld [vmem:[#allocation22_spill] sm:$0xff] }
 0x2fe   : > { %v2442_v41 = vmax.f32 %v2392_v52, 0.0  ;;  %v2444_v32 = vmax.f32 %v2394_v63, 0.0  ;;  %v2441_v40 = vmax.f32 %v2391_v8, 0.0  ;;  %v2443_v57 = vmax.f32 %v2393_v3, 0.0 }
 0x2ff   : > { %v2446_v27 = vmax.f32 %v2396_v59, 0.0  ;;  %v2448_v12 = vmax.f32 %v2398_v6, 0.0  ;;  %v2400_v52 = vadd.f32 %v6484_v4, %v2339_v29  ;;  %v2402_v8 = vadd.f32 %v6484_v4, %v2341_v38  ;;  %v7053_v59 = vld [vmem:[#allocation20_spill] sm:$0xff]  ;;  %v7055_v6 = vld [vmem:[#allocation26_spill] sm:$0xff] }
 0x300   : > { %v6514_v48 = vpack.c.bf16 %v2444_v32, %v2442_v41  ;;  %v6516_v11 = vpack.c.bf16 %v2443_v57, %v2441_v40  ;;  %v2338_v3 = vmul.f32 %v6364_v39, %v7053_v59  ;;  %v2340_v62 = vmul.f32 %v6364_v39, %v7054_v44  ;;  %v7056_v32 = vld [vmem:[#allocation24_spill] sm:$0xff]  ;;  %v7057_v59 = vld [vmem:[#allocation25_spill] sm:$0xff] }
 0x301   : > { %v6530_v40 = vpack.c.bf16 %v2448_v12, %v2446_v27  ;;  %v2343_v63 = vmul.f32 %v6368_v5, %v5994_v13  ;;  %v2345_v29 = vmul.f32 %v6368_v5, %v7055_v6  ;;  %v2445_v38 = vmax.f32 %v2395_v7, 0.0 }
 0x302   : > { %3317 = vmatprep.mubr.bf16.mxu0 %v6514_v48  ;;  %3478 = vmatprep.mubr.bf16.mxu1 %v6514_v48  ;;  %v2447_v41 = vmax.f32 %v2397_v18, 0.0  ;;  %v2342_v57 = vmul.f32 %v6364_v39, %v7056_v32  ;;  %v2344_v44 = vmul.f32 %v6364_v39, %v7057_v59  ;;  %v7058_v27 = vcombine.low %v6088_v42, %v6090_v58 }
 0x303   : > { %3318 = vmatmul.mubr.bf16.vlgmr.msra.gmra.mxu0 %v6516_v11  ;;  %3479 = vmatmul.mubr.bf16.vlgmr.msra.gmra.mxu1 %v6516_v11  ;;  %v7059_v13 = vcombine.low %v6106_v49, %v6108_v56  ;;  %v2347_v12 = vmul.f32 %v6368_v5, %v6034_v60  ;;  %v2349_v7 = vmul.f32 %v6368_v5, %v6054_v33  ;;  %v2450_v58 = vmax.f32 %v2400_v52, 0.0 }
 0x304   : > { %3608 = vmatpush1.bf16.msra.mxu0 %v7058_v27  ;;  %v2346_v18 = vmul.f32 %v6364_v39, %v6032_v47  ;;  %v7060_v6 = vcombine.high %v6370_v20, %v6372_v17  ;;  %v7061_v42 = vcombine.high %v6374_v61, %v6376_v26  ;;  %v2452_v49 = vmax.f32 %v2402_v8, 0.0  ;;  %3327 = vmatprep.mubr.bf16.mxu0 %v6530_v40 }
 0x305   : > { %3769 = vmatpush1.bf16.msra.mxu1 %v7059_v13  ;;  %v2399_v56 = vadd.f32 %v6480_v54, %v2338_v3  ;;  %v2348_v60 = vmul.f32 %v6364_v39, %v6052_v25  ;;  %3488 = vmatprep.mubr.bf16.mxu1 %v6530_v40  ;;  %v2401_v47 = vadd.f32 %v6480_v54, %v2340_v62  ;;  %v7062_v3 = vld [vmem:[#allocation28_spill] sm:$0xff] }
 0x306   : > { %3609 = vmatprep.subr.bf16.mxu0 %v7060_v6  ;;  %3770 = vmatprep.subr.bf16.mxu1 %v7061_v42  ;;  %v2404_v33 = vadd.f32 %v6484_v4, %v2343_v63  ;;  %v2406_v32 = vadd.f32 %v6484_v4, %v2345_v29  ;;  %v6568_v59 = vpack.c.bf16 %v2447_v41, %v2445_v38  ;;  %v7065_v29 = vld [vmem:[#allocation27_spill] sm:$0xff] }
 0x307   : > { %v2403_v52 = vadd.f32 %v6480_v54, %v2342_v57  ;;  %v2405_v8 = vadd.f32 %v6480_v54, %v2344_v44  ;;  %v2351_v27 = vmul.f32 %v6368_v5, %v7062_v3  ;;  %v7063_v25 = vcombine.low %v6370_v20, %v6372_v17 }
 0x308   : > { %v7064_v62 = vcombine.low %v6374_v61, %v6376_v26  ;;  %v2353_v63 = vmul.f32 %v6368_v5, %v6098_v53  ;;  %v6584_v38 = vmul.f32 %v6364_v39, %v7065_v29  ;;  %v6588_v41 = vmul.f32 %v6364_v39, %v6096_v24 }
 0x309   : > { %3610 = vmatpush1.bf16.msra.mxu0 %v7063_v25  ;;  %v7066_v57 = vcombine.high %v6378_v22, %v6382_v0  ;;  %v7067_v20 = vcombine.high %v6384_v51, %v6386_v28  ;;  %v6596_v17 = vpack.c.bf16 %v2452_v49, %v2450_v58  ;;  %v6600_v53 = vmul.f32 %v6368_v5, %v6114_v1 }
 0x30a   : > { %3771 = vmatpush1.bf16.msra.mxu1 %v7064_v62  ;;  %v6604_v61 = vmul.f32 %v6368_v5, %v6133_v50  ;;  %v2449_v24 = vmax.f32 %v2399_v56, 0.0  ;;  %v2451_v26 = vmax.f32 %v2401_v47, 0.0  ;;  %v2454_v44 = vmax.f32 %v2404_v33, 0.0 }
 0x30b   : > { %3611 = vmatprep.subr.bf16.mxu0 %v7066_v57  ;;  %3772 = vmatprep.subr.bf16.mxu1 %v7067_v20  ;;  %v2456_v13 = vmax.f32 %v2406_v32, 0.0  ;;  %v2453_v6 = vmax.f32 %v2403_v52, 0.0  ;;  %v2455_v42 = vmax.f32 %v2405_v8, 0.0  ;;  %v2408_v58 = vadd.f32 %v6484_v4, %v2347_v12 }
 0x30c   : > { %3328 = vmatmul.mubr.bf16.gmra.mxu0 %v6568_v59  ;;  %3489 = vmatmul.mubr.bf16.gmra.mxu1 %v6568_v59  ;;  %v2410_v49 = vadd.f32 %v6484_v4, %v2349_v7  ;;  %v7068_v1 = vcombine.low %v6378_v22, %v6382_v0  ;;  %v7069_v50 = vcombine.low %v6384_v51, %v6386_v28 }
 0x30d   : > { %v2362_v56 = vmul.f32 %v6364_v39, %v6199_v45  ;;  %v2364_v47 = vmul.f32 %v6364_v39, %v6218_v30  ;;  %v2367_v33 = vmul.f32 %v6368_v5, %v6240_v14  ;;  %3337 = vmatprep.mubr.bf16.mxu0 %v6596_v17  ;;  %3498 = vmatprep.mubr.bf16.mxu1 %v6596_v17 }
 0x30e   : > { %3612 = vmatpush1.bf16.msra.mxu0 %v7068_v1  ;;  %3773 = vmatpush1.bf16.msra.mxu1 %v7069_v50  ;;  %v6625_v22 = vadd.f32 %v6480_v54, %v2346_v18  ;;  %v2369_v0 = vmul.f32 %v6368_v5, %v6255_v46  ;;  %v2366_v51 = vmul.f32 %v6364_v39, %v6238_v43  ;;  %v2458_v46 = vmax.f32 %v2408_v58, 0.0 }
 0x30f   : > { %v6631_v45 = vpack.c.bf16 %v2451_v26, %v2449_v24  ;;  %v7070_v30 = vcombine.high %v6388_v55, %v6390_v16  ;;  %v7071_v14 = vcombine.high %v6392_v31, %v6398_v35  ;;  %v6639_v28 = vpack.c.bf16 %v2456_v13, %v2454_v44 }
 0x310   : > { %v2368_v12 = vmul.f32 %v6364_v39, %v6253_v15  ;;  %v6643_v7 = vpack.c.bf16 %v2455_v42, %v2453_v6  ;;  %v2460_v18 = vmax.f32 %v2410_v49, 0.0  ;;  %v6646_v43 = vadd.f32 %v6480_v54, %v2348_v60  ;;  %v7075_v60 = vld [vmem:[#allocation42_spill] sm:$0xff]  ;;  %v7078_v49 = vld [vmem:[#allocation35_spill] sm:$0xff] }
 0x311   : > { %3613 = vmatprep.subr.bf16.mxu0 %v7070_v30  ;;  %3774 = vmatprep.subr.bf16.mxu1 %v7071_v14  ;;  %v7072_v32 = vcombine.low %v6388_v55, %v6390_v16  ;;  %v7073_v52 = vcombine.low %v6392_v31, %v6398_v35  ;;  %v6655_v8 = vadd.f32 %v6484_v4, %v2351_v27  ;;  %v2457_v55 = vmax.f32 %v6625_v22, 0.0  ;;  %v7082_v14 = vld [vmem:[#allocation43_spill] sm:$0xff] }
 0x312   : > { %v2423_v15 = vadd.f32 %v6480_v54, %v2362_v56  ;;  %v2425_v3 = vadd.f32 %v6480_v54, %v2364_v47  ;;  %v7074_v25 = vcombine.high %v6400_v9, %v6402_v2  ;;  %v7076_v62 = vcombine.high %v6412_v21, %v7075_v60 }
 0x313   : > { %3614 = vmatpush1.bf16.msra.mxu0 %v7072_v32  ;;  %3775 = vmatpush1.bf16.msra.mxu1 %v7073_v52  ;;  %v6667_v16 = vadd.f32 %v6484_v4, %v2353_v63  ;;  %v2428_v31 = vadd.f32 %v6484_v4, %v2367_v33  ;;  %v2430_v35 = vadd.f32 %v6484_v4, %v2369_v0  ;;  %v7077_v63 = vld [vmem:[#allocation33_spill] sm:$0xff]  ;;  %v2459_v47 = vmax.f32 %v6646_v43, 0.0  ;;  %v7088_v52 = vld [vmem:[#allocation34_spill] sm:$0xff] }
 0x314   : > { %3615 = vmatprep.subr.bf16.mxu0 %v7074_v25  ;;  %3776 = vmatprep.subr.bf16.mxu1 %v7076_v62  ;;  %v2473_v27 = vmax.f32 %v2423_v15, 0.0  ;;  %v2475_v29 = vmax.f32 %v2425_v3, 0.0  ;;  %v2427_v57 = vadd.f32 %v6480_v54, %v2366_v51  ;;  %v2429_v20 = vadd.f32 %v6480_v54, %v2368_v12  ;;  %v7081_v51 = vld [vmem:[#allocation32_spill] sm:$0xff] }
 0x315   : > { %3338 = vmatmul.mubr.bf16.gmra.mxu0 %v6631_v45  ;;  %3499 = vmatmul.mubr.bf16.gmra.mxu1 %v6631_v45  ;;  %v6675_v24 = vpack.c.bf16 %v2460_v18, %v2458_v46  ;;  %v2478_v26 = vmax.f32 %v2428_v31, 0.0  ;;  %v2480_v44 = vmax.f32 %v2430_v35, 0.0  ;;  %v2371_v13 = vmul.f32 %v6368_v5, %v7077_v63  ;;  %v7083_v12 = vld [vmem:[#allocation44_spill] sm:$0xff]  ;;  %v7085_v18 = vld [vmem:[#allocation45_spill] sm:$0xff] }
 0x316   : > { %3347 = vmatprep.mubr.bf16.mxu0 %v6639_v28  ;;  %3508 = vmatprep.mubr.bf16.mxu1 %v6639_v28  ;;  %v6681_v6 = vpack.c.bf16 %v2475_v29, %v2473_v27  ;;  %v2477_v42 = vmax.f32 %v2427_v57, 0.0  ;;  %v2479_v58 = vmax.f32 %v2429_v20, 0.0  ;;  %v2373_v1 = vmul.f32 %v6368_v5, %v7078_v49  ;;  %v7090_v31 = vld [vmem:[#allocation41_spill] sm:$0xff]  ;;  %v7092_v20 = vld [vmem:[#allocation40_spill] sm:$0xff]  ;;  %v7095_v49 = vld [vmem:[#allocation39_spill] sm:$0xff] }
 0x317   : > { %v7079_v50 = vcombine.low %v6400_v9, %v6402_v2  ;;  %v7080_v56 = vcombine.low %v6412_v21, %v7075_v60  ;;  %v6692_v33 = vpack.c.bf16 %v2480_v44, %v2478_v26  ;;  %v2432_v0 = vadd.f32 %v6484_v4, %v2371_v13  ;;  %v7086_v9 = vld [vmem:[#allocation46_spill] sm:$0xff]  ;;  %v7089_v60 = vld [vmem:[#allocation37_spill] sm:$0xff] }
 0x318   : > { %v2370_v30 = vmul.f32 %v6364_v39, %v7081_v51  ;;  %v7084_v46 = vcombine.high %v7082_v14, %v7083_v12  ;;  %v7087_v2 = vcombine.high %v7085_v18, %v7086_v9  ;;  %v2462_v21 = vmax.f32 %v6655_v8, 0.0  ;;  %v7091_v8 = vld [vmem:[#allocation36_spill] sm:$0xff]  ;;  %v7099_v51 = vld [vmem:[#allocation49_spill] sm:$0xff] }
 0x319   : > { %3616 = vmatpush1.bf16.msra.mxu0 %v7079_v50  ;;  %3777 = vmatpush1.bf16.msra.mxu1 %v7080_v56  ;;  %v6704_v32 = vpack.c.bf16 %v2479_v58, %v2477_v42  ;;  %v2434_v43 = vadd.f32 %v6484_v4, %v2373_v1  ;;  %v2372_v15 = vmul.f32 %v6364_v39, %v7088_v52  ;;  %v2482_v3 = vmax.f32 %v2432_v0, 0.0  ;;  %v7096_v50 = vld [vmem:[#allocation47_spill] sm:$0xff]  ;;  %v7097_v56 = vld [vmem:[#allocation48_spill] sm:$0xff]  ;;  %v2640_v52 = vld [vmem:[#allocation11 + $0x3d8] sm:$0xff] }
 0x31a   : > { %3617 = vmatprep.subr.bf16.mxu0 %v7084_v46  ;;  %3778 = vmatprep.subr.bf16.mxu1 %v7087_v2  ;;  %v2431_v25 = vadd.f32 %v6480_v54, %v2370_v30  ;;  %v2375_v62 = vmul.f32 %v6368_v5, %v7089_v60  ;;  %v2377_v35 = vmul.f32 %v6368_v5, %v7090_v31  ;;  %v7100_v30 = vld [vmem:[#allocation50_spill] sm:$0xff] }
 0x31b   : > { %v2484_v27 = vmax.f32 %v2434_v43, 0.0  ;;  %v2433_v29 = vadd.f32 %v6480_v54, %v2372_v15  ;;  %v2374_v57 = vmul.f32 %v6364_v39, %v7091_v8  ;;  %v2376_v26 = vmul.f32 %v6364_v39, %v7092_v20  ;;  %v2643_v43 = vld [vmem:[#allocation11 + $0x3f0] sm:$0xff]  ;;  %v2644_v15 = vld [vmem:[#allocation11 + $0x3f8] sm:$0xff]  ;;  %v7102_v31 = vld [vmem:[#allocation38_spill] sm:$0xff] }
 0x31c   : > { %v7093_v44 = vcombine.low %v7082_v14, %v7083_v12  ;;  %v7094_v63 = vcombine.low %v7085_v18, %v7086_v9  ;;  %v2481_v13 = vmax.f32 %v2431_v25, 0.0  ;;  %v2436_v42 = vadd.f32 %v6484_v4, %v2375_v62  ;;  %v6735_v12 = vld [vmem:[#allocation11 + $0x3d0] sm:$0xff] }
 0x31d   : > { %v2438_v58 = vadd.f32 %v6484_v4, %v2377_v35  ;;  %v2379_v1 = vmul.f32 %v6368_v5, %v7095_v49  ;;  %v7098_v0 = vcombine.high %v7096_v50, %v7097_v56  ;;  %v7101_v14 = vcombine.high %v7099_v51, %v7100_v30  ;;  %3348 = vmatmul.mubr.bf16.gmra.mxu0 %v6643_v7 }
 0x31e   : > { %3618 = vmatpush1.bf16.msra.mxu0 %v7093_v44  ;;  %3779 = vmatpush1.bf16.msra.mxu1 %v7094_v63  ;;  %v6737_v46 = vpack.c.bf16 %v2484_v27, %v2482_v3  ;;  %v2483_v18 = vmax.f32 %v2433_v29, 0.0  ;;  %v2435_v9 = vadd.f32 %v6480_v54, %v2374_v57  ;;  %v2437_v2 = vadd.f32 %v6480_v54, %v2376_v26 }
 0x31f   : > { %3619 = vmatprep.subr.bf16.mxu0 %v7098_v0  ;;  %3780 = vmatprep.subr.bf16.mxu1 %v7101_v14  ;;  %v2486_v25 = vmax.f32 %v2436_v42, 0.0  ;;  %v2488_v60 = vmax.f32 %v2438_v58, 0.0  ;;  %v6744_v62 = vadd.f32 %v6484_v4, %v2379_v1  ;;  %v2378_v3 = vmul.f32 %v6364_v39, %v7102_v31  ;;  %v2631_v42 = vld [vmem:[#allocation11 + $0x390] sm:$0xff] }
 0x320   : > { %3509 = vmatmul.mubr.bf16.gmra.mxu1 %v6643_v7  ;;  %3357 = vmatprep.mubr.bf16.mxu0 %v6675_v24  ;;  %v2464_v35 = vmax.f32 %v6667_v16, 0.0  ;;  %v6751_v27 = vpack.c.bf16 %v2483_v18, %v2481_v13  ;;  %v2485_v29 = vmax.f32 %v2435_v9, 0.0  ;;  %v2487_v8 = vmax.f32 %v2437_v2, 0.0  ;;  %v2627_v14 = vld [vmem:[#allocation11 + $0x370] sm:$0xff]  ;;  %v2628_v18 = vld [vmem:[#allocation11 + $0x378] sm:$0xff] }
 0x321   : > { %3518 = vmatprep.mubr.bf16.mxu1 %v6675_v24  ;;  %v7103_v57 = vcombine.low %v7096_v50, %v7097_v56  ;;  %v7104_v20 = vcombine.low %v7099_v51, %v7100_v30  ;;  %v4435_v26 = vcombine.low %v6508_v34, %v6510_v10  ;;  %v6761_v44 = vpack.c.bf16 %v2488_v60, %v2486_v25  ;;  %v2635_v50 = vld [vmem:[#allocation11 + $0x3b0] sm:$0xff]  ;;  %v2632_v56 = vld [vmem:[#allocation11 + $0x398] sm:$0xff]  ;;  %v4955_v51 = vld [vmem:[#allocation2 + $0xe8] sm:$0xff] }
 0x322   : > { %v6764_v63 = vadd.f32 %v6480_v54, %v2378_v3  ;;  %v4554_v16 = vcombine.high %v6735_v12, %v2643_v43  ;;  %v4556_v13 = vcombine.high %v2640_v52, %v2644_v15  ;;  %v6773_v58 = vpack.c.bf16 %v2487_v8, %v2485_v29  ;;  %v2636_v34 = vld [vmem:[#allocation11 + $0x3b8] sm:$0xff]  ;;  %v2615_v29 = vld [vmem:[#allocation11 + $0x310] sm:$0xff] }
 0x323   : > { %3620 = vmatpush1.bf16.msra.mxu0 %v7103_v57  ;;  %3781 = vmatpush1.bf16.msra.mxu1 %v7104_v20  ;;  %v6777_v49 = vpack.c.bf16 %v2459_v47, %v2457_v55  ;;  %v2411_v1 = vadd.f32 %v6480_v54, %v6584_v38  ;;  %v2416_v10 = vadd.f32 %v6484_v4, %v6600_v53 }
 0x324   : > { %3621 = vmatprep.subr.bf16.mxu0 %v4434_v23  ;;  %3782 = vmatprep.subr.bf16.mxu1 %v4436_v19  ;;  %v2413_v23 = vadd.f32 %v6480_v54, %v6588_v41  ;;  %v6783_v19 = vpack.c.bf16 %v2464_v35, %v2462_v21  ;;  %v2418_v0 = vadd.f32 %v6484_v4, %v6604_v61  ;;  %v6793_v21 = vld [vmem:[#allocation11 + $0x350] sm:$0xff] }
 0x325   : > { %v7105_v22 = vcombine.low %v6466_v37, %v6468_v36  ;;  %v4553_v38 = vcombine.low %v6735_v12, %v2643_v43  ;;  %v4555_v55 = vcombine.low %v2640_v52, %v2644_v15  ;;  %v4546_v41 = vcombine.high %v2631_v42, %v2635_v50  ;;  %3358 = vmatmul.mubr.bf16.gmra.mxu0 %v6777_v49  ;;  %v4956_v36 = vld [vmem:[#allocation2 + $0x20] sm:$0xff] }
 0x326   : > { %v4548_v47 = vcombine.high %v2632_v56, %v2636_v34  ;;  %v2461_v53 = vmax.f32 %v2411_v1, 0.0  ;;  %v2463_v61 = vmax.f32 %v2413_v23, 0.0  ;;  %v2354_v37 = vmul.f32 %v4955_v51, %v6364_v39  ;;  %v2624_v12 = vld [vmem:[#allocation11 + $0x358] sm:$0xff]  ;;  %3367 = vmatprep.mubr.bf16.mxu0 %v6783_v19  ;;  %v7107_v15 = vld [vmem:[#allocation30_spill] sm:$0xff] }
 0x327   : > { %3622 = vmatpush1.bf16.msra.mxu0 %v7105_v22  ;;  %3783 = vmatpush1.bf16.msra.mxu1 %v4435_v26  ;;  %v2356_v30 = vmul.f32 %v4956_v36, %v6364_v39  ;;  %v2466_v9 = vmax.f32 %v2416_v10, 0.0  ;;  %v2468_v2 = vmax.f32 %v2418_v0, 0.0  ;;  %v7106_v43 = vld [vmem:[#allocation29_spill] sm:$0xff]  ;;  %v2361_v25 = vmul.f32 %v6368_v5, %v7107_v15  ;;  %v2619_v26 = vld [vmem:[#allocation11 + $0x330] sm:$0xff] }
 0x328   : > { %3623 = vmatprep.subr.bf16.mxu0 %v4554_v16  ;;  %3784 = vmatprep.subr.bf16.mxu1 %v4556_v13  ;;  %v2359_v52 = vmul.f32 %v6368_v5, %v7106_v43  ;;  %v4545_v60 = vcombine.low %v2631_v42, %v2635_v50  ;;  %v4547_v31 = vcombine.low %v2632_v56, %v2636_v34  ;;  %v2616_v16 = vld [vmem:[#allocation11 + $0x318] sm:$0xff]  ;;  %v2607_v0 = vld [vmem:[#allocation11 + $0x2d0] sm:$0xff] }
 0x329   : > { %3519 = vmatmul.mubr.bf16.gmra.mxu1 %v6777_v49  ;;  %v4538_v3 = vcombine.high %v6793_v21, %v2627_v14  ;;  %v4540_v35 = vcombine.high %v2624_v12, %v2628_v18  ;;  %v6806_v8 = vpack.c.bf16 %v2463_v61, %v2461_v53  ;;  %v2415_v57 = vadd.f32 %v6480_v54, %v2354_v37  ;;  %v2620_v13 = vld [vmem:[#allocation11 + $0x338] sm:$0xff]  ;;  %v2611_v61 = vld [vmem:[#allocation11 + $0x2f0] sm:$0xff] }
 0x32a   : > { %3528 = vmatprep.mubr.bf16.mxu1 %v6783_v19  ;;  %v2417_v20 = vadd.f32 %v6480_v54, %v2356_v30  ;;  %v6810_v1 = vpack.c.bf16 %v2468_v2, %v2466_v9  ;;  %v2420_v42 = vadd.f32 %v6484_v4, %v2359_v52  ;;  %v2422_v23 = vadd.f32 %v6484_v4, %v2361_v25  ;;  %v2612_v51 = vld [vmem:[#allocation11 + $0x2f8] sm:$0xff]  ;;  %v2599_v52 = vld [vmem:[#allocation11 + $0x290] sm:$0xff] }
 0x32b   : > { %3624 = vmatpush2.bf16.msra.mxu0 %v4553_v38  ;;  %3785 = vmatpush2.bf16.msra.mxu1 %v4555_v55  ;;  %v4537_v50 = vcombine.low %v6793_v21, %v2627_v14  ;;  %v4539_v56 = vcombine.low %v2624_v12, %v2628_v18  ;;  %v4530_v34 = vcombine.high %v2615_v29, %v2619_v26  ;;  %v2465_v22 = vmax.f32 %v2415_v57, 0.0  ;;  %v4957_v55 = vld [vmem:[#allocation2 + $0xa0] sm:$0xff]  ;;  %v7108_v12 = vld [vmem:[#allocation31_spill] sm:$0xff] }
 0x32c   : > { %3625 = vmatprep.subr.bf16.mxu0 %v4546_v41  ;;  %3786 = vmatprep.subr.bf16.mxu1 %v4548_v47  ;;  %v4532_v10 = vcombine.high %v2616_v16, %v2620_v13  ;;  %v2467_v38 = vmax.f32 %v2417_v20, 0.0  ;;  %v2358_v41 = vmul.f32 %v4957_v55, %v6364_v39  ;;  %v4958_v47 = vld [vmem:[#allocation2 + $0xf0] sm:$0xff]  ;;  %v2608_v21 = vld [vmem:[#allocation11 + $0x2d8] sm:$0xff]  ;;  %v2470_v37 = vmax.f32 %v2420_v42, 0.0 }
 0x32d   : > { %3368 = vmatmul.mubr.bf16.gmra.mxu0 %v6806_v8  ;;  %v2360_v53 = vmul.f32 %v4958_v47, %v6364_v39  ;;  %v2472_v36 = vmax.f32 %v2422_v23, 0.0  ;;  %v4959_v30 = vld [vmem:[#allocation2] sm:$0xff]  ;;  %v2365_v18 = vmul.f32 %v6368_v5, %v7108_v12  ;;  %v4529_v9 = vcombine.low %v2615_v29, %v2619_v26  ;;  %v2591_v42 = vld [vmem:[#allocation11 + $0x250] sm:$0xff] }
 0x32e   : > { %3377 = vmatprep.mubr.bf16.mxu0 %v6810_v1  ;;  %v2363_v14 = vmul.f32 %v4959_v30, %v6368_v5  ;;  %v4531_v2 = vcombine.low %v2616_v16, %v2620_v13  ;;  %v4522_v39 = vcombine.high %v2607_v0, %v2611_v61  ;;  %v4524_v43 = vcombine.high %v2608_v21, %v2612_v51 }
 0x32f   : > { %3626 = vmatpush2.bf16.msra.mxu0 %v4545_v60  ;;  %3787 = vmatpush2.bf16.msra.mxu1 %v4547_v31  ;;  %v6824_v15 = vpack.c.bf16 %v2467_v38, %v2465_v22  ;;  %v2419_v25 = vadd.f32 %v6480_v54, %v2358_v41  ;;  %v2421_v60 = vadd.f32 %v6480_v54, %v2360_v53  ;;  %v2603_v31 = vld [vmem:[#allocation11 + $0x2b0] sm:$0xff] }
 0x330   : > { %3627 = vmatprep.subr.bf16.mxu0 %v4538_v3  ;;  %3788 = vmatprep.subr.bf16.mxu1 %v4540_v35  ;;  %v2600_v3 = vld [vmem:[#allocation11 + $0x298] sm:$0xff]  ;;  %v6828_v57 = vpack.c.bf16 %v2472_v36, %v2470_v37  ;;  %v2424_v5 = vadd.f32 %v6484_v4, %v2363_v14  ;;  %v2426_v29 = vadd.f32 %v6484_v4, %v2365_v18  ;;  %v2583_v41 = vld [vmem:[#allocation11 + $0x210] sm:$0xff] }
 0x331   : > { %3529 = vmatmul.mubr.bf16.gmra.mxu1 %v6806_v8  ;;  %v2604_v35 = vld [vmem:[#allocation11 + $0x2b8] sm:$0xff]  ;;  %v4521_v20 = vcombine.low %v2607_v0, %v2611_v61  ;;  %v4523_v26 = vcombine.low %v2608_v21, %v2612_v51  ;;  %v4514_v16 = vcombine.high %v2599_v52, %v2603_v31  ;;  %v2469_v54 = vmax.f32 %v2419_v25, 0.0  ;;  %v2587_v53 = vld [vmem:[#allocation11 + $0x230] sm:$0xff] }
 0x332   : > { %3538 = vmatprep.mubr.bf16.mxu1 %v6810_v1  ;;  %v4516_v13 = vcombine.high %v2600_v3, %v2604_v35  ;;  %v2471_v23 = vmax.f32 %v2421_v60, 0.0  ;;  %v2474_v4 = vmax.f32 %v2424_v5, 0.0  ;;  %v4513_v0 = vcombine.low %v2599_v52, %v2603_v31  ;;  %v2584_v61 = vld [vmem:[#allocation11 + $0x218] sm:$0xff] }
 0x333   : > { %3628 = vmatpush2.bf16.msra.mxu0 %v4537_v50  ;;  %3789 = vmatpush2.bf16.msra.mxu1 %v4539_v56  ;;  %v2595_v50 = vld [vmem:[#allocation11 + $0x270] sm:$0xff]  ;;  %v2592_v56 = vld [vmem:[#allocation11 + $0x258] sm:$0xff]  ;;  %v4515_v22 = vcombine.low %v2600_v3, %v2604_v35  ;;  %v4498_v30 = vcombine.high %v2583_v41, %v2587_v53  ;;  %v4497_v12 = vcombine.low %v2583_v41, %v2587_v53 }
 0x334   : > { %3629 = vmatprep.subr.bf16.mxu0 %v4530_v34  ;;  %3790 = vmatprep.subr.bf16.mxu1 %v4532_v10  ;;  %v2596_v34 = vld [vmem:[#allocation11 + $0x278] sm:$0xff]  ;;  %v2476_v10 = vmax.f32 %v2426_v29, 0.0  ;;  %v4506_v38 = vcombine.high %v2591_v42, %v2595_v50  ;;  %v6836_v47 = vpack.c.bf16 %v2471_v23, %v2469_v54  ;;  %v4505_v37 = vcombine.low %v2591_v42, %v2595_v50 }
 0x335   : > { %3378 = vmatmul.mubr.bf16.gmra.mxu0 %v6824_v15  ;;  %v4508_v55 = vcombine.high %v2592_v56, %v2596_v34  ;;  %v2588_v21 = vld [vmem:[#allocation11 + $0x238] sm:$0xff]  ;;  %v4507_v36 = vcombine.low %v2592_v56, %v2596_v34 }
 0x336   : > { %3387 = vmatprep.mubr.bf16.mxu0 %v6828_v57  ;;  %v6838_v51 = vpack.c.bf16 %v2476_v10, %v2474_v4  ;;  %v4500_v14 = vcombine.high %v2584_v61, %v2588_v21  ;;  %v4499_v18 = vcombine.low %v2584_v61, %v2588_v21 }
 0x337   : > { %3630 = vmatpush2.bf16.msra.mxu0 %v4529_v9  ;;  %3791 = vmatpush2.bf16.msra.mxu1 %v4531_v2  ;;  %v2490_v9 = vmax.f32 %v6744_v62, 0.0 }
 0x338   : > { %3631 = vmatprep.subr.bf16.mxu0 %v4522_v39  ;;  %3792 = vmatprep.subr.bf16.mxu1 %v4524_v43  ;;  %v2489_v39 = vmax.f32 %v6764_v63, 0.0 }
 0x339   : > { %3539 = vmatmul.mubr.bf16.gmra.mxu1 %v6824_v15  ;;  %v2516_v2 = vpack.c.bf16 %v2490_v9, %v2490_v9 }
 0x33a   : > { %3548 = vmatprep.mubr.bf16.mxu1 %v6828_v57  ;;  %v6860_v43 = vpack.c.bf16 %v2489_v39, %v2489_v39 }
 0x33b   : > { %3632 = vmatpush2.bf16.msra.mxu0 %v4521_v20  ;;  %3793 = vmatpush2.bf16.msra.mxu1 %v4523_v26 }
 0x33c   : > { %3633 = vmatprep.subr.bf16.mxu0 %v4514_v16  ;;  %3794 = vmatprep.subr.bf16.mxu1 %v4516_v13 }
 0x33d   : > { %3388 = vmatmul.mubr.bf16.gmra.mxu0 %v6836_v47 }
 0x33e   : > { %3397 = vmatprep.mubr.bf16.mxu0 %v6838_v51 }
 0x33f   : > { %3634 = vmatpush2.bf16.msra.mxu0 %v4513_v0  ;;  %3795 = vmatpush2.bf16.msra.mxu1 %v4515_v22 }
 0x340   : > { %3635 = vmatprep.subr.bf16.mxu0 %v4506_v38  ;;  %3796 = vmatprep.subr.bf16.mxu1 %v4508_v55 }
 0x341   : > { %3549 = vmatmul.mubr.bf16.gmra.mxu1 %v6836_v47 }
 0x342   : > { %3558 = vmatprep.mubr.bf16.mxu1 %v6838_v51 }
 0x343   : > { %3636 = vmatpush2.bf16.msra.mxu0 %v4505_v37  ;;  %3797 = vmatpush2.bf16.msra.mxu1 %v4507_v36 }
 0x344   : > { %3637 = vmatprep.subr.bf16.mxu0 %v4498_v30  ;;  %3798 = vmatprep.subr.bf16.mxu1 %v4500_v14 }
 0x345   : > { %3398 = vmatmul.mubr.bf16.gmra.mxu0 %v6681_v6 }
 0x346   : > { %3407 = vmatprep.mubr.bf16.mxu0 %v6692_v33 }
 0x347   : > { %3638 = vmatpush2.bf16.msra.mxu0 %v4497_v12  ;;  %3799 = vmatpush2.bf16.msra.mxu1 %v4499_v18 }
 0x349   : > { %3559 = vmatmul.mubr.bf16.gmra.mxu1 %v6681_v6 }
 0x34a   : > { %3568 = vmatprep.mubr.bf16.mxu1 %v6692_v33 }
 0x34d   : > { %3408 = vmatmul.mubr.bf16.gmra.mxu0 %v6704_v32 }
 0x34e   : > { %3417 = vmatprep.mubr.bf16.mxu0 %v6737_v46 }
 0x351   : > { %3569 = vmatmul.mubr.bf16.gmra.mxu1 %v6704_v32 }
 0x352   : > { %3578 = vmatprep.mubr.bf16.mxu1 %v6737_v46 }
 0x355   : > { %3418 = vmatmul.mubr.bf16.gmra.mxu0 %v6751_v27 }
 0x356   : > { %3427 = vmatprep.mubr.bf16.mxu0 %v6761_v44 }
 0x359   : > { %3579 = vmatmul.mubr.bf16.gmra.mxu1 %v6751_v27 }
 0x35a   : > { %3588 = vmatprep.mubr.bf16.mxu1 %v6761_v44 }
 0x35d   : > { %3428 = vmatmul.mubr.bf16.gmra.mxu0 %v6773_v58 }
 0x35e   : > { %3437 = vmatprep.mubr.bf16.mxu0 %v2516_v2 }
 0x361   : > { %3589 = vmatmul.mubr.bf16.gmra.mxu1 %v6773_v58 }
 0x362   : > { %3598 = vmatprep.mubr.bf16.mxu1 %v2516_v2 }
 0x365   : > { %3438 = vmatmul.mubr.bf16.gmra.mxu0 %v6860_v43 }
 0x366   : > { %3639 = vmatprep.mubr.bf16.mxu0 %v6514_v48 }
 0x369   : > { %3599 = vmatmul.mubr.bf16.gmra.mxu1 %v6860_v43 }
 0x36a   : > { %3800 = vmatprep.mubr.bf16.mxu1 %v6514_v48 }
 0x36d   : > { %3640 = vmatmul.mubr.bf16.vlgmr.msra.gmra.mxu0 %v6516_v11 }
 0x36e   : > { %3649 = vmatprep.mubr.bf16.mxu0 %v6530_v40 }
 0x371   : > { %3801 = vmatmul.mubr.bf16.vlgmr.msra.gmra.mxu1 %v6516_v11 }
 0x372   : > { %3810 = vmatprep.mubr.bf16.mxu1 %v6530_v40 }
 0x375   : > { %3650 = vmatmul.mubr.bf16.gmra.mxu0 %v6568_v59 }
 0x376   : > { %3659 = vmatprep.mubr.bf16.mxu0 %v6596_v17 }
 0x379   : > { %3811 = vmatmul.mubr.bf16.gmra.mxu1 %v6568_v59 }
 0x37a   : > { %3820 = vmatprep.mubr.bf16.mxu1 %v6596_v17 }
 0x37d   : > { %3660 = vmatmul.mubr.bf16.gmra.mxu0 %v6631_v45 }
 0x37e   : > { %3669 = vmatprep.mubr.bf16.mxu0 %v6639_v28 }
 0x381   : > { %3821 = vmatmul.mubr.bf16.gmra.mxu1 %v6631_v45 }
 0x382   : > { %3830 = vmatprep.mubr.bf16.mxu1 %v6639_v28 }
 0x385   : > { %3670 = vmatmul.mubr.bf16.gmra.mxu0 %v6643_v7 }
 0x386   : > { %3679 = vmatprep.mubr.bf16.mxu0 %v6675_v24 }
 0x389   : > { %3831 = vmatmul.mubr.bf16.gmra.mxu1 %v6643_v7 }
 0x38a   : > { %3840 = vmatprep.mubr.bf16.mxu1 %v6675_v24 }
 0x38d   : > { %3680 = vmatmul.mubr.bf16.gmra.mxu0 %v6777_v49 }
 0x38e   : > { %3689 = vmatprep.mubr.bf16.mxu0 %v6783_v19 }
 0x391   : > { %3841 = vmatmul.mubr.bf16.gmra.mxu1 %v6777_v49 }
 0x392   : > { %3850 = vmatprep.mubr.bf16.mxu1 %v6783_v19 }
 0x395   : > { %3690 = vmatmul.mubr.bf16.gmra.mxu0 %v6806_v8 }
 0x396   : > { %3699 = vmatprep.mubr.bf16.mxu0 %v6810_v1 }
 0x399   : > { %3851 = vmatmul.mubr.bf16.gmra.mxu1 %v6806_v8 }
 0x39a   : > { %3860 = vmatprep.mubr.bf16.mxu1 %v6810_v1 }
 0x39d   : > { %3700 = vmatmul.mubr.bf16.gmra.mxu0 %v6824_v15 }
 0x39e   : > { %3709 = vmatprep.mubr.bf16.mxu0 %v6828_v57 }
 0x3a1   : > { %3861 = vmatmul.mubr.bf16.gmra.mxu1 %v6824_v15 }
 0x3a2   : > { %3870 = vmatprep.mubr.bf16.mxu1 %v6828_v57 }
 0x3a5   : > { %3710 = vmatmul.mubr.bf16.gmra.mxu0 %v6836_v47 }
 0x3a6   : > { %3719 = vmatprep.mubr.bf16.mxu0 %v6838_v51 }
 0x3a9   : > { %3871 = vmatmul.mubr.bf16.gmra.mxu1 %v6836_v47 }
 0x3aa   : > { %3880 = vmatprep.mubr.bf16.mxu1 %v6838_v51 }
 0x3ad   : > { %3720 = vmatmul.mubr.bf16.gmra.mxu0 %v6681_v6 }
 0x3ae   : > { %3729 = vmatprep.mubr.bf16.mxu0 %v6692_v33 }
 0x3b1   : > { %3881 = vmatmul.mubr.bf16.gmra.mxu1 %v6681_v6 }
 0x3b2   : > { %3890 = vmatprep.mubr.bf16.mxu1 %v6692_v33 }
 0x3b5   : > { %3730 = vmatmul.mubr.bf16.gmra.mxu0 %v6704_v32 }
 0x3b6   : > { %3739 = vmatprep.mubr.bf16.mxu0 %v6737_v46 }
 0x3b9   : > { %3891 = vmatmul.mubr.bf16.gmra.mxu1 %v6704_v32 }
 0x3ba   : > { %3900 = vmatprep.mubr.bf16.mxu1 %v6737_v46 }
 0x3bd   : > { %3740 = vmatmul.mubr.bf16.gmra.mxu0 %v6751_v27 }
 0x3be   : > { %3749 = vmatprep.mubr.bf16.mxu0 %v6761_v44 }
 0x3c1   : > { %3901 = vmatmul.mubr.bf16.gmra.mxu1 %v6751_v27 }
 0x3c2   : > { %3910 = vmatprep.mubr.bf16.mxu1 %v6761_v44 }
 0x3c3   : > { %v3319_v48 = vpop.f32.mrf.mxu0  ;;  %v3480_v11 = vpop.f32.mrf.mxu1 }
 0x3c4   : > { %3929 = vst [vmem:[#allocation12] sm:$0xff] %v3319_v48  ;;  %3931 = vst [vmem:[#allocation12 + $0x10] sm:$0xff] %v3480_v11 }
 0x3c5   : > { %3750 = vmatmul.mubr.bf16.gmra.mxu0 %v6773_v58  ;;  %v3321_v40 = vpop.f32.mrf.mxu0  ;;  %v3482_v59 = vpop.f32.mrf.mxu1 }
 0x3c6   : > { %3759 = vmatprep.mubr.bf16.mxu0 %v2516_v2  ;;  %3930 = vst [vmem:[#allocation12 + $0x8] sm:$0xff] %v3321_v40  ;;  %3932 = vst [vmem:[#allocation12 + $0x18] sm:$0xff] %v3482_v59 }
 0x3c7   : > { %v3323_v17 = vpop.f32.mrf.mxu0  ;;  %v3484_v45 = vpop.f32.mrf.mxu1 }
 0x3c8   : > { %3937 = vst [vmem:[#allocation12 + $0x40] sm:$0xff] %v3323_v17  ;;  %3939 = vst [vmem:[#allocation12 + $0x50] sm:$0xff] %v3484_v45 }
 0x3c9   : > { %3911 = vmatmul.mubr.bf16.gmra.mxu1 %v6773_v58  ;;  %v3325_v28 = vpop.f32.mrf.mxu0  ;;  %v3486_v7 = vpop.f32.mrf.mxu1 }
 0x3ca   : > { %3920 = vmatprep.mubr.bf16.mxu1 %v2516_v2  ;;  %3938 = vst [vmem:[#allocation12 + $0x48] sm:$0xff] %v3325_v28  ;;  %3940 = vst [vmem:[#allocation12 + $0x58] sm:$0xff] %v3486_v7 }
 0x3cc   : > { %v3329_v24 = vpop.f32.mrf.mxu0  ;;  %v3490_v6 = vpop.f32.mrf.mxu1 }
 0x3cd   : > { %3760 = vmatmul.mubr.bf16.gmra.mxu0 %v6860_v43  ;;  %3945 = vst [vmem:[#allocation12 + $0x80] sm:$0xff] %v3329_v24  ;;  %3947 = vst [vmem:[#allocation12 + $0x90] sm:$0xff] %v3490_v6 }
 0x3ce   : > { %v3331_v33 = vpop.f32.mrf.mxu0  ;;  %v3492_v32 = vpop.f32.mrf.mxu1 }
 0x3cf   : > { %3946 = vst [vmem:[#allocation12 + $0x88] sm:$0xff] %v3331_v33  ;;  %3948 = vst [vmem:[#allocation12 + $0x98] sm:$0xff] %v3492_v32 }
 0x3d0   : > { %v3333_v46 = vpop.f32.mrf.mxu0  ;;  %v3494_v62 = vpop.f32.mrf.mxu1 }
 0x3d1   : > { %3921 = vmatmul.mubr.bf16.gmra.mxu1 %v6860_v43  ;;  %3953 = vst [vmem:[#allocation12 + $0xc0] sm:$0xff] %v3333_v46  ;;  %3955 = vst [vmem:[#allocation12 + $0xd0] sm:$0xff] %v3494_v62 }
 0x3d2   : > { %v3335_v27 = vpop.f32.mrf.mxu0  ;;  %v3496_v44 = vpop.f32.mrf.mxu1 }
 0x3d3   : > { %3954 = vst [vmem:[#allocation12 + $0xc8] sm:$0xff] %v3335_v27  ;;  %3956 = vst [vmem:[#allocation12 + $0xd8] sm:$0xff] %v3496_v44 }
 0x3d5   : > { %v3339_v63 = vpop.f32.mrf.mxu0  ;;  %v3500_v58 = vpop.f32.mrf.mxu1 }
 0x3d6   : > { %3961 = vst [vmem:[#allocation12 + $0x100] sm:$0xff] %v3339_v63  ;;  %3963 = vst [vmem:[#allocation12 + $0x110] sm:$0xff] %v3500_v58 }
 0x3d7   : > { %v3341_v49 = vpop.f32.mrf.mxu0  ;;  %v3502_v19 = vpop.f32.mrf.mxu1 }
 0x3d8   : > { %3962 = vst [vmem:[#allocation12 + $0x108] sm:$0xff] %v3341_v49  ;;  %3964 = vst [vmem:[#allocation12 + $0x118] sm:$0xff] %v3502_v19 }
 0x3d9   : > { %v3343_v8 = vpop.f32.mrf.mxu0  ;;  %v3504_v1 = vpop.f32.mrf.mxu1 }
 0x3da   : > { %3969 = vst [vmem:[#allocation12 + $0x140] sm:$0xff] %v3343_v8  ;;  %3971 = vst [vmem:[#allocation12 + $0x150] sm:$0xff] %v3504_v1 }
 0x3db   : > { %v3345_v52 = vpop.f32.mrf.mxu0  ;;  %v3506_v15 = vpop.f32.mrf.mxu1 }
 0x3dc   : > { %3970 = vst [vmem:[#allocation12 + $0x148] sm:$0xff] %v3345_v52  ;;  %3972 = vst [vmem:[#allocation12 + $0x158] sm:$0xff] %v3506_v15 }
 0x3dd   : > { %v3349_v25 = vpop.f32.mrf.mxu0 }
 0x3de   : > { %3977 = vst [vmem:[#allocation12 + $0x180] sm:$0xff] %v3349_v25 }
 0x3df   : > { %v3351_v31 = vpop.f32.mrf.mxu0 }
 0x3e0   : > { %v3510_v60 = vpop.f32.mrf.mxu1  ;;  %3978 = vst [vmem:[#allocation12 + $0x188] sm:$0xff] %v3351_v31 }
 0x3e1   : > { %3979 = vst [vmem:[#allocation12 + $0x190] sm:$0xff] %v3510_v60  ;;  %v3353_v35 = vpop.f32.mrf.mxu0 }
 0x3e2   : > { %v3512_v3 = vpop.f32.mrf.mxu1  ;;  %3985 = vst [vmem:[#allocation12 + $0x1c0] sm:$0xff] %v3353_v35 }
 0x3e3   : > { %3980 = vst [vmem:[#allocation12 + $0x198] sm:$0xff] %v3512_v3  ;;  %v3355_v5 = vpop.f32.mrf.mxu0 }
 0x3e4   : > { %v3514_v57 = vpop.f32.mrf.mxu1  ;;  %3986 = vst [vmem:[#allocation12 + $0x1c8] sm:$0xff] %v3355_v5 }
 0x3e5   : > { %3987 = vst [vmem:[#allocation12 + $0x1d0] sm:$0xff] %v3514_v57  ;;  %v3359_v20 = vpop.f32.mrf.mxu0 }
 0x3e6   : > { %v3516_v29 = vpop.f32.mrf.mxu1  ;;  %3993 = vst [vmem:[#allocation12 + $0x200] sm:$0xff] %v3359_v20 }
 0x3e7   : > { %3988 = vst [vmem:[#allocation12 + $0x1d8] sm:$0xff] %v3516_v29  ;;  %v3361_v16 = vpop.f32.mrf.mxu0 }
 0x3e8   : > { %3994 = vst [vmem:[#allocation12 + $0x208] sm:$0xff] %v3361_v16 }
 0x3e9   : > { %v3520_v26 = vpop.f32.mrf.mxu1  ;;  %v3363_v42 = vpop.f32.mrf.mxu0 }
 0x3ea   : > { %3995 = vst [vmem:[#allocation12 + $0x210] sm:$0xff] %v3520_v26  ;;  %4001 = vst [vmem:[#allocation12 + $0x240] sm:$0xff] %v3363_v42 }
 0x3eb   : > { %v3522_v13 = vpop.f32.mrf.mxu1  ;;  %v3365_v23 = vpop.f32.mrf.mxu0 }
 0x3ec   : > { %3996 = vst [vmem:[#allocation12 + $0x218] sm:$0xff] %v3522_v13  ;;  %4002 = vst [vmem:[#allocation12 + $0x248] sm:$0xff] %v3365_v23 }
 0x3ed   : > { %v3524_v54 = vpop.f32.mrf.mxu1  ;;  %v3369_v56 = vpop.f32.mrf.mxu0 }
 0x3ee   : > { %4003 = vst [vmem:[#allocation12 + $0x250] sm:$0xff] %v3524_v54  ;;  %4009 = vst [vmem:[#allocation12 + $0x280] sm:$0xff] %v3369_v56 }
 0x3ef   : > { %v3526_v50 = vpop.f32.mrf.mxu1  ;;  %v3371_v4 = vpop.f32.mrf.mxu0 }
 0x3f0   : > { %4004 = vst [vmem:[#allocation12 + $0x258] sm:$0xff] %v3526_v50  ;;  %4010 = vst [vmem:[#allocation12 + $0x288] sm:$0xff] %v3371_v4 }
 0x3f1   : > { %v3530_v34 = vpop.f32.mrf.mxu1  ;;  %v3373_v0 = vpop.f32.mrf.mxu0 }
 0x3f2   : > { %4011 = vst [vmem:[#allocation12 + $0x290] sm:$0xff] %v3530_v34  ;;  %4017 = vst [vmem:[#allocation12 + $0x2c0] sm:$0xff] %v3373_v0 }
 0x3f3   : > { %v3532_v10 = vpop.f32.mrf.mxu1  ;;  %v3375_v38 = vpop.f32.mrf.mxu0 }
 0x3f4   : > { %4012 = vst [vmem:[#allocation12 + $0x298] sm:$0xff] %v3532_v10  ;;  %4018 = vst [vmem:[#allocation12 + $0x2c8] sm:$0xff] %v3375_v38 }
 0x3f5   : > { %v3534_v22 = vpop.f32.mrf.mxu1  ;;  %v3379_v41 = vpop.f32.mrf.mxu0 }
 0x3f6   : > { %4019 = vst [vmem:[#allocation12 + $0x2d0] sm:$0xff] %v3534_v22  ;;  %4025 = vst [vmem:[#allocation12 + $0x300] sm:$0xff] %v3379_v41 }
 0x3f7   : > { %v3536_v55 = vpop.f32.mrf.mxu1  ;;  %v3381_v53 = vpop.f32.mrf.mxu0 }
 0x3f8   : > { %4020 = vst [vmem:[#allocation12 + $0x2d8] sm:$0xff] %v3536_v55  ;;  %4026 = vst [vmem:[#allocation12 + $0x308] sm:$0xff] %v3381_v53 }
 0x3f9   : > { %v3540_v47 = vpop.f32.mrf.mxu1  ;;  %v3383_v21 = vpop.f32.mrf.mxu0 }
 0x3fa   : > { %4027 = vst [vmem:[#allocation12 + $0x310] sm:$0xff] %v3540_v47  ;;  %4033 = vst [vmem:[#allocation12 + $0x340] sm:$0xff] %v3383_v21 }
 0x3fb   : > { %v3542_v61 = vpop.f32.mrf.mxu1  ;;  %v3385_v37 = vpop.f32.mrf.mxu0 }
 0x3fc   : > { %4028 = vst [vmem:[#allocation12 + $0x318] sm:$0xff] %v3542_v61  ;;  %4034 = vst [vmem:[#allocation12 + $0x348] sm:$0xff] %v3385_v37 }
 0x3fd   : > { %v3544_v51 = vpop.f32.mrf.mxu1  ;;  %v3389_v30 = vpop.f32.mrf.mxu0 }
 0x3fe   : > { %4035 = vst [vmem:[#allocation12 + $0x350] sm:$0xff] %v3544_v51  ;;  %4041 = vst [vmem:[#allocation12 + $0x380] sm:$0xff] %v3389_v30 }
 0x3ff   : > { %v3546_v36 = vpop.f32.mrf.mxu1  ;;  %v3391_v12 = vpop.f32.mrf.mxu0 }
 0x400   : > { %4036 = vst [vmem:[#allocation12 + $0x358] sm:$0xff] %v3546_v36  ;;  %4042 = vst [vmem:[#allocation12 + $0x388] sm:$0xff] %v3391_v12 }
 0x401   : > { %v3550_v14 = vpop.f32.mrf.mxu1  ;;  %v3393_v9 = vpop.f32.mrf.mxu0 }
 0x402   : > { %4043 = vst [vmem:[#allocation12 + $0x390] sm:$0xff] %v3550_v14  ;;  %4049 = vst [vmem:[#allocation12 + $0x3c0] sm:$0xff] %v3393_v9 }
 0x403   : > { %v3552_v18 = vpop.f32.mrf.mxu1  ;;  %v3395_v39 = vpop.f32.mrf.mxu0 }
 0x404   : > { %4044 = vst [vmem:[#allocation12 + $0x398] sm:$0xff] %v3552_v18  ;;  %4050 = vst [vmem:[#allocation12 + $0x3c8] sm:$0xff] %v3395_v39 }
 0x405   : > { %v3554_v2 = vpop.f32.mrf.mxu1  ;;  %v3399_v48 = vpop.f32.mrf.mxu0 }
 0x406   : > { %4051 = vst [vmem:[#allocation12 + $0x3d0] sm:$0xff] %v3554_v2  ;;  %4057 = vst [vmem:[#allocation12 + $0x400] sm:$0xff] %v3399_v48 }
 0x407   : > { %v3556_v43 = vpop.f32.mrf.mxu1  ;;  %v3401_v40 = vpop.f32.mrf.mxu0 }
 0x408   : > { %4052 = vst [vmem:[#allocation12 + $0x3d8] sm:$0xff] %v3556_v43  ;;  %4058 = vst [vmem:[#allocation12 + $0x408] sm:$0xff] %v3401_v40 }
 0x409   : > { %v3560_v11 = vpop.f32.mrf.mxu1  ;;  %v3403_v17 = vpop.f32.mrf.mxu0 }
 0x40a   : > { %4059 = vst [vmem:[#allocation12 + $0x410] sm:$0xff] %v3560_v11  ;;  %4065 = vst [vmem:[#allocation12 + $0x440] sm:$0xff] %v3403_v17 }
 0x40b   : > { %v3562_v59 = vpop.f32.mrf.mxu1  ;;  %v3405_v28 = vpop.f32.mrf.mxu0 }
 0x40c   : > { %4060 = vst [vmem:[#allocation12 + $0x418] sm:$0xff] %v3562_v59  ;;  %4066 = vst [vmem:[#allocation12 + $0x448] sm:$0xff] %v3405_v28 }
 0x40d   : > { %v3564_v45 = vpop.f32.mrf.mxu1  ;;  %v3409_v24 = vpop.f32.mrf.mxu0 }
 0x40e   : > { %4067 = vst [vmem:[#allocation12 + $0x450] sm:$0xff] %v3564_v45  ;;  %4073 = vst [vmem:[#allocation12 + $0x480] sm:$0xff] %v3409_v24 }
 0x40f   : > { %v3566_v7 = vpop.f32.mrf.mxu1  ;;  %v3411_v33 = vpop.f32.mrf.mxu0 }
 0x410   : > { %4068 = vst [vmem:[#allocation12 + $0x458] sm:$0xff] %v3566_v7  ;;  %4074 = vst [vmem:[#allocation12 + $0x488] sm:$0xff] %v3411_v33 }
 0x411   : > { %v3570_v6 = vpop.f32.mrf.mxu1  ;;  %v3413_v46 = vpop.f32.mrf.mxu0 }
 0x412   : > { %4075 = vst [vmem:[#allocation12 + $0x490] sm:$0xff] %v3570_v6  ;;  %4081 = vst [vmem:[#allocation12 + $0x4c0] sm:$0xff] %v3413_v46 }
 0x413   : > { %v3572_v32 = vpop.f32.mrf.mxu1  ;;  %v3415_v27 = vpop.f32.mrf.mxu0 }
 0x414   : > { %4076 = vst [vmem:[#allocation12 + $0x498] sm:$0xff] %v3572_v32  ;;  %4082 = vst [vmem:[#allocation12 + $0x4c8] sm:$0xff] %v3415_v27 }
 0x415   : > { %v3574_v62 = vpop.f32.mrf.mxu1  ;;  %v3419_v63 = vpop.f32.mrf.mxu0 }
 0x416   : > { %4083 = vst [vmem:[#allocation12 + $0x4d0] sm:$0xff] %v3574_v62  ;;  %4089 = vst [vmem:[#allocation12 + $0x500] sm:$0xff] %v3419_v63 }
 0x417   : > { %v3576_v44 = vpop.f32.mrf.mxu1  ;;  %v3421_v49 = vpop.f32.mrf.mxu0 }
 0x418   : > { %4084 = vst [vmem:[#allocation12 + $0x4d8] sm:$0xff] %v3576_v44  ;;  %4090 = vst [vmem:[#allocation12 + $0x508] sm:$0xff] %v3421_v49 }
 0x419   : > { %v3580_v58 = vpop.f32.mrf.mxu1  ;;  %v3423_v8 = vpop.f32.mrf.mxu0 }
 0x41a   : > { %4091 = vst [vmem:[#allocation12 + $0x510] sm:$0xff] %v3580_v58  ;;  %4097 = vst [vmem:[#allocation12 + $0x540] sm:$0xff] %v3423_v8 }
 0x41b   : > { %v3582_v19 = vpop.f32.mrf.mxu1  ;;  %v3425_v52 = vpop.f32.mrf.mxu0 }
 0x41c   : > { %4092 = vst [vmem:[#allocation12 + $0x518] sm:$0xff] %v3582_v19  ;;  %4098 = vst [vmem:[#allocation12 + $0x548] sm:$0xff] %v3425_v52 }
 0x41d   : > { %v3584_v1 = vpop.f32.mrf.mxu1  ;;  %v3429_v25 = vpop.f32.mrf.mxu0 }
 0x41e   : > { %4099 = vst [vmem:[#allocation12 + $0x550] sm:$0xff] %v3584_v1  ;;  %4105 = vst [vmem:[#allocation12 + $0x580] sm:$0xff] %v3429_v25 }
 0x41f   : > { %v3586_v15 = vpop.f32.mrf.mxu1  ;;  %v3431_v31 = vpop.f32.mrf.mxu0 }
 0x420   : > { %4100 = vst [vmem:[#allocation12 + $0x558] sm:$0xff] %v3586_v15  ;;  %4106 = vst [vmem:[#allocation12 + $0x588] sm:$0xff] %v3431_v31 }
 0x421   : > { %v3590_v60 = vpop.f32.mrf.mxu1  ;;  %v3433_v35 = vpop.f32.mrf.mxu0 }
 0x422   : > { %4107 = vst [vmem:[#allocation12 + $0x590] sm:$0xff] %v3590_v60  ;;  %4113 = vst [vmem:[#allocation12 + $0x5c0] sm:$0xff] %v3433_v35 }
 0x423   : > { %v3592_v3 = vpop.f32.mrf.mxu1  ;;  %v3435_v5 = vpop.f32.mrf.mxu0 }
 0x424   : > { %4108 = vst [vmem:[#allocation12 + $0x598] sm:$0xff] %v3592_v3  ;;  %4114 = vst [vmem:[#allocation12 + $0x5c8] sm:$0xff] %v3435_v5 }
 0x425   : > { %v3594_v57 = vpop.f32.mrf.mxu1  ;;  %v3439_v20 = vpop.f32.mrf.mxu0 }
 0x426   : > { %4115 = vst [vmem:[#allocation12 + $0x5d0] sm:$0xff] %v3594_v57  ;;  %4121 = vst [vmem:[#allocation12 + $0x600] sm:$0xf] %v3439_v20 }
 0x427   : > { %v3596_v29 = vpop.f32.mrf.mxu1  ;;  %v3441_v16 = vpop.f32.mrf.mxu0 }
 0x428   : > { %4116 = vst [vmem:[#allocation12 + $0x5d8] sm:$0xff] %v3596_v29  ;;  %4122 = vst [vmem:[#allocation12 + $0x608] sm:$0xf] %v3441_v16 }
 0x429   : > { %v3600_v26 = vpop.f32.mrf.mxu1  ;;  %v3443_v42 = vpop.f32.mrf.mxu0 }
 0x42a   : > { %4123 = vst [vmem:[#allocation12 + $0x610] sm:$0xf] %v3600_v26 }
 0x42b   : > { %v3602_v13 = vpop.f32.mrf.mxu1  ;;  %v3444_v23 = vpop.f32.mrf.mxu0 }
 0x42c   : > { %4124 = vst [vmem:[#allocation12 + $0x618] sm:$0xf] %v3602_v13 }
 0x42d   : > { %v3604_v54 = vpop.f32.mrf.mxu1  ;;  %v3641_v56 = vpop.f32.mrf.mxu0 }
 0x42e   : > { %3933 = vst [vmem:[#allocation12 + $0x20] sm:$0xff] %v3641_v56 }
 0x42f   : > { %v3605_v50 = vpop.f32.mrf.mxu1  ;;  %v3643_v4 = vpop.f32.mrf.mxu0 }
 0x430   : > { %3934 = vst [vmem:[#allocation12 + $0x28] sm:$0xff] %v3643_v4 }
 0x431   : > { %v3802_v34 = vpop.f32.mrf.mxu1  ;;  %v3645_v0 = vpop.f32.mrf.mxu0 }
 0x432   : > { %3935 = vst [vmem:[#allocation12 + $0x30] sm:$0xff] %v3802_v34  ;;  %3941 = vst [vmem:[#allocation12 + $0x60] sm:$0xff] %v3645_v0 }
 0x433   : > { %v3804_v10 = vpop.f32.mrf.mxu1  ;;  %v3647_v38 = vpop.f32.mrf.mxu0 }
 0x434   : > { %3936 = vst [vmem:[#allocation12 + $0x38] sm:$0xff] %v3804_v10  ;;  %3942 = vst [vmem:[#allocation12 + $0x68] sm:$0xff] %v3647_v38 }
 0x435   : > { %v3806_v22 = vpop.f32.mrf.mxu1  ;;  %v3651_v41 = vpop.f32.mrf.mxu0 }
 0x436   : > { %3943 = vst [vmem:[#allocation12 + $0x70] sm:$0xff] %v3806_v22  ;;  %3949 = vst [vmem:[#allocation12 + $0xa0] sm:$0xff] %v3651_v41 }
 0x437   : > { %v3808_v55 = vpop.f32.mrf.mxu1  ;;  %v3653_v53 = vpop.f32.mrf.mxu0 }
 0x438   : > { %3944 = vst [vmem:[#allocation12 + $0x78] sm:$0xff] %v3808_v55  ;;  %3950 = vst [vmem:[#allocation12 + $0xa8] sm:$0xff] %v3653_v53 }
 0x439   : > { %v3812_v47 = vpop.f32.mrf.mxu1  ;;  %v3655_v21 = vpop.f32.mrf.mxu0 }
 0x43a   : > { %3951 = vst [vmem:[#allocation12 + $0xb0] sm:$0xff] %v3812_v47  ;;  %3957 = vst [vmem:[#allocation12 + $0xe0] sm:$0xff] %v3655_v21 }
 0x43b   : > { %v3814_v61 = vpop.f32.mrf.mxu1  ;;  %v3657_v37 = vpop.f32.mrf.mxu0 }
 0x43c   : > { %3952 = vst [vmem:[#allocation12 + $0xb8] sm:$0xff] %v3814_v61  ;;  %3958 = vst [vmem:[#allocation12 + $0xe8] sm:$0xff] %v3657_v37 }
 0x43d   : > { %v3816_v51 = vpop.f32.mrf.mxu1  ;;  %v3661_v30 = vpop.f32.mrf.mxu0 }
 0x43e   : > { %3959 = vst [vmem:[#allocation12 + $0xf0] sm:$0xff] %v3816_v51  ;;  %3965 = vst [vmem:[#allocation12 + $0x120] sm:$0xff] %v3661_v30 }
 0x43f   : > { %v3818_v36 = vpop.f32.mrf.mxu1  ;;  %v3663_v12 = vpop.f32.mrf.mxu0 }
 0x440   : > { %3960 = vst [vmem:[#allocation12 + $0xf8] sm:$0xff] %v3818_v36  ;;  %3966 = vst [vmem:[#allocation12 + $0x128] sm:$0xff] %v3663_v12 }
 0x441   : > { %v3822_v14 = vpop.f32.mrf.mxu1  ;;  %v3665_v9 = vpop.f32.mrf.mxu0 }
 0x442   : > { %3967 = vst [vmem:[#allocation12 + $0x130] sm:$0xff] %v3822_v14  ;;  %3973 = vst [vmem:[#allocation12 + $0x160] sm:$0xff] %v3665_v9 }
 0x443   : > { %v3824_v18 = vpop.f32.mrf.mxu1  ;;  %v3667_v39 = vpop.f32.mrf.mxu0 }
 0x444   : > { %3968 = vst [vmem:[#allocation12 + $0x138] sm:$0xff] %v3824_v18  ;;  %3974 = vst [vmem:[#allocation12 + $0x168] sm:$0xff] %v3667_v39 }
 0x445   : > { %v3826_v2 = vpop.f32.mrf.mxu1  ;;  %v3671_v48 = vpop.f32.mrf.mxu0 }
 0x446   : > { %3975 = vst [vmem:[#allocation12 + $0x170] sm:$0xff] %v3826_v2  ;;  %3981 = vst [vmem:[#allocation12 + $0x1a0] sm:$0xff] %v3671_v48 }
 0x447   : > { %v3828_v43 = vpop.f32.mrf.mxu1  ;;  %v3673_v40 = vpop.f32.mrf.mxu0 }
 0x448   : > { %3976 = vst [vmem:[#allocation12 + $0x178] sm:$0xff] %v3828_v43  ;;  %3982 = vst [vmem:[#allocation12 + $0x1a8] sm:$0xff] %v3673_v40 }
 0x449   : > { %v3832_v11 = vpop.f32.mrf.mxu1  ;;  %v3675_v17 = vpop.f32.mrf.mxu0 }
 0x44a   : > { %3983 = vst [vmem:[#allocation12 + $0x1b0] sm:$0xff] %v3832_v11  ;;  %3989 = vst [vmem:[#allocation12 + $0x1e0] sm:$0xff] %v3675_v17 }
 0x44b   : > { %v3834_v59 = vpop.f32.mrf.mxu1  ;;  %v3677_v28 = vpop.f32.mrf.mxu0 }
 0x44c   : > { %3984 = vst [vmem:[#allocation12 + $0x1b8] sm:$0xff] %v3834_v59  ;;  %3990 = vst [vmem:[#allocation12 + $0x1e8] sm:$0xff] %v3677_v28 }
 0x44d   : > { %v3836_v45 = vpop.f32.mrf.mxu1  ;;  %v3681_v24 = vpop.f32.mrf.mxu0 }
 0x44e   : > { %3991 = vst [vmem:[#allocation12 + $0x1f0] sm:$0xff] %v3836_v45  ;;  %3997 = vst [vmem:[#allocation12 + $0x220] sm:$0xff] %v3681_v24 }
 0x44f   : > { %v3838_v7 = vpop.f32.mrf.mxu1  ;;  %v3683_v33 = vpop.f32.mrf.mxu0 }
 0x450   : > { %3992 = vst [vmem:[#allocation12 + $0x1f8] sm:$0xff] %v3838_v7  ;;  %3998 = vst [vmem:[#allocation12 + $0x228] sm:$0xff] %v3683_v33 }
 0x451   : > { %v3842_v6 = vpop.f32.mrf.mxu1  ;;  %v3685_v46 = vpop.f32.mrf.mxu0 }
 0x452   : > { %3999 = vst [vmem:[#allocation12 + $0x230] sm:$0xff] %v3842_v6  ;;  %4005 = vst [vmem:[#allocation12 + $0x260] sm:$0xff] %v3685_v46 }
 0x453   : > { %v3844_v32 = vpop.f32.mrf.mxu1  ;;  %v3687_v27 = vpop.f32.mrf.mxu0 }
 0x454   : > { %4000 = vst [vmem:[#allocation12 + $0x238] sm:$0xff] %v3844_v32  ;;  %4006 = vst [vmem:[#allocation12 + $0x268] sm:$0xff] %v3687_v27 }
 0x455   : > { %v3846_v62 = vpop.f32.mrf.mxu1  ;;  %v3691_v63 = vpop.f32.mrf.mxu0 }
 0x456   : > { %4007 = vst [vmem:[#allocation12 + $0x270] sm:$0xff] %v3846_v62  ;;  %4013 = vst [vmem:[#allocation12 + $0x2a0] sm:$0xff] %v3691_v63 }
 0x457   : > { %v3848_v44 = vpop.f32.mrf.mxu1  ;;  %v3693_v49 = vpop.f32.mrf.mxu0 }
 0x458   : > { %4008 = vst [vmem:[#allocation12 + $0x278] sm:$0xff] %v3848_v44  ;;  %4014 = vst [vmem:[#allocation12 + $0x2a8] sm:$0xff] %v3693_v49 }
 0x459   : > { %v3852_v58 = vpop.f32.mrf.mxu1  ;;  %v3695_v8 = vpop.f32.mrf.mxu0 }
 0x45a   : > { %4015 = vst [vmem:[#allocation12 + $0x2b0] sm:$0xff] %v3852_v58  ;;  %4021 = vst [vmem:[#allocation12 + $0x2e0] sm:$0xff] %v3695_v8 }
 0x45b   : > { %v3854_v19 = vpop.f32.mrf.mxu1  ;;  %v3697_v52 = vpop.f32.mrf.mxu0 }
 0x45c   : > { %4016 = vst [vmem:[#allocation12 + $0x2b8] sm:$0xff] %v3854_v19  ;;  %4022 = vst [vmem:[#allocation12 + $0x2e8] sm:$0xff] %v3697_v52 }
 0x45d   : > { %v3856_v1 = vpop.f32.mrf.mxu1  ;;  %v3701_v25 = vpop.f32.mrf.mxu0 }
 0x45e   : > { %4023 = vst [vmem:[#allocation12 + $0x2f0] sm:$0xff] %v3856_v1  ;;  %4029 = vst [vmem:[#allocation12 + $0x320] sm:$0xff] %v3701_v25 }
 0x45f   : > { %v3858_v15 = vpop.f32.mrf.mxu1  ;;  %v3703_v31 = vpop.f32.mrf.mxu0 }
 0x460   : > { %4024 = vst [vmem:[#allocation12 + $0x2f8] sm:$0xff] %v3858_v15  ;;  %4030 = vst [vmem:[#allocation12 + $0x328] sm:$0xff] %v3703_v31 }
 0x461   : > { %v3862_v60 = vpop.f32.mrf.mxu1  ;;  %v3705_v35 = vpop.f32.mrf.mxu0 }
 0x462   : > { %4031 = vst [vmem:[#allocation12 + $0x330] sm:$0xff] %v3862_v60  ;;  %4037 = vst [vmem:[#allocation12 + $0x360] sm:$0xff] %v3705_v35 }
 0x463   : > { %v3864_v3 = vpop.f32.mrf.mxu1  ;;  %v3707_v5 = vpop.f32.mrf.mxu0 }
 0x464   : > { %4032 = vst [vmem:[#allocation12 + $0x338] sm:$0xff] %v3864_v3  ;;  %4038 = vst [vmem:[#allocation12 + $0x368] sm:$0xff] %v3707_v5 }
 0x465   : > { %v3866_v57 = vpop.f32.mrf.mxu1  ;;  %v3711_v20 = vpop.f32.mrf.mxu0 }
 0x466   : > { %4039 = vst [vmem:[#allocation12 + $0x370] sm:$0xff] %v3866_v57  ;;  %4045 = vst [vmem:[#allocation12 + $0x3a0] sm:$0xff] %v3711_v20 }
 0x467   : > { %v3868_v29 = vpop.f32.mrf.mxu1  ;;  %v3713_v16 = vpop.f32.mrf.mxu0 }
 0x468   : > { %4040 = vst [vmem:[#allocation12 + $0x378] sm:$0xff] %v3868_v29  ;;  %4046 = vst [vmem:[#allocation12 + $0x3a8] sm:$0xff] %v3713_v16 }
 0x469   : > { %v3872_v26 = vpop.f32.mrf.mxu1  ;;  %v3715_v42 = vpop.f32.mrf.mxu0 }
 0x46a   : > { %4047 = vst [vmem:[#allocation12 + $0x3b0] sm:$0xff] %v3872_v26  ;;  %4053 = vst [vmem:[#allocation12 + $0x3e0] sm:$0xff] %v3715_v42 }
 0x46b   : > { %v3874_v13 = vpop.f32.mrf.mxu1  ;;  %v3717_v23 = vpop.f32.mrf.mxu0 }
 0x46c   : > { %4048 = vst [vmem:[#allocation12 + $0x3b8] sm:$0xff] %v3874_v13  ;;  %4054 = vst [vmem:[#allocation12 + $0x3e8] sm:$0xff] %v3717_v23 }
 0x46d   : > { %v3876_v54 = vpop.f32.mrf.mxu1  ;;  %v3721_v56 = vpop.f32.mrf.mxu0 }
 0x46e   : > { %4055 = vst [vmem:[#allocation12 + $0x3f0] sm:$0xff] %v3876_v54  ;;  %4061 = vst [vmem:[#allocation12 + $0x420] sm:$0xff] %v3721_v56 }
 0x46f   : > { %v3878_v50 = vpop.f32.mrf.mxu1  ;;  %v3723_v4 = vpop.f32.mrf.mxu0 }
 0x470   : > { %4056 = vst [vmem:[#allocation12 + $0x3f8] sm:$0xff] %v3878_v50  ;;  %4062 = vst [vmem:[#allocation12 + $0x428] sm:$0xff] %v3723_v4 }
 0x471   : > { %v3882_v34 = vpop.f32.mrf.mxu1  ;;  %v3725_v0 = vpop.f32.mrf.mxu0 }
 0x472   : > { %4063 = vst [vmem:[#allocation12 + $0x430] sm:$0xff] %v3882_v34  ;;  %4069 = vst [vmem:[#allocation12 + $0x460] sm:$0xff] %v3725_v0 }
 0x473   : > { %v3884_v10 = vpop.f32.mrf.mxu1  ;;  %v3727_v38 = vpop.f32.mrf.mxu0 }
 0x474   : > { %4064 = vst [vmem:[#allocation12 + $0x438] sm:$0xff] %v3884_v10  ;;  %4070 = vst [vmem:[#allocation12 + $0x468] sm:$0xff] %v3727_v38 }
 0x475   : > { %v3886_v22 = vpop.f32.mrf.mxu1  ;;  %v3731_v41 = vpop.f32.mrf.mxu0 }
 0x476   : > { %4071 = vst [vmem:[#allocation12 + $0x470] sm:$0xff] %v3886_v22  ;;  %4077 = vst [vmem:[#allocation12 + $0x4a0] sm:$0xff] %v3731_v41 }
 0x477   : > { %v3888_v55 = vpop.f32.mrf.mxu1  ;;  %v3733_v53 = vpop.f32.mrf.mxu0 }
 0x478   : > { %4072 = vst [vmem:[#allocation12 + $0x478] sm:$0xff] %v3888_v55  ;;  %4078 = vst [vmem:[#allocation12 + $0x4a8] sm:$0xff] %v3733_v53 }
 0x479   : > { %v3892_v47 = vpop.f32.mrf.mxu1  ;;  %v3735_v21 = vpop.f32.mrf.mxu0 }
 0x47a   : > { %4079 = vst [vmem:[#allocation12 + $0x4b0] sm:$0xff] %v3892_v47  ;;  %4085 = vst [vmem:[#allocation12 + $0x4e0] sm:$0xff] %v3735_v21 }
 0x47b   : > { %v3894_v61 = vpop.f32.mrf.mxu1  ;;  %v3737_v37 = vpop.f32.mrf.mxu0 }
 0x47c   : > { %4080 = vst [vmem:[#allocation12 + $0x4b8] sm:$0xff] %v3894_v61  ;;  %4086 = vst [vmem:[#allocation12 + $0x4e8] sm:$0xff] %v3737_v37 }
 0x47d   : > { %v3896_v51 = vpop.f32.mrf.mxu1  ;;  %v3741_v30 = vpop.f32.mrf.mxu0 }
 0x47e   : > { %4087 = vst [vmem:[#allocation12 + $0x4f0] sm:$0xff] %v3896_v51  ;;  %4093 = vst [vmem:[#allocation12 + $0x520] sm:$0xff] %v3741_v30 }
 0x47f   : > { %v3898_v36 = vpop.f32.mrf.mxu1  ;;  %v3743_v12 = vpop.f32.mrf.mxu0 }
 0x480   : > { %4088 = vst [vmem:[#allocation12 + $0x4f8] sm:$0xff] %v3898_v36  ;;  %4094 = vst [vmem:[#allocation12 + $0x528] sm:$0xff] %v3743_v12 }
 0x481   : > { %v3902_v14 = vpop.f32.mrf.mxu1  ;;  %v3745_v9 = vpop.f32.mrf.mxu0 }
 0x482   : > { %4095 = vst [vmem:[#allocation12 + $0x530] sm:$0xff] %v3902_v14  ;;  %4101 = vst [vmem:[#allocation12 + $0x560] sm:$0xff] %v3745_v9 }
 0x483   : > { %v3904_v18 = vpop.f32.mrf.mxu1  ;;  %v3747_v39 = vpop.f32.mrf.mxu0 }
 0x484   : > { %4096 = vst [vmem:[#allocation12 + $0x538] sm:$0xff] %v3904_v18  ;;  %4102 = vst [vmem:[#allocation12 + $0x568] sm:$0xff] %v3747_v39 }
 0x485   : > { %v3906_v2 = vpop.f32.mrf.mxu1  ;;  %v3751_v48 = vpop.f32.mrf.mxu0 }
 0x486   : > { %4103 = vst [vmem:[#allocation12 + $0x570] sm:$0xff] %v3906_v2  ;;  %4109 = vst [vmem:[#allocation12 + $0x5a0] sm:$0xff] %v3751_v48 }
 0x487   : > { %v3908_v43 = vpop.f32.mrf.mxu1  ;;  %v3753_v40 = vpop.f32.mrf.mxu0 }
 0x488   : > { %4104 = vst [vmem:[#allocation12 + $0x578] sm:$0xff] %v3908_v43  ;;  %4110 = vst [vmem:[#allocation12 + $0x5a8] sm:$0xff] %v3753_v40 }
 0x489   : > { %v3912_v11 = vpop.f32.mrf.mxu1  ;;  %v3755_v17 = vpop.f32.mrf.mxu0 }
 0x48a   : > { %4111 = vst [vmem:[#allocation12 + $0x5b0] sm:$0xff] %v3912_v11  ;;  %4117 = vst [vmem:[#allocation12 + $0x5e0] sm:$0xff] %v3755_v17 }
 0x48b   : > { %v3914_v59 = vpop.f32.mrf.mxu1  ;;  %v3757_v28 = vpop.f32.mrf.mxu0 }
 0x48c   : > { %4112 = vst [vmem:[#allocation12 + $0x5b8] sm:$0xff] %v3914_v59  ;;  %4118 = vst [vmem:[#allocation12 + $0x5e8] sm:$0xff] %v3757_v28 }
 0x48d   : > { %v3916_v45 = vpop.f32.mrf.mxu1  ;;  %v3761_v24 = vpop.f32.mrf.mxu0 }
 0x48e   : > { %4119 = vst [vmem:[#allocation12 + $0x5f0] sm:$0xff] %v3916_v45  ;;  %4125 = vst [vmem:[#allocation12 + $0x620] sm:$0xf] %v3761_v24 }
 0x48f   : > { %v3918_v7 = vpop.f32.mrf.mxu1  ;;  %v3763_v33 = vpop.f32.mrf.mxu0 }
 0x490   : > { %4120 = vst [vmem:[#allocation12 + $0x5f8] sm:$0xff] %v3918_v7  ;;  %4126 = vst [vmem:[#allocation12 + $0x628] sm:$0xf] %v3763_v33 }
 0x491   : > { %v3922_v6 = vpop.f32.mrf.mxu1  ;;  %v3765_v46 = vpop.f32.mrf.mxu0 }
 0x492   : > { %4127 = vst [vmem:[#allocation12 + $0x630] sm:$0xf] %v3922_v6 }
 0x493   : > { %v3924_v32 = vpop.f32.mrf.mxu1  ;;  %v3766_v27 = vpop.f32.mrf.mxu0 }
 0x494   : > { %4128 = vst [vmem:[#allocation12 + $0x638] sm:$0xf] %v3924_v32 }
 0x495   : > { %v3926_v62 = vpop.f32.mrf.mxu1 }
 0x497   : > { %v3927_v44 = vpop.f32.mrf.mxu1 }
 0x498 PF: > { %p4645_p1 = scmp.eq.s32.totalorder %s5235_s22, 2  ;;  %s5183_s28 = smov [#allocation12]  }
 0x499   : > { %s4135_s29 = sshll.u32 %s5183_s28, 4  ;;  %s4136_s29 = int_to_ptr.vmem [resolvable:$true] %s4135_s29 }
 0x49a   : > { %s5094_s12 = scalar_lea.vmem %s4136_s29, 25600  ;;  %p5101_p5 = scmp.lt.s32.totalorder %s4136_s29, %s4136_s29 }
 0x49b   : > { %p5095_p13 = scmp.ne.s32.totalorder %s4136_s29, %s5094_s12  ;;  %p5102_p11 = scmp.lt.s32.totalorder %s5094_s12, %s5094_s12 }
 0x49d   : > { %p5096_p9 = pnand %p5095_p13, %p4645_p1  ;;  %p5103_p3 = por %p5102_p11, %p5101_p5 }
 0x49f   : > { %p5097_p7 = pneg %p5096_p9 }
 0x4a1   : > { %p5104_p10 = pnand %p5103_p3, %p5097_p7 }
 0x4a3   : > { %5107 = shalt.err (!%p5104_p10)
}
 0x4a4   : > { %s5184_s24 = smov 1024   ;;  %s5185_s14 = smov 64  }
 0x4a5   : > { %4618 = dma.vmem_to_hbm [thread:$0]  (%p4645_p1), %s4136_s29, 25600, %s6944_s5, [#allocation5], %s5184_s24, %s5184_s24, %s5185_s14  }
 0x4a6   : > { %5151 = dma.done.wait (%p4645_p1), [#allocation5], 25600  }
 0x4a7   : > { %5153 = vsyncadd (%p4645_p1), [#allocation5], 4294941696 }
 0x4a8 PF: > { %p20_p0 = scmp.ge.s32.totalorder %s5238_s23, 5   ;;  %s7109_s18 = smov %s5160_s19 }
 0x4a9   : > { %s7110_s19 = smov %s5164_s20  ;;  %s7111_s20 = smov %s5248_s26 }
 0x4aa   : > { %s7112_s21 = smov %s5238_s23  ;;  %22 = sbr.rel (!%p20_p0) target bundleno = 9 (0x9), region = 114 }
 0x4af   :  { %4151 = vsyncpa [#allocation4], 1 }
 0x4b0   :  { %4153 = vsyncpa [#allocation4 + $0x1], 1 }
 0x4b1   :  { %4154 = vsyncpa [#allocation7], 1 }
 0x4b2   :  { %4156 = vsyncpa [#allocation7 + $0x1], 1 }
 0x4b3   :  { %4157 = vsyncpa [#allocation10], 1 }
 0x4b4   :  { %4158 = vsyncpa [#allocation5], 1 }
 0x4b5   :  { %4160 = vsyncpa [#allocation5 + $0x1], 1 }

</bundles_post_ra>
